<compile_context>
chip_gen: v6e
topology: v6e:2x2x1
jax: 0.10.0
libtpu: 0.0.40
codegen_flags: <defaults>
</compile_context>

<pallas_src>
import jax
import jax.numpy as jnp
from jax import lax
from jax.experimental import pallas as pl
from jax.experimental.pallas import tpu as pltpu


# --------------------------------------------------------------------------
# Attention kernel: a group of TN spatial slabs per grid step
# --------------------------------------------------------------------------

def _attn_kernel(feat_ref, enc_ref, out_ref):
    # feat_ref: (TN, C, L) f32  — TN spatial slabs, each a (C, L) matrix.
    # enc_ref : (B,  L, C) bf16 — the B distinct nn.Linear outputs.
    # out_ref : (TN, C, L) bf16 — per-slab softmax(feat @ enc) @ feat.
    #
    # torch pairing: global slab n uses encode[n % B] (from encode.repeat(.,1,1)).
    # TN % B == 0, so within a block slab t uses enc[t % B] for every grid step.
    tn, c, l = feat_ref.shape
    b = enc_ref.shape[0]
    feat = feat_ref[...].astype(jnp.bfloat16)                       # bf16 MXU operands
    # enc_t[t] = enc[t % B]; broadcast + leading-dim merge is layout-trivial in VMEM.
    enc_t = jnp.broadcast_to(enc_ref[...][None], (tn // b, b, l, c)).reshape(tn, l, c)
    energy = jnp.einsum("tcl,tlk->tck", feat, enc_t,
                        preferred_element_type=jnp.float32)         # (TN, C, C) f32
    m = jnp.max(energy, axis=-1, keepdims=True)
    e = jnp.exp(energy - m)                                         # f32 softmax
    p = e * pl.reciprocal(jnp.sum(e, axis=-1, keepdims=True), approx=True)
    aug = jnp.einsum("tck,tkl->tcl", p.astype(jnp.bfloat16), feat,
                     preferred_element_type=jnp.float32)            # (TN, C, L) f32
    out_ref[...] = aug.astype(out_ref.dtype)


def _pick_num_groups(spatial, b, c, l, budget_bytes=4 << 20):
    # Number of grid steps d for one attention direction.  The block holds
    # tn = b * (spatial // d) slabs, so tn is a multiple of b (keeps the
    # in-kernel `t % b` encode pairing grid-invariant) and divides b*spatial.
    # Use the largest block that fits the VMEM budget, but prefer >= 2 steps
    # so both v7x TensorCores get work.
    per_slab = c * l * (4 + 2) * 2          # f32 feat in + bf16 out, double-buffered
    for d in range(1, spatial + 1):
        if spatial % d:
            continue
        if b * (spatial // d) * per_slab <= budget_bytes:
            if d == 1 and spatial % 2 == 0:
                return 2
            return d
    return spatial


def _attention(feat, enc):
    # feat: (NS, C, L) f32 with NS = B * spatial;  enc: (B, L, C) bf16.
    # Returns (NS, C, L) bf16 with out[n] = softmax(feat[n] @ enc[n % B]) @ feat[n].
    ns, c, l = feat.shape
    b = enc.shape[0]
    spatial = ns // b
    d = _pick_num_groups(spatial, b, c, l)
    tn = b * (spatial // d)
    return pl.pallas_call(
        _attn_kernel,
        out_shape=jax.ShapeDtypeStruct((ns, c, l), jnp.bfloat16),
        grid=(d,),
        in_specs=[pl.BlockSpec((tn, c, l), lambda i: (i, 0, 0)),
                  pl.BlockSpec((b, l, c), lambda i: (0, 0, 0))],
        out_specs=pl.BlockSpec((tn, c, l), lambda i: (i, 0, 0)),
        compiler_params=pltpu.CompilerParams(dimension_semantics=("parallel",)),
    )(feat, enc)


# --------------------------------------------------------------------------
# Fused gamma-combine + residual + 3x3 conv (padding=1) + BN(eval) + ReLU
# --------------------------------------------------------------------------

def _combine_conv_kernel(g_ref, ah_ref, aw_ref, x_ref, w_ref, s_ref, t_ref,
                         o_ref, pad_ref):
    # g_ref  : (1, 1)        f32  gamma
    # ah_ref : (1, H, W, C)  bf16 full_aug_h in NHWC
    # aw_ref : (1, H, W, C)  bf16 full_aug_w in NHWC
    # x_ref  : (1, H, W, C)  f32  residual input
    # w_ref  : (9, C, Cout)  bf16 conv taps, tap index = kh*3 + kw
    # s_ref  : (1, Cout)     f32  folded BN scale (gamma / sqrt(var + eps))
    # t_ref  : (1, Cout)     f32  folded BN shift (beta - mean * scale)
    # o_ref  : (1, H, W, Cout) f32
    # pad_ref: (H+2, W+2, C) bf16 VMEM scratch (zero-padded combined activation)
    h, w, c = x_ref.shape[1], x_ref.shape[2], x_ref.shape[3]
    cout = o_ref.shape[3]
    g = g_ref[0, 0]
    comb = g * (ah_ref[0].astype(jnp.float32) + aw_ref[0].astype(jnp.float32)) + x_ref[0]
    # padding=1 handled in a VMEM scratch — no host-side jnp.pad HBM round trip.
    pad_ref[...] = jnp.zeros(pad_ref.shape, pad_ref.dtype)
    pad_ref[1:h + 1, 1:w + 1, :] = comb.astype(jnp.bfloat16)
    acc = jnp.zeros((h * w, cout), jnp.float32)
    for kh in range(3):
        for kw in range(3):
            # Window is read straight from the padded VMEM scratch; the
            # (H, W, C) -> (H*W, C) merge is tile-aligned here (W % 8 == 0).
            win = pad_ref[kh:kh + h, kw:kw + w, :]
            acc = acc + jnp.dot(win.reshape(h * w, c), w_ref[kh * 3 + kw],
                                preferred_element_type=jnp.float32)
    y = acc * s_ref[0] + t_ref[0]
    o_ref[0] = jnp.maximum(y, 0.0).reshape(h, w, cout).astype(o_ref.dtype)


def _combine_conv_bn_relu(gamma, aug_h, aug_w, x_nhwc, w9, scale, shift):
    b, h, w, c = x_nhwc.shape
    cout = w9.shape[-1]
    # TODO(synk): for large H on v7x (64 MiB VMEM) tile spatially
    # (grid=(B, H//TH) with a TH+2-row halo) and set vmem_limit_bytes explicitly.
    return pl.pallas_call(
        _combine_conv_kernel,
        out_shape=jax.ShapeDtypeStruct((b, h, w, cout), jnp.float32),
        grid=(b,),
        in_specs=[pl.BlockSpec((1, 1), lambda i: (0, 0)),
                  pl.BlockSpec((1, h, w, c), lambda i: (i, 0, 0, 0)),
                  pl.BlockSpec((1, h, w, c), lambda i: (i, 0, 0, 0)),
                  pl.BlockSpec((1, h, w, c), lambda i: (i, 0, 0, 0)),
                  pl.BlockSpec((9, c, cout), lambda i: (0, 0, 0)),
                  pl.BlockSpec((1, cout), lambda i: (0, 0)),
                  pl.BlockSpec((1, cout), lambda i: (0, 0))],
        out_specs=pl.BlockSpec((1, h, w, cout), lambda i: (i, 0, 0, 0)),
        scratch_shapes=[pltpu.VMEM((h + 2, w + 2, c), jnp.bfloat16)],
        compiler_params=pltpu.CompilerParams(dimension_semantics=("parallel",)),
    )(gamma, aug_h, aug_w, x_nhwc, w9, scale[None, :], shift[None, :])


# --------------------------------------------------------------------------
# Forward pass (thin XLA glue, hot path in Pallas)
# --------------------------------------------------------------------------

def fully_attentional_block(x, p):
    # x: (B, C, H, W) float32, NCHW (same as the PyTorch module)
    b, c, h, w = x.shape

    # F.avg_pool2d(x,[1,W]) / [H,1] + nn.Linear — tiny, done in XLA, handed to
    # the attention kernels once as (B, L, C) bf16 blocks (no repeat blow-up).
    pool_h = jnp.mean(x, axis=3)                                   # (B, C, H)
    pool_w = jnp.mean(x, axis=2)                                   # (B, C, W)
    encode_h = (jnp.transpose(pool_h, (0, 2, 1)) @ p["w1"].T + p["b1"]).astype(jnp.bfloat16)
    encode_w = (jnp.transpose(pool_w, (0, 2, 1)) @ p["w2"].T + p["b2"]).astype(jnp.bfloat16)

    # feat_h[b*W+w] = x[b, :, :, w] (C, H);  feat_w[b*H+h] = x[b, :, h, :] (C, W)
    feat_h = jnp.transpose(x, (0, 3, 1, 2)).reshape(b * w, c, h)
    feat_w = jnp.transpose(x, (0, 2, 1, 3)).reshape(b * h, c, w)

    aug_h = _attention(feat_h, encode_h)                           # (B*W, C, H) bf16
    aug_w = _attention(feat_w, encode_w)                           # (B*H, C, W) bf16

    # NHWC views of the augmented tensors (== the torch .permute calls)
    aug_h_nhwc = jnp.transpose(aug_h.reshape(b, w, c, h), (0, 3, 1, 2))   # (B,H,W,C)
    aug_w_nhwc = jnp.transpose(aug_w.reshape(b, h, c, w), (0, 1, 3, 2))   # (B,H,W,C)
    x_nhwc = jnp.transpose(x, (0, 2, 3, 1))                               # (B,H,W,C)

    # conv3x3(no bias) + BatchNorm2d + ReLU, with gamma-combine + residual fused in.
    # TODO(synk): PyTorch BatchNorm2d in *train* mode uses batch statistics; here we
    # reproduce eval-mode semantics with running stats folded into scale/shift.
    w9 = jnp.transpose(p["conv_w"], (2, 3, 1, 0)).reshape(9, c, -1).astype(jnp.bfloat16)
    s = p["bn_gamma"] / jnp.sqrt(p["bn_var"] + 1e-5)
    t = p["bn_beta"] - p["bn_mean"] * s
    gamma = jnp.reshape(p["gamma"], (1, 1)).astype(jnp.float32)

    y = _combine_conv_bn_relu(gamma, aug_h_nhwc, aug_w_nhwc, x_nhwc, w9, s, t)
    return jnp.transpose(y, (0, 3, 1, 2))                                 # (B, Cout, H, W)


# --------------------------------------------------------------------------
# Deterministic parameter init (shapes from the module __init__)
# --------------------------------------------------------------------------

def init_params(key, plane, outplane):
    ks = jax.random.split(key, 7)
    p = {}
    p["w1"] = 0.2 * jax.random.normal(ks[0], (plane, plane), jnp.float32)    # nn.Linear(plane, plane)
    p["b1"] = 0.1 * jax.random.normal(ks[1], (plane,), jnp.float32)
    p["w2"] = 0.2 * jax.random.normal(ks[2], (plane, plane), jnp.float32)
    p["b2"] = 0.1 * jax.random.normal(ks[3], (plane,), jnp.float32)
    p["conv_w"] = 0.2 * jax.random.normal(ks[4], (outplane, plane, 3, 3), jnp.float32)  # Conv2d, bias=False
    p["bn_gamma"] = 1.0 + 0.1 * jax.random.normal(ks[5], (outplane,), jnp.float32)
    p["bn_beta"] = 0.1 * jax.random.normal(ks[6], (outplane,), jnp.float32)
    p["bn_mean"] = jnp.zeros((outplane,), jnp.float32)
    p["bn_var"] = jnp.ones((outplane,), jnp.float32)
    # __init__ uses torch.zeros(1); set nonzero so the attention branch matters.
    p["gamma"] = jnp.float32(0.5)
    return p


# --------------------------------------------------------------------------
# Pure-JAX f32 reference (mirrors the PyTorch code line-by-line)
# --------------------------------------------------------------------------

def reference(x, p):
    B, C, H, W = x.shape
    feat_h = jnp.transpose(x, (0, 3, 1, 2)).reshape(B * W, C, H)
    feat_w = jnp.transpose(x, (0, 2, 1, 3)).reshape(B * H, C, W)
    encode_h = jnp.transpose(jnp.mean(x, axis=3), (0, 2, 1)) @ p["w1"].T + p["b1"]
    encode_w = jnp.transpose(jnp.mean(x, axis=2), (0, 2, 1)) @ p["w2"].T + p["b2"]
    energy_h = jnp.einsum("ncl,nlk->nck", feat_h, jnp.tile(encode_h, (W, 1, 1)))
    energy_w = jnp.einsum("ncl,nlk->nck", feat_w, jnp.tile(encode_w, (H, 1, 1)))
    rel_h = jax.nn.softmax(energy_h, axis=-1)
    rel_w = jax.nn.softmax(energy_w, axis=-1)
    aug_h = jnp.einsum("nck,nkl->ncl", rel_h, feat_h)
    aug_w = jnp.einsum("nck,nkl->ncl", rel_w, feat_w)
    full_aug_h = jnp.transpose(aug_h.reshape(B, W, C, H), (0, 2, 3, 1))
    full_aug_w = jnp.transpose(aug_w.reshape(B, H, C, W), (0, 2, 1, 3))
    out = p["gamma"] * (full_aug_h + full_aug_w) + x
    y = lax.conv_general_dilated(out, p["conv_w"], (1, 1), "SAME",
                                 dimension_numbers=("NCHW", "OIHW", "NCHW"))
    s = p["bn_gamma"] / jnp.sqrt(p["bn_var"] + 1e-5)
    t = p["bn_beta"] - p["bn_mean"] * s
    y = y * s[None, :, None, None] + t[None, :, None, None]
    return jnp.maximum(y, 0.0)


if __name__ == "__main__":
    key = jax.random.PRNGKey(0)
    kp, kx = jax.random.split(key)
    B, C, H, W = 2, 4, 16, 16       # plane = 4
    OUTPLANE = 8

    params = init_params(kp, C, OUTPLANE)
    x = jax.random.normal(kx, (B, C, H, W), jnp.float32)

    y = jax.jit(fully_attentional_block)(x, params)
    jax.block_until_ready(y)

    y_ref = reference(x, params)
    assert y.shape == (B, OUTPLANE, H, W)
    # bf16 MXU operands (attention + conv) loosen the match vs the f32 reference;
    # accumulation, softmax and BN stay f32.
    assert jnp.allclose(y, y_ref, atol=3e-2, rtol=3e-2)

    print("KERNEL_OK")
</pallas_src>

<mosaic_0001>
module attributes {stable_mosaic.version = 11 : i64} {
  func.func @_attn_kernel(%arg0: i32, %arg1: memref<16x4x16xf32, #tpu.memory_space<vmem>>, %arg2: memref<2x16x4xbf16, #tpu.memory_space<vmem>>, %arg3: memref<16x4x16xbf16, #tpu.memory_space<vmem>>) attributes {dimension_semantics = [#tpu.dimension_semantics<parallel>], iteration_bounds = array<i64: 2>, scalar_prefetch = 0 : i64, scratch_operands = 0 : i64, tpu.core_type = #tpu.core_type<tc>, window_params = [{transform_indices = @transform_0, window_bounds = array<i64: 16, 4, 16>}, {pipeline_mode = #tpu.pipeline_mode<synchronous>, transform_indices = @transform_1, window_bounds = array<i64: 2, 16, 4>}, {transform_indices = @transform_2, window_bounds = array<i64: 16, 4, 16>}]} {
    %c0 = arith.constant 0 : index
    %c0_0 = arith.constant 0 : index
    %c0_1 = arith.constant 0 : index
    %0 = vector.load %arg1[%c0, %c0_0, %c0_1] : memref<16x4x16xf32, #tpu.memory_space<vmem>>, vector<16x4x16xf32>
    %1 = arith.truncf %0 : vector<16x4x16xf32> to vector<16x4x16xbf16>
    %c0_2 = arith.constant 0 : index
    %c0_3 = arith.constant 0 : index
    %c0_4 = arith.constant 0 : index
    %2 = vector.load %arg2[%c0_2, %c0_3, %c0_4] : memref<2x16x4xbf16, #tpu.memory_space<vmem>>, vector<2x16x4xbf16>
    %3 = vector.shape_cast %2 : vector<2x16x4xbf16> to vector<1x2x16x4xbf16>
    %4 = vector.shape_cast %3 : vector<1x2x16x4xbf16> to vector<1x2x16x4xbf16>
    %5 = vector.broadcast %4 : vector<1x2x16x4xbf16> to vector<8x2x16x4xbf16>
    %6 = vector.shape_cast %5 : vector<8x2x16x4xbf16> to vector<16x16x4xbf16>
    "tpu.trace_start"() <{level = 10 : i32, message = "tcl,tlk->tck"}> : () -> ()
    %cst = arith.constant dense<0.000000e+00> : vector<16x4x4xf32>
    %7 = tpu.matmul %1, %6, %cst {dimension_numbers = #tpu.dot_dimension_numbers<[2], [1], [1], [2], [0, 0, 0, 1, 1, 2], [0], [0]>} : vector<16x4x16xbf16>, vector<16x16x4xbf16>, vector<16x4x4xf32> -> vector<16x4x4xf32>
    "tpu.trace_stop"() : () -> ()
    %cst_5 = arith.constant dense<0xFF800000> : vector<16x4xf32>
    %8 = vector.multi_reduction <maximumf>, %7, %cst_5 [2] : vector<16x4x4xf32> to vector<16x4xf32>
    %9 = vector.shape_cast %8 : vector<16x4xf32> to vector<16x4x1xf32>
    %10 = vector.broadcast %9 : vector<16x4x1xf32> to vector<16x4x4xf32>
    %11 = arith.subf %7, %10 : vector<16x4x4xf32>
    %12 = math.exp %11 : vector<16x4x4xf32>
    %cst_6 = arith.constant dense<0.000000e+00> : vector<16x4xf32>
    %13 = vector.multi_reduction <add>, %12, %cst_6 [2] : vector<16x4x4xf32> to vector<16x4xf32>
    %14 = vector.shape_cast %13 : vector<16x4xf32> to vector<16x4x1xf32>
    %15 = tpu.reciprocal %14 {approx = true} : vector<16x4x1xf32> -> vector<16x4x1xf32>
    %16 = vector.broadcast %15 : vector<16x4x1xf32> to vector<16x4x4xf32>
    %17 = arith.mulf %12, %16 : vector<16x4x4xf32>
    %18 = arith.truncf %17 : vector<16x4x4xf32> to vector<16x4x4xbf16>
    "tpu.trace_start"() <{level = 10 : i32, message = "tck,tkl->tcl"}> : () -> ()
    %cst_7 = arith.constant dense<0.000000e+00> : vector<16x4x16xf32>
    %19 = tpu.matmul %18, %1, %cst_7 {dimension_numbers = #tpu.dot_dimension_numbers<[2], [1], [1], [2], [0, 0, 0, 1, 1, 2], [0], [0]>} : vector<16x4x4xbf16>, vector<16x4x16xbf16>, vector<16x4x16xf32> -> vector<16x4x16xf32>
    "tpu.trace_stop"() : () -> ()
    %20 = arith.truncf %19 : vector<16x4x16xf32> to vector<16x4x16xbf16>
    %c0_8 = arith.constant 0 : index
    %c0_9 = arith.constant 0 : index
    %c0_10 = arith.constant 0 : index
    %21 = vector.load %arg3[%c0_8, %c0_9, %c0_10] : memref<16x4x16xbf16, #tpu.memory_space<vmem>>, vector<16x4x16xbf16>
    tpu.vector_store %arg3[%c0_8, %c0_9, %c0_10], %20 {strides = array<i32>} : memref<16x4x16xbf16, #tpu.memory_space<vmem>>, vector<16x4x16xbf16>,
    return
  }
  func.func @transform_0(%arg0: i32) -> (i32, i32, i32) {
    %c0_i32 = arith.constant 0 : i32
    %c0_i32_0 = arith.constant 0 : i32
    %c0_i32_1 = arith.constant 0 : i32
    return %arg0, %c0_i32, %c0_i32_0 : i32, i32, i32
  }
  func.func @transform_1(%arg0: i32) -> (i32, i32, i32) {
    %c0_i32 = arith.constant 0 : i32
    %c0_i32_0 = arith.constant 0 : i32
    %c0_i32_1 = arith.constant 0 : i32
    %c0_i32_2 = arith.constant 0 : i32
    return %c0_i32, %c0_i32_0, %c0_i32_1 : i32, i32, i32
  }
  func.func @transform_2(%arg0: i32) -> (i32, i32, i32) {
    %c0_i32 = arith.constant 0 : i32
    %c0_i32_0 = arith.constant 0 : i32
    %c0_i32_1 = arith.constant 0 : i32
    return %arg0, %c0_i32, %c0_i32_0 : i32, i32, i32
  }
}

module attributes {stable_mosaic.version = 11 : i64} {
  func.func @_combine_conv_kernel(%arg0: i32, %arg1: memref<1x1xf32, #tpu.memory_space<vmem>>, %arg2: memref<1x16x16x4xbf16, #tpu.memory_space<vmem>>, %arg3: memref<1x16x16x4xbf16, #tpu.memory_space<vmem>>, %arg4: memref<1x16x16x4xf32, #tpu.memory_space<vmem>>, %arg5: memref<9x4x8xbf16, #tpu.memory_space<vmem>>, %arg6: memref<1x8xf32, #tpu.memory_space<vmem>>, %arg7: memref<1x8xf32, #tpu.memory_space<vmem>>, %arg8: memref<1x16x16x8xf32, #tpu.memory_space<vmem>>, %arg9: memref<18x18x4xbf16, #tpu.memory_space<vmem>>) attributes {dimension_semantics = [#tpu.dimension_semantics<parallel>], iteration_bounds = array<i64: 2>, scalar_prefetch = 0 : i64, scratch_operands = 1 : i64, tpu.core_type = #tpu.core_type<tc>, window_params = [{pipeline_mode = #tpu.pipeline_mode<synchronous>, transform_indices = @transform_0, window_bounds = array<i64: 1, 1>}, {transform_indices = @transform_1, window_bounds = array<i64: 1, 16, 16, 4>}, {transform_indices = @transform_2, window_bounds = array<i64: 1, 16, 16, 4>}, {transform_indices = @transform_3, window_bounds = array<i64: 1, 16, 16, 4>}, {pipeline_mode = #tpu.pipeline_mode<synchronous>, transform_indices = @transform_4, window_bounds = array<i64: 9, 4, 8>}, {pipeline_mode = #tpu.pipeline_mode<synchronous>, transform_indices = @transform_5, window_bounds = array<i64: 1, 8>}, {pipeline_mode = #tpu.pipeline_mode<synchronous>, transform_indices = @transform_6, window_bounds = array<i64: 1, 8>}, {transform_indices = @transform_7, window_bounds = array<i64: 1, 16, 16, 8>}]} {
    %c0 = arith.constant 0 : index
    %c0_0 = arith.constant 0 : index
    %0 = vector.load %arg1[%c0, %c0_0] : memref<1x1xf32, #tpu.memory_space<vmem>>, vector<1x1xf32>
    %1 = vector.extract %0[0, 0] : f32 from vector<1x1xf32>
    %c0_1 = arith.constant 0 : index
    %c0_2 = arith.constant 0 : index
    %c0_3 = arith.constant 0 : index
    %c0_4 = arith.constant 0 : index
    %2 = vector.load %arg2[%c0_1, %c0_2, %c0_3, %c0_4] : memref<1x16x16x4xbf16, #tpu.memory_space<vmem>>, vector<1x16x16x4xbf16>
    %3 = vector.shape_cast %2 : vector<1x16x16x4xbf16> to vector<16x16x4xbf16>
    %4 = arith.extf %3 : vector<16x16x4xbf16> to vector<16x16x4xf32>
    %c0_5 = arith.constant 0 : index
    %c0_6 = arith.constant 0 : index
    %c0_7 = arith.constant 0 : index
    %c0_8 = arith.constant 0 : index
    %5 = vector.load %arg3[%c0_5, %c0_6, %c0_7, %c0_8] : memref<1x16x16x4xbf16, #tpu.memory_space<vmem>>, vector<1x16x16x4xbf16>
    %6 = vector.shape_cast %5 : vector<1x16x16x4xbf16> to vector<16x16x4xbf16>
    %7 = arith.extf %6 : vector<16x16x4xbf16> to vector<16x16x4xf32>
    %8 = arith.addf %4, %7 : vector<16x16x4xf32>
    %9 = vector.broadcast %1 : f32 to vector<16x16x4xf32>
    %10 = arith.mulf %9, %8 : vector<16x16x4xf32>
    %c0_9 = arith.constant 0 : index
    %c0_10 = arith.constant 0 : index
    %c0_11 = arith.constant 0 : index
    %c0_12 = arith.constant 0 : index
    %11 = vector.load %arg4[%c0_9, %c0_10, %c0_11, %c0_12] : memref<1x16x16x4xf32, #tpu.memory_space<vmem>>, vector<1x16x16x4xf32>
    %12 = vector.shape_cast %11 : vector<1x16x16x4xf32> to vector<16x16x4xf32>
    %13 = arith.addf %10, %12 : vector<16x16x4xf32>
    %cst = arith.constant 0.000000e+00 : bf16
    %14 = vector.broadcast %cst : bf16 to vector<18x18x4xbf16>
    %c0_13 = arith.constant 0 : index
    %c0_14 = arith.constant 0 : index
    %c0_15 = arith.constant 0 : index
    %15 = vector.load %arg9[%c0_13, %c0_14, %c0_15] : memref<18x18x4xbf16, #tpu.memory_space<vmem>>, vector<18x18x4xbf16>
    tpu.vector_store %arg9[%c0_13, %c0_14, %c0_15], %14 {strides = array<i32>} : memref<18x18x4xbf16, #tpu.memory_space<vmem>>, vector<18x18x4xbf16>,
    %16 = arith.truncf %13 : vector<16x16x4xf32> to vector<16x16x4xbf16>
    %c1 = arith.constant 1 : index
    %c1_16 = arith.constant 1 : index
    %c0_17 = arith.constant 0 : index
    %17 = vector.load %arg9[%c1, %c1_16, %c0_17] : memref<18x18x4xbf16, #tpu.memory_space<vmem>>, vector<16x16x4xbf16>
    tpu.vector_store %arg9[%c1, %c1_16, %c0_17], %16 {strides = array<i32>} : memref<18x18x4xbf16, #tpu.memory_space<vmem>>, vector<16x16x4xbf16>,
    %cst_18 = arith.constant 0.000000e+00 : f32
    %18 = vector.broadcast %cst_18 : f32 to vector<256x8xf32>
    %c0_19 = arith.constant 0 : index
    %c0_20 = arith.constant 0 : index
    %c0_21 = arith.constant 0 : index
    %19 = vector.load %arg9[%c0_19, %c0_20, %c0_21] : memref<18x18x4xbf16, #tpu.memory_space<vmem>>, vector<16x16x4xbf16>
    %20 = vector.shape_cast %19 : vector<16x16x4xbf16> to vector<256x4xbf16>
    %c0_22 = arith.constant 0 : index
    %c0_23 = arith.constant 0 : index
    %c0_24 = arith.constant 0 : index
    %21 = vector.load %arg5[%c0_22, %c0_23, %c0_24] : memref<9x4x8xbf16, #tpu.memory_space<vmem>>, vector<1x4x8xbf16>
    %22 = vector.shape_cast %21 : vector<1x4x8xbf16> to vector<4x8xbf16>
    %cst_25 = arith.constant dense<0.000000e+00> : vector<256x8xf32>
    %23 = tpu.matmul %20, %22, %cst_25 {dimension_numbers = #tpu.dot_dimension_numbers<[1], [0], [0], [1], [0, 0, 1, 1], [], []>} : vector<256x4xbf16>, vector<4x8xbf16>, vector<256x8xf32> -> vector<256x8xf32>
    %24 = arith.addf %18, %23 : vector<256x8xf32>
    %c0_26 = arith.constant 0 : index
    %c1_27 = arith.constant 1 : index
    %c0_28 = arith.constant 0 : index
    %25 = vector.load %arg9[%c0_26, %c1_27, %c0_28] : memref<18x18x4xbf16, #tpu.memory_space<vmem>>, vector<16x16x4xbf16>
    %26 = vector.shape_cast %25 : vector<16x16x4xbf16> to vector<256x4xbf16>
    %c1_29 = arith.constant 1 : index
    %c0_30 = arith.constant 0 : index
    %c0_31 = arith.constant 0 : index
    %27 = vector.load %arg5[%c1_29, %c0_30, %c0_31] : memref<9x4x8xbf16, #tpu.memory_space<vmem>>, vector<1x4x8xbf16>
    %28 = vector.shape_cast %27 : vector<1x4x8xbf16> to vector<4x8xbf16>
    %cst_32 = arith.constant dense<0.000000e+00> : vector<256x8xf32>
    %29 = tpu.matmul %26, %28, %cst_32 {dimension_numbers = #tpu.dot_dimension_numbers<[1], [0], [0], [1], [0, 0, 1, 1], [], []>} : vector<256x4xbf16>, vector<4x8xbf16>, vector<256x8xf32> -> vector<256x8xf32>
    %30 = arith.addf %24, %29 : vector<256x8xf32>
    %c0_33 = arith.constant 0 : index
    %c2 = arith.constant 2 : index
    %c0_34 = arith.constant 0 : index
    %31 = vector.load %arg9[%c0_33, %c2, %c0_34] : memref<18x18x4xbf16, #tpu.memory_space<vmem>>, vector<16x16x4xbf16>
    %32 = vector.shape_cast %31 : vector<16x16x4xbf16> to vector<256x4xbf16>
    %c2_35 = arith.constant 2 : index
    %c0_36 = arith.constant 0 : index
    %c0_37 = arith.constant 0 : index
    %33 = vector.load %arg5[%c2_35, %c0_36, %c0_37] : memref<9x4x8xbf16, #tpu.memory_space<vmem>>, vector<1x4x8xbf16>
    %34 = vector.shape_cast %33 : vector<1x4x8xbf16> to vector<4x8xbf16>
    %cst_38 = arith.constant dense<0.000000e+00> : vector<256x8xf32>
    %35 = tpu.matmul %32, %34, %cst_38 {dimension_numbers = #tpu.dot_dimension_numbers<[1], [0], [0], [1], [0, 0, 1, 1], [], []>} : vector<256x4xbf16>, vector<4x8xbf16>, vector<256x8xf32> -> vector<256x8xf32>
    %36 = arith.addf %30, %35 : vector<256x8xf32>
    %c1_39 = arith.constant 1 : index
    %c0_40 = arith.constant 0 : index
    %c0_41 = arith.constant 0 : index
    %37 = vector.load %arg9[%c1_39, %c0_40, %c0_41] : memref<18x18x4xbf16, #tpu.memory_space<vmem>>, vector<16x16x4xbf16>
    %38 = vector.shape_cast %37 : vector<16x16x4xbf16> to vector<256x4xbf16>
    %c3 = arith.constant 3 : index
    %c0_42 = arith.constant 0 : index
    %c0_43 = arith.constant 0 : index
    %39 = vector.load %arg5[%c3, %c0_42, %c0_43] : memref<9x4x8xbf16, #tpu.memory_space<vmem>>, vector<1x4x8xbf16>
    %40 = vector.shape_cast %39 : vector<1x4x8xbf16> to vector<4x8xbf16>
    %cst_44 = arith.constant dense<0.000000e+00> : vector<256x8xf32>
    %41 = tpu.matmul %38, %40, %cst_44 {dimension_numbers = #tpu.dot_dimension_numbers<[1], [0], [0], [1], [0, 0, 1, 1], [], []>} : vector<256x4xbf16>, vector<4x8xbf16>, vector<256x8xf32> -> vector<256x8xf32>
    %42 = arith.addf %36, %41 : vector<256x8xf32>
    %c1_45 = arith.constant 1 : index
    %c1_46 = arith.constant 1 : index
    %c0_47 = arith.constant 0 : index
    %43 = vector.load %arg9[%c1_45, %c1_46, %c0_47] : memref<18x18x4xbf16, #tpu.memory_space<vmem>>, vector<16x16x4xbf16>
    %44 = vector.shape_cast %43 : vector<16x16x4xbf16> to vector<256x4xbf16>
    %c4 = arith.constant 4 : index
    %c0_48 = arith.constant 0 : index
    %c0_49 = arith.constant 0 : index
    %45 = vector.load %arg5[%c4, %c0_48, %c0_49] : memref<9x4x8xbf16, #tpu.memory_space<vmem>>, vector<1x4x8xbf16>
    %46 = vector.shape_cast %45 : vector<1x4x8xbf16> to vector<4x8xbf16>
    %cst_50 = arith.constant dense<0.000000e+00> : vector<256x8xf32>
    %47 = tpu.matmul %44, %46, %cst_50 {dimension_numbers = #tpu.dot_dimension_numbers<[1], [0], [0], [1], [0, 0, 1, 1], [], []>} : vector<256x4xbf16>, vector<4x8xbf16>, vector<256x8xf32> -> vector<256x8xf32>
    %48 = arith.addf %42, %47 : vector<256x8xf32>
    %c1_51 = arith.constant 1 : index
    %c2_52 = arith.constant 2 : index
    %c0_53 = arith.constant 0 : index
    %49 = vector.load %arg9[%c1_51, %c2_52, %c0_53] : memref<18x18x4xbf16, #tpu.memory_space<vmem>>, vector<16x16x4xbf16>
    %50 = vector.shape_cast %49 : vector<16x16x4xbf16> to vector<256x4xbf16>
    %c5 = arith.constant 5 : index
    %c0_54 = arith.constant 0 : index
    %c0_55 = arith.constant 0 : index
    %51 = vector.load %arg5[%c5, %c0_54, %c0_55] : memref<9x4x8xbf16, #tpu.memory_space<vmem>>, vector<1x4x8xbf16>
    %52 = vector.shape_cast %51 : vector<1x4x8xbf16> to vector<4x8xbf16>
    %cst_56 = arith.constant dense<0.000000e+00> : vector<256x8xf32>
    %53 = tpu.matmul %50, %52, %cst_56 {dimension_numbers = #tpu.dot_dimension_numbers<[1], [0], [0], [1], [0, 0, 1, 1], [], []>} : vector<256x4xbf16>, vector<4x8xbf16>, vector<256x8xf32> -> vector<256x8xf32>
    %54 = arith.addf %48, %53 : vector<256x8xf32>
    %c2_57 = arith.constant 2 : index
    %c0_58 = arith.constant 0 : index
    %c0_59 = arith.constant 0 : index
    %55 = vector.load %arg9[%c2_57, %c0_58, %c0_59] : memref<18x18x4xbf16, #tpu.memory_space<vmem>>, vector<16x16x4xbf16>
    %56 = vector.shape_cast %55 : vector<16x16x4xbf16> to vector<256x4xbf16>
    %c6 = arith.constant 6 : index
    %c0_60 = arith.constant 0 : index
    %c0_61 = arith.constant 0 : index
    %57 = vector.load %arg5[%c6, %c0_60, %c0_61] : memref<9x4x8xbf16, #tpu.memory_space<vmem>>, vector<1x4x8xbf16>
    %58 = vector.shape_cast %57 : vector<1x4x8xbf16> to vector<4x8xbf16>
    %cst_62 = arith.constant dense<0.000000e+00> : vector<256x8xf32>
    %59 = tpu.matmul %56, %58, %cst_62 {dimension_numbers = #tpu.dot_dimension_numbers<[1], [0], [0], [1], [0, 0, 1, 1], [], []>} : vector<256x4xbf16>, vector<4x8xbf16>, vector<256x8xf32> -> vector<256x8xf32>
    %60 = arith.addf %54, %59 : vector<256x8xf32>
    %c2_63 = arith.constant 2 : index
    %c1_64 = arith.constant 1 : index
    %c0_65 = arith.constant 0 : index
    %61 = vector.load %arg9[%c2_63, %c1_64, %c0_65] : memref<18x18x4xbf16, #tpu.memory_space<vmem>>, vector<16x16x4xbf16>
    %62 = vector.shape_cast %61 : vector<16x16x4xbf16> to vector<256x4xbf16>
    %c7 = arith.constant 7 : index
    %c0_66 = arith.constant 0 : index
    %c0_67 = arith.constant 0 : index
    %63 = vector.load %arg5[%c7, %c0_66, %c0_67] : memref<9x4x8xbf16, #tpu.memory_space<vmem>>, vector<1x4x8xbf16>
    %64 = vector.shape_cast %63 : vector<1x4x8xbf16> to vector<4x8xbf16>
    %cst_68 = arith.constant dense<0.000000e+00> : vector<256x8xf32>
    %65 = tpu.matmul %62, %64, %cst_68 {dimension_numbers = #tpu.dot_dimension_numbers<[1], [0], [0], [1], [0, 0, 1, 1], [], []>} : vector<256x4xbf16>, vector<4x8xbf16>, vector<256x8xf32> -> vector<256x8xf32>
    %66 = arith.addf %60, %65 : vector<256x8xf32>
    %c2_69 = arith.constant 2 : index
    %c2_70 = arith.constant 2 : index
    %c0_71 = arith.constant 0 : index
    %67 = vector.load %arg9[%c2_69, %c2_70, %c0_71] : memref<18x18x4xbf16, #tpu.memory_space<vmem>>, vector<16x16x4xbf16>
    %68 = vector.shape_cast %67 : vector<16x16x4xbf16> to vector<256x4xbf16>
    %c8 = arith.constant 8 : index
    %c0_72 = arith.constant 0 : index
    %c0_73 = arith.constant 0 : index
    %69 = vector.load %arg5[%c8, %c0_72, %c0_73] : memref<9x4x8xbf16, #tpu.memory_space<vmem>>, vector<1x4x8xbf16>
    %70 = vector.shape_cast %69 : vector<1x4x8xbf16> to vector<4x8xbf16>
    %cst_74 = arith.constant dense<0.000000e+00> : vector<256x8xf32>
    %71 = tpu.matmul %68, %70, %cst_74 {dimension_numbers = #tpu.dot_dimension_numbers<[1], [0], [0], [1], [0, 0, 1, 1], [], []>} : vector<256x4xbf16>, vector<4x8xbf16>, vector<256x8xf32> -> vector<256x8xf32>
    %72 = arith.addf %66, %71 : vector<256x8xf32>
    %c0_75 = arith.constant 0 : index
    %c0_76 = arith.constant 0 : index
    %73 = vector.load %arg6[%c0_75, %c0_76] : memref<1x8xf32, #tpu.memory_space<vmem>>, vector<1x8xf32>
    %74 = vector.shape_cast %73 : vector<1x8xf32> to vector<8xf32>
    %75 = vector.shape_cast %74 : vector<8xf32> to vector<1x8xf32>
    %76 = vector.broadcast %75 : vector<1x8xf32> to vector<256x8xf32>
    %77 = arith.mulf %72, %76 : vector<256x8xf32>
    %c0_77 = arith.constant 0 : index
    %c0_78 = arith.constant 0 : index
    %78 = vector.load %arg7[%c0_77, %c0_78] : memref<1x8xf32, #tpu.memory_space<vmem>>, vector<1x8xf32>
    %79 = vector.shape_cast %78 : vector<1x8xf32> to vector<8xf32>
    %80 = vector.shape_cast %79 : vector<8xf32> to vector<1x8xf32>
    %81 = vector.broadcast %80 : vector<1x8xf32> to vector<256x8xf32>
    %82 = arith.addf %77, %81 : vector<256x8xf32>
    %cst_79 = arith.constant 0.000000e+00 : f32
    %83 = vector.broadcast %cst_79 : f32 to vector<256x8xf32>
    %84 = arith.maximumf %82, %83 : vector<256x8xf32>
    %85 = vector.shape_cast %84 : vector<256x8xf32> to vector<16x16x8xf32>
    %c0_80 = arith.constant 0 : index
    %c0_81 = arith.constant 0 : index
    %c0_82 = arith.constant 0 : index
    %c0_83 = arith.constant 0 : index
    %86 = vector.load %arg8[%c0_80, %c0_81, %c0_82, %c0_83] : memref<1x16x16x8xf32, #tpu.memory_space<vmem>>, vector<1x16x16x8xf32>
    %87 = vector.shape_cast %86 : vector<1x16x16x8xf32> to vector<16x16x8xf32>
    %88 = vector.shape_cast %85 : vector<16x16x8xf32> to vector<1x16x16x8xf32>
    tpu.vector_store %arg8[%c0_80, %c0_81, %c0_82, %c0_83], %88 {strides = array<i32>} : memref<1x16x16x8xf32, #tpu.memory_space<vmem>>, vector<1x16x16x8xf32>,
    return
  }
  func.func @transform_0(%arg0: i32) -> (i32, i32) {
    %c0_i32 = arith.constant 0 : i32
    %c0_i32_0 = arith.constant 0 : i32
    %c0_i32_1 = arith.constant 0 : i32
    return %c0_i32, %c0_i32_0 : i32, i32
  }
  func.func @transform_1(%arg0: i32) -> (i32, i32, i32, i32) {
    %c0_i32 = arith.constant 0 : i32
    %c0_i32_0 = arith.constant 0 : i32
    %c0_i32_1 = arith.constant 0 : i32
    %c0_i32_2 = arith.constant 0 : i32
    return %arg0, %c0_i32, %c0_i32_0, %c0_i32_1 : i32, i32, i32, i32
  }
  func.func @transform_2(%arg0: i32) -> (i32, i32, i32, i32) {
    %c0_i32 = arith.constant 0 : i32
    %c0_i32_0 = arith.constant 0 : i32
    %c0_i32_1 = arith.constant 0 : i32
    %c0_i32_2 = arith.constant 0 : i32
    return %arg0, %c0_i32, %c0_i32_0, %c0_i32_1 : i32, i32, i32, i32
  }
  func.func @transform_3(%arg0: i32) -> (i32, i32, i32, i32) {
    %c0_i32 = arith.constant 0 : i32
    %c0_i32_0 = arith.constant 0 : i32
    %c0_i32_1 = arith.constant 0 : i32
    %c0_i32_2 = arith.constant 0 : i32
    return %arg0, %c0_i32, %c0_i32_0, %c0_i32_1 : i32, i32, i32, i32
  }
  func.func @transform_4(%arg0: i32) -> (i32, i32, i32) {
    %c0_i32 = arith.constant 0 : i32
    %c0_i32_0 = arith.constant 0 : i32
    %c0_i32_1 = arith.constant 0 : i32
    %c0_i32_2 = arith.constant 0 : i32
    return %c0_i32, %c0_i32_0, %c0_i32_1 : i32, i32, i32
  }
  func.func @transform_5(%arg0: i32) -> (i32, i32) {
    %c0_i32 = arith.constant 0 : i32
    %c0_i32_0 = arith.constant 0 : i32
    %c0_i32_1 = arith.constant 0 : i32
    return %c0_i32, %c0_i32_0 : i32, i32
  }
  func.func @transform_6(%arg0: i32) -> (i32, i32) {
    %c0_i32 = arith.constant 0 : i32
    %c0_i32_0 = arith.constant 0 : i32
    %c0_i32_1 = arith.constant 0 : i32
    return %c0_i32, %c0_i32_0 : i32, i32
  }
  func.func @transform_7(%arg0: i32) -> (i32, i32, i32, i32) {
    %c0_i32 = arith.constant 0 : i32
    %c0_i32_0 = arith.constant 0 : i32
    %c0_i32_1 = arith.constant 0 : i32
    %c0_i32_2 = arith.constant 0 : i32
    return %arg0, %c0_i32, %c0_i32_0, %c0_i32_1 : i32, i32, i32, i32
  }
}

</mosaic_0001>

<bundles_post_ra>
// kernel: fully_attentional_block.3
= control target key start
LH: loop header
LB: loop body
LE: loop exit
PB: predicated region body
PF: predicated region fallthrough
CT: control target
= control target key end

     0   :  { %s2291_s9 = smov 0   ;;  %s2758_s0 = inlined_call_operand.vmem [shape: f32[32,4,16], index: 0, kind: input, shape index: {}]   ;;  %s2759_s1 = inlined_call_operand.vmem [shape: bf16[2,16,4], index: 1, kind: input, shape index: {}]   ;;  %s2760_s2 = inlined_call_operand.vmem [shape: bf16[32,4,16], index: 2, kind: output, shape index: {}]  }
   0x1 LB: > { %s1889_s10 = sadd.s32 4294967295, %s2272_s9   ;;  %p1893_p0 = scmp.ge.s32.totalorder %s2272_s9, 1  ;;  %s2272_s9 = sphi %s2291_s9, %s12_s9  }
   0x2   : > { %p113_p1 = scmp.lt.s32.totalorder %s2272_s9, 3 }
   0x4   : > { %p114_p2 = pnand %p1893_p0, %p113_p1 }
   0x5   : > { %s1894_s15 = sshll.u32 (!%p114_p2), %s1889_s10, 4 }
   0x6   : > { %117 = sbr.rel (%p114_p2) target bundleno = 783 (0x30f), region = 28  ;;  %p136_p3 = scmp.lt.s32.totalorder (!%p114_p2), %s1894_s15, 31 }
   0xb   : > { %v2302_v0 = vld [vmem:[%s2759_s1] sm:$0xff]   ;;  %v2274_v1 = vmov 0.0   ;;  %v2309_v2 = vld [vmem:[%s2759_s1 + $0x8] sm:$0xff]   ;;  %vm2275_vm0 = vmmov 0   ;;  %s2762_s15 = smov (!%p136_p3, %s1894_s15), 31  ;;  %vm190_vm1 = vcmask 130048  }
   0xc   : > { %1998 = vmatprep.subr.bf16.mxu0 %v2274_v1  ;;  %2004 = vmatprep.subr.bf16.mxu1 %v2274_v1  ;;  %s1895_s16 = sshll.u32 %s2762_s15, 2  ;;  %vm885_vm2 = vcmask 27648   ;;  %vm1082_vm3 = vcmask 1041408   ;;  %vm1078_vm4 = vcmask 31744   ;;  %s1897_s20 = sshll.u32 %s2762_s15, 1  ;;  %vm1816_vm5 = vcmask 123904  }
   0xd   : > { %1999 = vmatpush3.bf16.msra.mxu0 %v2302_v0  ;;  %2000 = vmatprep.mubr.msk.bf16.mxu0 %vm2275_vm0, %v2274_v1  ;;  %s2325_s19 = scalar_lea.vmem %s2758_s0, %s1895_s16  ;;  %s2721_s23 = scalar_lea.vmem %s2760_s2, %s1897_s20 }
   0xe   : > { %2005 = vmatpush3.bf16.msra.mxu1 %v2309_v2  ;;  %2006 = vmatprep.mubr.msk.bf16.mxu1 %vm2275_vm0, %v2274_v1  ;;  %v148_v3 = vld [vmem:[%s2325_s19] sm:$0xf]  ;;  %v149_v4 = vld [vmem:[%s2325_s19 + $0x4] sm:$0xf]  ;;  %v150_v7 = vld [vmem:[%s2325_s19 + $0x8] sm:$0xf] }
   0xf   : > { %2010 = vmatprep.subr.bf16.mxu0 %v2274_v1  ;;  %2016 = vmatprep.subr.bf16.mxu1 %v2274_v1  ;;  %v2329_v5 = vpack.c.bf16 %v148_v3, %v148_v3  ;;  %v2331_v6 = vpack.c.bf16 %v149_v4, %v149_v4  ;;  %v151_v8 = vld [vmem:[%s2325_s19 + $0xc] sm:$0xf]  ;;  %v2347_v9 = vpack.c.bf16 %v150_v7, %v150_v7  ;;  %v152_v11 = vld [vmem:[%s2325_s19 + $0x10] sm:$0xf]  ;;  %v153_v12 = vld [vmem:[%s2325_s19 + $0x14] sm:$0xf] }
  0x10   : > { %v2349_v10 = vpack.c.bf16 %v151_v8, %v151_v8  ;;  %v2365_v13 = vpack.c.bf16 %v152_v11, %v152_v11  ;;  %v2367_v14 = vpack.c.bf16 %v153_v12, %v153_v12  ;;  %v154_v15 = vld [vmem:[%s2325_s19 + $0x18] sm:$0xf]  ;;  %v155_v16 = vld [vmem:[%s2325_s19 + $0x1c] sm:$0xf]  ;;  %v156_v19 = vld [vmem:[%s2325_s19 + $0x20] sm:$0xf] }
  0x11   : > { %2001 = vmatmul.mubr.msk.bf16.vlgmr.msra.gmra.mxu0 %vm190_vm1, %v2329_v5  ;;  %2007 = vmatmul.mubr.msk.bf16.vlgmr.msra.gmra.mxu1 %vm190_vm1, %v2331_v6  ;;  %v2383_v17 = vpack.c.bf16 %v154_v15, %v154_v15  ;;  %v2385_v18 = vpack.c.bf16 %v155_v16, %v155_v16  ;;  %v157_v20 = vld [vmem:[%s2325_s19 + $0x24] sm:$0xf]  ;;  %v2401_v21 = vpack.c.bf16 %v156_v19, %v156_v19  ;;  %v158_v23 = vld [vmem:[%s2325_s19 + $0x28] sm:$0xf]  ;;  %v159_v24 = vld [vmem:[%s2325_s19 + $0x2c] sm:$0xf] }
  0x12   : > { %2011 = vmatpush3.bf16.msra.mxu0 %v2302_v0  ;;  %2017 = vmatpush3.bf16.msra.mxu1 %v2309_v2  ;;  %v2403_v22 = vpack.c.bf16 %v157_v20, %v157_v20  ;;  %v2419_v25 = vpack.c.bf16 %v158_v23, %v158_v23  ;;  %v2421_v26 = vpack.c.bf16 %v159_v24, %v159_v24  ;;  %v160_v27 = vld [vmem:[%s2325_s19 + $0x30] sm:$0xf]  ;;  %v161_v28 = vld [vmem:[%s2325_s19 + $0x34] sm:$0xf]  ;;  %v162_v31 = vld [vmem:[%s2325_s19 + $0x38] sm:$0xf] }
  0x13   : > { %2012 = vmatprep.mubr.msk.bf16.mxu0 %vm2275_vm0, %v2274_v1  ;;  %2018 = vmatprep.mubr.msk.bf16.mxu1 %vm2275_vm0, %v2274_v1  ;;  %v2437_v29 = vpack.c.bf16 %v160_v27, %v160_v27  ;;  %v2439_v30 = vpack.c.bf16 %v161_v28, %v161_v28  ;;  %v163_v32 = vld [vmem:[%s2325_s19 + $0x3c] sm:$0xf]  ;;  %v2455_v33 = vpack.c.bf16 %v162_v31, %v162_v31 }
  0x14   : > { %2022 = vmatprep.subr.bf16.mxu0 %v2274_v1  ;;  %2028 = vmatprep.subr.bf16.mxu1 %v2274_v1  ;;  %v2457_v34 = vpack.c.bf16 %v163_v32, %v163_v32 }
  0x19   : > { %2013 = vmatmul.mubr.msk.bf16.vlgmr.msra.gmra.mxu0 %vm190_vm1, %v2347_v9  ;;  %2019 = vmatmul.mubr.msk.bf16.vlgmr.msra.gmra.mxu1 %vm190_vm1, %v2349_v10 }
  0x1a   : > { %2023 = vmatpush3.bf16.msra.mxu0 %v2302_v0  ;;  %2029 = vmatpush3.bf16.msra.mxu1 %v2309_v2 }
  0x1b   : > { %2024 = vmatprep.mubr.msk.bf16.mxu0 %vm2275_vm0, %v2274_v1  ;;  %2030 = vmatprep.mubr.msk.bf16.mxu1 %vm2275_vm0, %v2274_v1 }
  0x1c   : > { %2034 = vmatprep.subr.bf16.mxu0 %v2274_v1  ;;  %2040 = vmatprep.subr.bf16.mxu1 %v2274_v1 }
  0x21   : > { %2025 = vmatmul.mubr.msk.bf16.vlgmr.msra.gmra.mxu0 %vm190_vm1, %v2365_v13  ;;  %2031 = vmatmul.mubr.msk.bf16.vlgmr.msra.gmra.mxu1 %vm190_vm1, %v2367_v14 }
  0x22   : > { %2035 = vmatpush3.bf16.msra.mxu0 %v2302_v0  ;;  %2041 = vmatpush3.bf16.msra.mxu1 %v2309_v2 }
  0x23   : > { %2036 = vmatprep.mubr.msk.bf16.mxu0 %vm2275_vm0, %v2274_v1  ;;  %2042 = vmatprep.mubr.msk.bf16.mxu1 %vm2275_vm0, %v2274_v1 }
  0x24   : > { %2046 = vmatprep.subr.bf16.mxu0 %v2274_v1  ;;  %2052 = vmatprep.subr.bf16.mxu1 %v2274_v1 }
  0x29   : > { %2037 = vmatmul.mubr.msk.bf16.vlgmr.msra.gmra.mxu0 %vm190_vm1, %v2383_v17  ;;  %2043 = vmatmul.mubr.msk.bf16.vlgmr.msra.gmra.mxu1 %vm190_vm1, %v2385_v18 }
  0x2a   : > { %2047 = vmatpush3.bf16.msra.mxu0 %v2302_v0  ;;  %2053 = vmatpush3.bf16.msra.mxu1 %v2309_v2 }
  0x2b   : > { %2048 = vmatprep.mubr.msk.bf16.mxu0 %vm2275_vm0, %v2274_v1  ;;  %2054 = vmatprep.mubr.msk.bf16.mxu1 %vm2275_vm0, %v2274_v1 }
  0x2c   : > { %2058 = vmatprep.subr.bf16.mxu0 %v2274_v1  ;;  %2064 = vmatprep.subr.bf16.mxu1 %v2274_v1 }
  0x31   : > { %2049 = vmatmul.mubr.msk.bf16.vlgmr.msra.gmra.mxu0 %vm190_vm1, %v2401_v21  ;;  %2055 = vmatmul.mubr.msk.bf16.vlgmr.msra.gmra.mxu1 %vm190_vm1, %v2403_v22 }
  0x32   : > { %2059 = vmatpush3.bf16.msra.mxu0 %v2302_v0  ;;  %2065 = vmatpush3.bf16.msra.mxu1 %v2309_v2 }
  0x33   : > { %2060 = vmatprep.mubr.msk.bf16.mxu0 %vm2275_vm0, %v2274_v1  ;;  %2066 = vmatprep.mubr.msk.bf16.mxu1 %vm2275_vm0, %v2274_v1 }
  0x34   : > { %2070 = vmatprep.subr.bf16.mxu0 %v2274_v1  ;;  %2076 = vmatprep.subr.bf16.mxu1 %v2274_v1 }
  0x39   : > { %2061 = vmatmul.mubr.msk.bf16.vlgmr.msra.gmra.mxu0 %vm190_vm1, %v2419_v25  ;;  %2067 = vmatmul.mubr.msk.bf16.vlgmr.msra.gmra.mxu1 %vm190_vm1, %v2421_v26 }
  0x3a   : > { %2071 = vmatpush3.bf16.msra.mxu0 %v2302_v0  ;;  %2077 = vmatpush3.bf16.msra.mxu1 %v2309_v2 }
  0x3b   : > { %2072 = vmatprep.mubr.msk.bf16.mxu0 %vm2275_vm0, %v2274_v1  ;;  %2078 = vmatprep.mubr.msk.bf16.mxu1 %vm2275_vm0, %v2274_v1 }
  0x3c   : > { %2082 = vmatprep.subr.bf16.mxu0 %v2274_v1  ;;  %2088 = vmatprep.subr.bf16.mxu1 %v2274_v1 }
  0x41   : > { %2073 = vmatmul.mubr.msk.bf16.vlgmr.msra.gmra.mxu0 %vm190_vm1, %v2437_v29  ;;  %2079 = vmatmul.mubr.msk.bf16.vlgmr.msra.gmra.mxu1 %vm190_vm1, %v2439_v30 }
  0x42   : > { %2083 = vmatpush3.bf16.msra.mxu0 %v2302_v0  ;;  %2089 = vmatpush3.bf16.msra.mxu1 %v2309_v2 }
  0x43   : > { %2084 = vmatprep.mubr.msk.bf16.mxu0 %vm2275_vm0, %v2274_v1  ;;  %2090 = vmatprep.mubr.msk.bf16.mxu1 %vm2275_vm0, %v2274_v1 }
  0x44   : > { %2094 = vmatprep.subr.bf16.mxu0 %v2274_v1  ;;  %2100 = vmatprep.subr.bf16.mxu1 %v2274_v1 }
  0x49   : > { %2085 = vmatmul.mubr.msk.bf16.vlgmr.msra.gmra.mxu0 %vm190_vm1, %v2455_v33  ;;  %2091 = vmatmul.mubr.msk.bf16.vlgmr.msra.gmra.mxu1 %vm190_vm1, %v2457_v34 }
  0x4a   : > { %2096 = vmatprep.mubr.msk.bf16.mxu0 %vm2275_vm0, %v2274_v1  ;;  %2102 = vmatprep.mubr.msk.bf16.mxu1 %vm2275_vm0, %v2274_v1 }
  0xd1   : > { %v2467_v35 = vpop.f32.mrf.mxu0  ;;  %v2469_v36 = vpop.f32.mrf.mxu1 }
  0xd2   : > { %v886_v37 = vsel %vm885_vm2, %v2467_v35, -inf  ;;  %v889_v40 = vsel %vm885_vm2, %v2469_v36, -inf }
  0xd3   : > { %v2008_v38 = vpop.f32.mrf.mxu1  ;;  %887 = vmax.xlane.f32.xlu0 %v886_v37  ;;  %v2002_v39 = vpop.f32.mrf.mxu0 }
  0xd5   : > { %v231_v41 = vpop.f32.mrf.mxu0  ;;  %v280_v42 = vpop.f32.mrf.mxu1 }
  0xd7   : > { %v2009_v43 = vpop.f32.mrf.mxu1  ;;  %890 = vmax.xlane.f32.xlu0 %v889_v40  ;;  %v2003_v44 = vpop.f32.mrf.mxu0 }
  0xd9   : > { %v2475_v45 = vpop.f32.mrf.mxu0  ;;  %v2477_v46 = vpop.f32.mrf.mxu1 }
  0xda   : > { %v892_v47 = vsel %vm885_vm2, %v2475_v45, -inf  ;;  %v895_v50 = vsel %vm885_vm2, %v2477_v46, -inf }
  0xdb   : > { %v2020_v48 = vpop.f32.mrf.mxu1  ;;  %893 = vmax.xlane.f32.xlu1 %v892_v47  ;;  %v2014_v49 = vpop.f32.mrf.mxu0 }
  0xdd   : > { %v323_v51 = vpop.f32.mrf.mxu0  ;;  %v366_v52 = vpop.f32.mrf.mxu1 }
  0xdf   : > { %v2021_v53 = vpop.f32.mrf.mxu1  ;;  %896 = vmax.xlane.f32.xlu1 %v895_v50  ;;  %v2015_v54 = vpop.f32.mrf.mxu0 }
  0xe1   : > { %v2483_v55 = vpop.f32.mrf.mxu0  ;;  %v2485_v56 = vpop.f32.mrf.mxu1 }
  0xe2   : > { %v901_v57 = vsel %vm885_vm2, %v2485_v56, -inf  ;;  %v898_v58 = vsel %vm885_vm2, %v2483_v55, -inf }
  0xe3   : > { %v2032_v59 = vpop.f32.mrf.mxu1  ;;  %902 = vmax.xlane.f32.xlu1 %v901_v57  ;;  %899 = vmax.xlane.f32.xlu0 %v898_v58  ;;  %v2026_v60 = vpop.f32.mrf.mxu0 }
  0xe5   : > { %v409_v61 = vpop.f32.mrf.mxu0  ;;  %v452_v62 = vpop.f32.mrf.mxu1 }
  0xe7   : > { %v2027_v63 = vpop.f32.mrf.mxu0  ;;  %v2033_v0 = vpop.f32.mrf.mxu1 }
  0xe9   : > { %v2491_v2 = vpop.f32.mrf.mxu0  ;;  %v2493_v3 = vpop.f32.mrf.mxu1 }
  0xea   : > { %v907_v4 = vsel %vm885_vm2, %v2493_v3, -inf  ;;  %v904_v7 = vsel %vm885_vm2, %v2491_v2, -inf }
  0xeb   : > { %v2044_v8 = vpop.f32.mrf.mxu1  ;;  %908 = vmax.xlane.f32.xlu1 %v907_v4  ;;  %905 = vmax.xlane.f32.xlu0 %v904_v7  ;;  %v2038_v11 = vpop.f32.mrf.mxu0 }
  0xed   : > { %v495_v12 = vpop.f32.mrf.mxu0  ;;  %v538_v15 = vpop.f32.mrf.mxu1 }
  0xef   : > { %v2039_v16 = vpop.f32.mrf.mxu0  ;;  %v2045_v19 = vpop.f32.mrf.mxu1 }
  0xf1   : > { %v2499_v20 = vpop.f32.mrf.mxu0  ;;  %v2501_v23 = vpop.f32.mrf.mxu1 }
  0xf2   : > { %v913_v24 = vsel %vm885_vm2, %v2501_v23, -inf  ;;  %v910_v27 = vsel %vm885_vm2, %v2499_v20, -inf }
  0xf3   : > { %v2056_v28 = vpop.f32.mrf.mxu1  ;;  %914 = vmax.xlane.f32.xlu1 %v913_v24  ;;  %911 = vmax.xlane.f32.xlu0 %v910_v27  ;;  %v2050_v31 = vpop.f32.mrf.mxu0 }
  0xf5   : > { %v581_v32 = vpop.f32.mrf.mxu0  ;;  %v624_v37 = vpop.f32.mrf.mxu1 }
  0xf7   : > { %v2051_v38 = vpop.f32.mrf.mxu0  ;;  %v2057_v39 = vpop.f32.mrf.mxu1 }
  0xf9   : > { %v2507_v40 = vpop.f32.mrf.mxu0  ;;  %v2509_v41 = vpop.f32.mrf.mxu1 }
  0xfa   : > { %v919_v42 = vsel %vm885_vm2, %v2509_v41, -inf  ;;  %v916_v43 = vsel %vm885_vm2, %v2507_v40, -inf }
  0xfb   : > { %v2068_v44 = vpop.f32.mrf.mxu1  ;;  %920 = vmax.xlane.f32.xlu1 %v919_v42  ;;  %917 = vmax.xlane.f32.xlu0 %v916_v43  ;;  %v2062_v47 = vpop.f32.mrf.mxu0 }
  0xfd   : > { %v667_v48 = vpop.f32.mrf.mxu0  ;;  %v710_v49 = vpop.f32.mrf.mxu1 }
  0xff   : > { %v2063_v50 = vpop.f32.mrf.mxu0  ;;  %v2069_v51 = vpop.f32.mrf.mxu1 }
 0x101   : > { %v2515_v52 = vpop.f32.mrf.mxu0  ;;  %v2517_v53 = vpop.f32.mrf.mxu1 }
 0x102   : > { %v925_v54 = vsel %vm885_vm2, %v2517_v53, -inf  ;;  %v922_v57 = vsel %vm885_vm2, %v2515_v52, -inf }
 0x103   : > { %v2080_v58 = vpop.f32.mrf.mxu1  ;;  %926 = vmax.xlane.f32.xlu1 %v925_v54  ;;  %923 = vmax.xlane.f32.xlu0 %v922_v57  ;;  %v2074_v59 = vpop.f32.mrf.mxu0 }
 0x105   : > { %v753_v60 = vpop.f32.mrf.mxu0  ;;  %v796_v61 = vpop.f32.mrf.mxu1 }
 0x107   : > { %v2075_v62 = vpop.f32.mrf.mxu0  ;;  %v2081_v63 = vpop.f32.mrf.mxu1 }
 0x109   : > { %v2523_v0 = vpop.f32.mrf.mxu0  ;;  %v2525_v4 = vpop.f32.mrf.mxu1 }
 0x10a   : > { %v931_v7 = vsel %vm885_vm2, %v2525_v4, -inf  ;;  %v928_v8 = vsel %vm885_vm2, %v2523_v0, -inf }
 0x10b   : > { %v2092_v11 = vpop.f32.mrf.mxu1  ;;  %932 = vmax.xlane.f32.xlu1 %v931_v7  ;;  %929 = vmax.xlane.f32.xlu0 %v928_v8  ;;  %v2086_v12 = vpop.f32.mrf.mxu0 }
 0x10d   : > { %v839_v15 = vpop.f32.mrf.mxu0  ;;  %v882_v16 = vpop.f32.mrf.mxu1 }
 0x10f   : > { %v2087_v19 = vpop.f32.mrf.mxu0  ;;  %v2093_v24 = vpop.f32.mrf.mxu1 }
 0x15c   : > { %v888_v27 = vpop.xlane.xlu0 %887 }
 0x15d   : > { %v934_v28 = vsub.f32 %v2467_v35, %v888_v27 }
 0x15f   : > { %v950_v31 = vmul.f32 1.442695, %v934_v28 }
 0x160   : > { %v891_v32 = vpop.xlane.xlu0 %890 }
 0x161   : > { %2202 = vpow2.f32 %v950_v31  ;;  %v935_v37 = vsub.f32 %v2469_v36, %v891_v32 }
 0x163   : > { %v952_v38 = vmul.f32 1.442695, %v935_v37 }
 0x164   : > { %v894_v39 = vpop.xlane.xlu1 %893 }
 0x165   : > { %2204 = vpow2.f32 %v952_v38  ;;  %v936_v42 = vsub.f32 %v2475_v45, %v894_v39 }
 0x167   : > { %v954_v43 = vmul.f32 1.442695, %v936_v42 }
 0x168   : > { %v897_v44 = vpop.xlane.xlu1 %896 }
 0x169   : > { %2206 = vpow2.f32 %v954_v43  ;;  %v937_v47 = vsub.f32 %v2477_v46, %v897_v44 }
 0x16b   : > { %v956_v48 = vmul.f32 1.442695, %v937_v47  ;;  %v1083_v47 = vsel %vm1082_vm3, %v2329_v5, 0 }
 0x16c   : > { %v903_v49 = vpop.xlane.xlu1 %902  ;;  %v900_v50 = vpop.xlane.xlu0 %899  ;;  %2095 = vmatpush3.bf16.msra.mxu0 %v1083_v47 }
 0x16d   : > { %2208 = vpow2.f32 %v956_v48  ;;  %v939_v35 = vsub.f32 %v2485_v56, %v903_v49  ;;  %v938_v51 = vsub.f32 %v2483_v55, %v900_v50  ;;  %2106 = vmatprep.subr.bf16.mxu0 %v2274_v1 }
 0x16e   : > { %v2537_v54 = vpop.eup %2202 }
 0x16f   : > { %v960_v36 = vmul.f32 1.442695, %v939_v35  ;;  %v958_v57 = vmul.f32 1.442695, %v938_v51  ;;  %v982_v45 = vsel %vm885_vm2, %v2537_v54, 0.0 }
 0x170   : > { %983 = vadd.xlane.f32.xlu0 %v982_v45 }
 0x171   : > { %2210 = vpow2.f32 %v960_v36 }
 0x172   : > { %v2541_v58 = vpop.eup %2204  ;;  %2212 = vpow2.f32 %v958_v57 }
 0x173   : > { %v985_v46 = vsel %vm885_vm2, %v2541_v58, 0.0 }
 0x174   : > { %986 = vadd.xlane.f32.xlu1 %v985_v46  ;;  %v909_v59 = vpop.xlane.xlu1 %908  ;;  %v906_v56 = vpop.xlane.xlu0 %905 }
 0x175   : > { %v941_v55 = vsub.f32 %v2493_v3, %v909_v59  ;;  %v940_v60 = vsub.f32 %v2491_v2, %v906_v56 }
 0x176   : > { %v2547_v61 = vpop.eup %2206 }
 0x177   : > { %v964_v62 = vmul.f32 1.442695, %v941_v55  ;;  %v962_v63 = vmul.f32 1.442695, %v940_v60  ;;  %v988_v7 = vsel %vm885_vm2, %v2547_v61, 0.0 }
 0x178   : > { %989 = vadd.xlane.f32.xlu0 %v988_v7 }
 0x179   : > { %2214 = vpow2.f32 %v964_v62 }
 0x17a   : > { %v2551_v8 = vpop.eup %2208  ;;  %2216 = vpow2.f32 %v962_v63 }
 0x17b   : > { %v991_v11 = vsel %vm885_vm2, %v2551_v8, 0.0 }
 0x17c   : > { %992 = vadd.xlane.f32.xlu1 %v991_v11  ;;  %v915_v12 = vpop.xlane.xlu1 %914  ;;  %v912_v3 = vpop.xlane.xlu0 %911 }
 0x17d   : > { %v943_v2 = vsub.f32 %v2501_v23, %v915_v12  ;;  %v942_v15 = vsub.f32 %v2499_v20, %v912_v3 }
 0x17e   : > { %v2557_v16 = vpop.eup %2210 }
 0x17f   : > { %v2559_v19 = vpop.eup %2212  ;;  %v968_v24 = vmul.f32 1.442695, %v943_v2  ;;  %v966_v27 = vmul.f32 1.442695, %v942_v15  ;;  %v997_v28 = vsel %vm885_vm2, %v2557_v16, 0.0 }
 0x180   : > { %998 = vadd.xlane.f32.xlu1 %v997_v28  ;;  %v994_v31 = vsel %vm885_vm2, %v2559_v19, 0.0 }
 0x181   : > { %2218 = vpow2.f32 %v968_v24  ;;  %995 = vadd.xlane.f32.xlu0 %v994_v31 }
 0x182   : > { %2220 = vpow2.f32 %v966_v27 }
 0x184   : > { %v921_v32 = vpop.xlane.xlu1 %920  ;;  %v918_v23 = vpop.xlane.xlu0 %917 }
 0x185   : > { %v945_v20 = vsub.f32 %v2509_v41, %v921_v32  ;;  %v944_v37 = vsub.f32 %v2507_v40, %v918_v23  ;;  %v1128_v40 = vsel %vm1082_vm3, %v2331_v6, 0 }
 0x186   : > { %v2567_v38 = vpop.eup %2214  ;;  %2101 = vmatpush3.bf16.msra.mxu1 %v1128_v40 }
 0x187   : > { %v2569_v39 = vpop.eup %2216  ;;  %v972_v42 = vmul.f32 1.442695, %v945_v20  ;;  %v970_v43 = vmul.f32 1.442695, %v944_v37  ;;  %v1003_v44 = vsel %vm885_vm2, %v2567_v38, 0.0  ;;  %2112 = vmatprep.subr.bf16.mxu1 %v2274_v1 }
 0x188   : > { %1004 = vadd.xlane.f32.xlu1 %v1003_v44  ;;  %v1000_v48 = vsel %vm885_vm2, %v2569_v39, 0.0  ;;  %v1173_v44 = vsel %vm1082_vm3, %v2347_v9, 0 }
 0x189   : > { %2222 = vpow2.f32 %v972_v42  ;;  %1001 = vadd.xlane.f32.xlu0 %v1000_v48 }
 0x18a   : > { %2224 = vpow2.f32 %v970_v43 }
 0x18c   : > { %v927_v41 = vpop.xlane.xlu1 %926  ;;  %v924_v49 = vpop.xlane.xlu0 %923 }
 0x18d   : > { %v947_v5 = vsub.f32 %v2517_v53, %v927_v41  ;;  %v946_v50 = vsub.f32 %v2515_v52, %v924_v49 }
 0x18e   : > { %v2583_v35 = vpop.eup %2218 }
 0x18f   : > { %v2585_v51 = vpop.eup %2220  ;;  %v976_v36 = vmul.f32 1.442695, %v947_v5  ;;  %v974_v6 = vmul.f32 1.442695, %v946_v50  ;;  %v1009_v57 = vsel %vm885_vm2, %v2583_v35, 0.0 }
 0x190   : > { %1010 = vadd.xlane.f32.xlu1 %v1009_v57  ;;  %v1006_v45 = vsel %vm885_vm2, %v2585_v51, 0.0 }
 0x191   : > { %2226 = vpow2.f32 %v976_v36  ;;  %1007 = vadd.xlane.f32.xlu0 %v1006_v45 }
 0x192   : > { %2228 = vpow2.f32 %v974_v6  ;;  %v1308_v6 = vsel %vm1082_vm3, %v2367_v14, 0 }
 0x194   : > { %v933_v46 = vpop.xlane.xlu1 %932  ;;  %v930_v53 = vpop.xlane.xlu0 %929 }
 0x195   : > { %v949_v52 = vsub.f32 %v2525_v4, %v933_v46  ;;  %v948_v59 = vsub.f32 %v2523_v0, %v930_v53 }
 0x196   : > { %v2593_v56 = vpop.eup %2222 }
 0x197   : > { %v2595_v55 = vpop.eup %2224  ;;  %v980_v60 = vmul.f32 1.442695, %v949_v52  ;;  %v978_v62 = vmul.f32 1.442695, %v948_v59  ;;  %v1015_v63 = vsel %vm885_vm2, %v2593_v56, 0.0  ;;  %v1353_v52 = vsel %vm1082_vm3, %v2383_v17, 0 }
 0x198   : > { %1016 = vadd.xlane.f32.xlu1 %v1015_v63  ;;  %v1012_v7 = vsel %vm885_vm2, %v2595_v55, 0.0 }
 0x199   : > { %2230 = vpow2.f32 %v980_v60  ;;  %1013 = vadd.xlane.f32.xlu0 %v1012_v7 }
 0x19a   : > { %2232 = vpow2.f32 %v978_v62 }
 0x19e   : > { %v2601_v11 = vpop.eup %2226 }
 0x19f   : > { %v2603_v4 = vpop.eup %2228  ;;  %v1021_v0 = vsel %vm885_vm2, %v2601_v11, 0.0 }
 0x1a0   : > { %1022 = vadd.xlane.f32.xlu1 %v1021_v0  ;;  %v1018_v12 = vsel %vm885_vm2, %v2603_v4, 0.0  ;;  %v1443_v0 = vsel %vm1082_vm3, %v2401_v21, 0 }
 0x1a1   : > { %1019 = vadd.xlane.f32.xlu0 %v1018_v12 }
 0x1a6   : > { %v2609_v3 = vpop.eup %2230 }
 0x1a7   : > { %v2611_v2 = vpop.eup %2232  ;;  %v1027_v15 = vsel %vm885_vm2, %v2609_v3, 0.0 }
 0x1a8   : > { %1028 = vadd.xlane.f32.xlu1 %v1027_v15  ;;  %v1024_v24 = vsel %vm885_vm2, %v2611_v2, 0.0 }
 0x1a9   : > { %1025 = vadd.xlane.f32.xlu0 %v1024_v24 }
 0x1f9   : > { %v984_v27 = vpop.xlane.xlu0 %983 }
 0x1fa   : > { %2234 = vrcp.f32 %v984_v27 }
 0x1fd   : > { %v987_v28 = vpop.xlane.xlu1 %986 }
 0x1fe   : > { %2236 = vrcp.f32 %v987_v28 }
 0x201   : > { %v990_v31 = vpop.xlane.xlu0 %989 }
 0x202   : > { %2238 = vrcp.f32 %v990_v31  ;;  %v1533_v31 = vsel %vm1082_vm3, %v2419_v25, 0 }
 0x205   : > { %v993_v32 = vpop.xlane.xlu1 %992 }
 0x206   : > { %2240 = vrcp.f32 %v993_v32 }
 0x207   : > { %v2235_v23 = vpop.eup %2234 }
 0x208   : > { %v1046_v20 = vmul.f32 %v2235_v23, %v2537_v54  ;;  %v1218_v54 = vsel %vm1082_vm3, %v2349_v10, 0  ;;  %v1263_v10 = vsel %vm1082_vm3, %v2365_v13, 0 }
 0x209   : > { %v999_v37 = vpop.xlane.xlu1 %998 }
 0x20a   : > { %2242 = vrcp.f32 %v999_v37  ;;  %v996_v42 = vpop.xlane.xlu0 %995  ;;  %v1062_v43 = vpack.c.bf16 %v1046_v20, %v1046_v20 }
 0x20b   : > { %v2237_v47 = vpop.eup %2236  ;;  %2244 = vrcp.f32 %v996_v42 }
 0x20c   : > { %2097 = vmatmul.mubr.msk.bf16.vlgmr.msra.gmra.mxu0 %vm1078_vm4, %v1062_v43  ;;  %v1047_v48 = vmul.f32 %v2237_v47, %v2541_v58  ;;  %v1623_v43 = vsel %vm1082_vm3, %v2437_v29, 0 }
 0x20d   : > { %2107 = vmatpush3.bf16.msra.mxu0 %v1173_v44  ;;  %2108 = vmatprep.mubr.msk.bf16.mxu0 %vm2275_vm0, %v2274_v1 }
 0x20e   : > { %v1063_v40 = vpack.c.bf16 %v1047_v48, %v1047_v48  ;;  %2118 = vmatprep.subr.bf16.mxu0 %v2274_v1 }
 0x20f   : > { %v2239_v41 = vpop.eup %2238 }
 0x210   : > { %2103 = vmatmul.mubr.msk.bf16.vlgmr.msra.gmra.mxu1 %vm1078_vm4, %v1063_v40  ;;  %v1048_v9 = vmul.f32 %v2239_v41, %v2547_v61  ;;  %v1713_v40 = vsel %vm1082_vm3, %v2455_v33, 0  ;;  %v1758_v41 = vsel %vm1082_vm3, %v2457_v34, 0 }
 0x211   : > { %2113 = vmatpush3.bf16.msra.mxu1 %v1218_v54  ;;  %v1005_v49 = vpop.xlane.xlu1 %1004  ;;  %2114 = vmatprep.mubr.msk.bf16.mxu1 %vm2275_vm0, %v2274_v1 }
 0x212   : > { %2246 = vrcp.f32 %v1005_v49  ;;  %v1002_v58 = vpop.xlane.xlu0 %1001  ;;  %v1064_v5 = vpack.c.bf16 %v1048_v9, %v1048_v9  ;;  %2124 = vmatprep.subr.bf16.mxu1 %v2274_v1 }
 0x213   : > { %v2241_v50 = vpop.eup %2240  ;;  %2248 = vrcp.f32 %v1002_v58 }
 0x214   : > { %2109 = vmatmul.mubr.msk.bf16.vlgmr.msra.gmra.mxu0 %vm1078_vm4, %v1064_v5  ;;  %v1049_v36 = vmul.f32 %v2241_v50, %v2551_v8 }
 0x215   : > { %2119 = vmatpush3.bf16.msra.mxu0 %v1263_v10  ;;  %2120 = vmatprep.mubr.msk.bf16.mxu0 %vm2275_vm0, %v2274_v1 }
 0x216   : > { %v1065_v61 = vpack.c.bf16 %v1049_v36, %v1049_v36  ;;  %2130 = vmatprep.subr.bf16.mxu0 %v2274_v1 }
 0x217   : > { %v2243_v57 = vpop.eup %2242 }
 0x218   : > { %v2245_v45 = vpop.eup %2244  ;;  %2115 = vmatmul.mubr.msk.bf16.vlgmr.msra.gmra.mxu1 %vm1078_vm4, %v1065_v61  ;;  %v1051_v53 = vmul.f32 %v2243_v57, %v2557_v16 }
 0x219   : > { %2125 = vmatpush3.bf16.msra.mxu1 %v1308_v6  ;;  %v1011_v13 = vpop.xlane.xlu1 %1010  ;;  %v1050_v46 = vmul.f32 %v2245_v45, %v2559_v19  ;;  %2126 = vmatprep.mubr.msk.bf16.mxu1 %vm2275_vm0, %v2274_v1  ;;  %v1398_v19 = vsel %vm1082_vm3, %v2385_v18, 0 }
 0x21a   : > { %2250 = vrcp.f32 %v1011_v13  ;;  %v1008_v8 = vpop.xlane.xlu0 %1007  ;;  %2136 = vmatprep.subr.bf16.mxu1 %v2274_v1  ;;  %v1067_v59 = vpack.c.bf16 %v1051_v53, %v1051_v53 }
 0x21b   : > { %2252 = vrcp.f32 %v1008_v8  ;;  %v1066_v14 = vpack.c.bf16 %v1050_v46, %v1050_v46 }
 0x21d   : > { %2121 = vmatmul.mubr.msk.bf16.vlgmr.msra.gmra.mxu0 %vm1078_vm4, %v1066_v14 }
 0x21e   : > { %2131 = vmatpush3.bf16.msra.mxu0 %v1353_v52  ;;  %2132 = vmatprep.mubr.msk.bf16.mxu0 %vm2275_vm0, %v2274_v1 }
 0x21f   : > { %v2247_v60 = vpop.eup %2246  ;;  %2142 = vmatprep.subr.bf16.mxu0 %v2274_v1 }
 0x220   : > { %v2249_v62 = vpop.eup %2248  ;;  %2127 = vmatmul.mubr.msk.bf16.vlgmr.msra.gmra.mxu1 %vm1078_vm4, %v1067_v59  ;;  %v1053_v18 = vmul.f32 %v2247_v60, %v2567_v38 }
 0x221   : > { %2137 = vmatpush3.bf16.msra.mxu1 %v1398_v19  ;;  %v1017_v16 = vpop.xlane.xlu1 %1016  ;;  %v1052_v17 = vmul.f32 %v2249_v62, %v2569_v39  ;;  %2138 = vmatprep.mubr.msk.bf16.mxu1 %vm2275_vm0, %v2274_v1  ;;  %v1488_v39 = vsel %vm1082_vm3, %v2403_v22, 0 }
 0x222   : > { %2254 = vrcp.f32 %v1017_v16  ;;  %v1014_v63 = vpop.xlane.xlu0 %1013  ;;  %2148 = vmatprep.subr.bf16.mxu1 %v2274_v1  ;;  %v1069_v12 = vpack.c.bf16 %v1053_v18, %v1053_v18 }
 0x223   : > { %2256 = vrcp.f32 %v1014_v63  ;;  %v1068_v7 = vpack.c.bf16 %v1052_v17, %v1052_v17 }
 0x225   : > { %2133 = vmatmul.mubr.msk.bf16.vlgmr.msra.gmra.mxu0 %vm1078_vm4, %v1068_v7 }
 0x226   : > { %2143 = vmatpush3.bf16.msra.mxu0 %v1443_v0  ;;  %2144 = vmatprep.mubr.msk.bf16.mxu0 %vm2275_vm0, %v2274_v1 }
 0x227   : > { %v2251_v15 = vpop.eup %2250  ;;  %2154 = vmatprep.subr.bf16.mxu0 %v2274_v1 }
 0x228   : > { %v2253_v24 = vpop.eup %2252  ;;  %2139 = vmatmul.mubr.msk.bf16.vlgmr.msra.gmra.mxu1 %vm1078_vm4, %v1069_v12  ;;  %v1055_v22 = vmul.f32 %v2251_v15, %v2583_v35 }
 0x229   : > { %2149 = vmatpush3.bf16.msra.mxu1 %v1488_v39  ;;  %v1023_v38 = vpop.xlane.xlu1 %1022  ;;  %v1054_v21 = vmul.f32 %v2253_v24, %v2585_v51  ;;  %2150 = vmatprep.mubr.msk.bf16.mxu1 %vm2275_vm0, %v2274_v1  ;;  %v1578_v51 = vsel %vm1082_vm3, %v2421_v26, 0 }
 0x22a   : > { %2258 = vrcp.f32 %v1023_v38  ;;  %v1020_v27 = vpop.xlane.xlu0 %1019  ;;  %2160 = vmatprep.subr.bf16.mxu1 %v2274_v1  ;;  %v1071_v32 = vpack.c.bf16 %v1055_v22, %v1055_v22 }
 0x22b   : > { %2260 = vrcp.f32 %v1020_v27  ;;  %v1070_v28 = vpack.c.bf16 %v1054_v21, %v1054_v21 }
 0x22d   : > { %2145 = vmatmul.mubr.msk.bf16.vlgmr.msra.gmra.mxu0 %vm1078_vm4, %v1070_v28 }
 0x22e   : > { %2155 = vmatpush3.bf16.msra.mxu0 %v1533_v31  ;;  %2156 = vmatprep.mubr.msk.bf16.mxu0 %vm2275_vm0, %v2274_v1 }
 0x22f   : > { %v2255_v23 = vpop.eup %2254  ;;  %2166 = vmatprep.subr.bf16.mxu0 %v2274_v1 }
 0x230   : > { %v2257_v20 = vpop.eup %2256  ;;  %2151 = vmatmul.mubr.msk.bf16.vlgmr.msra.gmra.mxu1 %vm1078_vm4, %v1071_v32  ;;  %v1057_v26 = vmul.f32 %v2255_v23, %v2593_v56 }
 0x231   : > { %2161 = vmatpush3.bf16.msra.mxu1 %v1578_v51  ;;  %v1029_v35 = vpop.xlane.xlu1 %1028  ;;  %v1056_v25 = vmul.f32 %v2257_v20, %v2595_v55  ;;  %2162 = vmatprep.mubr.msk.bf16.mxu1 %vm2275_vm0, %v2274_v1  ;;  %v1668_v55 = vsel %vm1082_vm3, %v2439_v30, 0 }
 0x232   : > { %2262 = vrcp.f32 %v1029_v35  ;;  %v1026_v37 = vpop.xlane.xlu0 %1025  ;;  %2172 = vmatprep.subr.bf16.mxu1 %v2274_v1  ;;  %v1073_v44 = vpack.c.bf16 %v1057_v26, %v1057_v26 }
 0x233   : > { %2264 = vrcp.f32 %v1026_v37  ;;  %v1072_v42 = vpack.c.bf16 %v1056_v25, %v1056_v25 }
 0x235   : > { %2157 = vmatmul.mubr.msk.bf16.vlgmr.msra.gmra.mxu0 %vm1078_vm4, %v1072_v42 }
 0x236   : > { %2167 = vmatpush3.bf16.msra.mxu0 %v1623_v43  ;;  %2168 = vmatprep.mubr.msk.bf16.mxu0 %vm2275_vm0, %v2274_v1 }
 0x237   : > { %v2259_v47 = vpop.eup %2258  ;;  %2178 = vmatprep.subr.bf16.mxu0 %v2274_v1 }
 0x238   : > { %v2261_v48 = vpop.eup %2260  ;;  %2163 = vmatmul.mubr.msk.bf16.vlgmr.msra.gmra.mxu1 %vm1078_vm4, %v1073_v44  ;;  %v1059_v29 = vmul.f32 %v2259_v47, %v2601_v11 }
 0x239   : > { %2173 = vmatpush3.bf16.msra.mxu1 %v1668_v55  ;;  %v1058_v56 = vmul.f32 %v2261_v48, %v2603_v4  ;;  %2174 = vmatprep.mubr.msk.bf16.mxu1 %vm2275_vm0, %v2274_v1 }
 0x23a   : > { %2184 = vmatprep.subr.bf16.mxu1 %v2274_v1  ;;  %v1075_v54 = vpack.c.bf16 %v1059_v29, %v1059_v29 }
 0x23b   : > { %v1074_v30 = vpack.c.bf16 %v1058_v56, %v1058_v56 }
 0x23d   : > { %2169 = vmatmul.mubr.msk.bf16.vlgmr.msra.gmra.mxu0 %vm1078_vm4, %v1074_v30 }
 0x23e   : > { %2179 = vmatpush3.bf16.msra.mxu0 %v1713_v40  ;;  %2180 = vmatprep.mubr.msk.bf16.mxu0 %vm2275_vm0, %v2274_v1 }
 0x23f   : > { %v2263_v4 = vpop.eup %2262 }
 0x240   : > { %v2265_v9 = vpop.eup %2264  ;;  %2175 = vmatmul.mubr.msk.bf16.vlgmr.msra.gmra.mxu1 %vm1078_vm4, %v1075_v54  ;;  %v1061_v33 = vmul.f32 %v2263_v4, %v2609_v3 }
 0x241   : > { %2185 = vmatpush3.bf16.msra.mxu1 %v1758_v41  ;;  %v1060_v11 = vmul.f32 %v2265_v9, %v2611_v2  ;;  %2186 = vmatprep.mubr.msk.bf16.mxu1 %vm2275_vm0, %v2274_v1 }
 0x242   : > { %v1077_v58 = vpack.c.bf16 %v1061_v33, %v1061_v33 }
 0x243   : > { %v1076_v49 = vpack.c.bf16 %v1060_v11, %v1060_v11 }
 0x245   : > { %2181 = vmatmul.mubr.msk.bf16.vlgmr.msra.gmra.mxu0 %vm1078_vm4, %v1076_v49 }
 0x248   : > { %2187 = vmatmul.mubr.msk.bf16.vlgmr.msra.gmra.mxu1 %vm1078_vm4, %v1077_v58 }
 0x2cc   : > { %v1119_v34 = vpop.f32.mrf.mxu0 }
 0x2cd   : > { %v1800_v1 = vpack.c.bf16 %v1119_v34, %v1119_v34 }
 0x2ce   : > { %v2098_v2 = vpop.f32.mrf.mxu0 }
 0x2cf   : > { %1817 = vst.msk [vmem:[%s2721_s23] sm:$0x3] %vm1816_vm5, %v1800_v1 }
 0x2d0   : > { %v1122_v3 = vpop.f32.mrf.mxu0  ;;  %v1164_v5 = vpop.f32.mrf.mxu1 }
 0x2d1   : > { %v1801_v10 = vpack.c.bf16 %v1164_v5, %v1164_v5 }
 0x2d2   : > { %v2099_v50 = vpop.f32.mrf.mxu0  ;;  %v2104_v36 = vpop.f32.mrf.mxu1 }
 0x2d3   : > { %1818 = vst.msk [vmem:[%s2721_s23 + $0x2] sm:$0x3] %vm1816_vm5, %v1801_v10 }
 0x2d4   : > { %v1167_v61 = vpop.f32.mrf.mxu1  ;;  %v1209_v6 = vpop.f32.mrf.mxu0 }
 0x2d5   : > { %v1802_v57 = vpack.c.bf16 %v1209_v6, %v1209_v6 }
 0x2d6   : > { %v2105_v45 = vpop.f32.mrf.mxu1  ;;  %v2110_v13 = vpop.f32.mrf.mxu0 }
 0x2d7   : > { %1819 = vst.msk [vmem:[%s2721_s23 + $0x4] sm:$0x3] %vm1816_vm5, %v1802_v57 }
 0x2d8   : > { %v1212_v46 = vpop.f32.mrf.mxu0  ;;  %v1254_v8 = vpop.f32.mrf.mxu1 }
 0x2d9   : > { %v1803_v53 = vpack.c.bf16 %v1254_v8, %v1254_v8 }
 0x2da   : > { %v2111_v14 = vpop.f32.mrf.mxu0  ;;  %v2116_v52 = vpop.f32.mrf.mxu1 }
 0x2db   : > { %1820 = vst.msk [vmem:[%s2721_s23 + $0x6] sm:$0x3] %vm1816_vm5, %v1803_v53 }
 0x2dc   : > { %v1257_v59 = vpop.f32.mrf.mxu1 }
 0x2dd   : > { %v1299_v19 = vpop.f32.mrf.mxu0 }
 0x2de   : > { %v1804_v60 = vpack.c.bf16 %v1299_v19, %v1299_v19  ;;  %v2117_v62 = vpop.f32.mrf.mxu1 }
 0x2df   : > { %v2122_v16 = vpop.f32.mrf.mxu0 }
 0x2e0   : > { %1821 = vst.msk [vmem:[%s2721_s23 + $0x8] sm:$0x3] %vm1816_vm5, %v1804_v60  ;;  %v1344_v17 = vpop.f32.mrf.mxu1 }
 0x2e1   : > { %v1302_v63 = vpop.f32.mrf.mxu0  ;;  %v1805_v18 = vpack.c.bf16 %v1344_v17, %v1344_v17 }
 0x2e2   : > { %v2128_v7 = vpop.f32.mrf.mxu1 }
 0x2e3   : > { %1822 = vst.msk [vmem:[%s2721_s23 + $0xa] sm:$0x3] %vm1816_vm5, %v1805_v18  ;;  %v2123_v0 = vpop.f32.mrf.mxu0 }
 0x2e4   : > { %v1347_v12 = vpop.f32.mrf.mxu1 }
 0x2e5   : > { %v1389_v39 = vpop.f32.mrf.mxu0 }
 0x2e6   : > { %v1806_v15 = vpack.c.bf16 %v1389_v39, %v1389_v39  ;;  %v2129_v24 = vpop.f32.mrf.mxu1 }
 0x2e7   : > { %v2134_v38 = vpop.f32.mrf.mxu0 }
 0x2e8   : > { %1823 = vst.msk [vmem:[%s2721_s23 + $0xc] sm:$0x3] %vm1816_vm5, %v1806_v15  ;;  %v1434_v21 = vpop.f32.mrf.mxu1 }
 0x2e9   : > { %v1392_v27 = vpop.f32.mrf.mxu0  ;;  %v1807_v22 = vpack.c.bf16 %v1434_v21, %v1434_v21 }
 0x2ea   : > { %v2140_v28 = vpop.f32.mrf.mxu1 }
 0x2eb   : > { %1824 = vst.msk [vmem:[%s2721_s23 + $0xe] sm:$0x3] %vm1816_vm5, %v1807_v22  ;;  %v2135_v31 = vpop.f32.mrf.mxu0 }
 0x2ec   : > { %v1437_v32 = vpop.f32.mrf.mxu1 }
 0x2ed   : > { %v1479_v51 = vpop.f32.mrf.mxu0 }
 0x2ee   : > { %v1808_v23 = vpack.c.bf16 %v1479_v51, %v1479_v51  ;;  %v2141_v20 = vpop.f32.mrf.mxu1 }
 0x2ef   : > { %v2146_v35 = vpop.f32.mrf.mxu0 }
 0x2f0   : > { %1825 = vst.msk [vmem:[%s2721_s23 + $0x10] sm:$0x3] %vm1816_vm5, %v1808_v23  ;;  %v1524_v25 = vpop.f32.mrf.mxu1 }
 0x2f1   : > { %v1482_v37 = vpop.f32.mrf.mxu0  ;;  %v1809_v26 = vpack.c.bf16 %v1524_v25, %v1524_v25 }
 0x2f2   : > { %v2152_v42 = vpop.f32.mrf.mxu1 }
 0x2f3   : > { %1826 = vst.msk [vmem:[%s2721_s23 + $0x12] sm:$0x3] %vm1816_vm5, %v1809_v26  ;;  %v2147_v43 = vpop.f32.mrf.mxu0 }
 0x2f4   : > { %v1527_v44 = vpop.f32.mrf.mxu1 }
 0x2f5   : > { %v1569_v55 = vpop.f32.mrf.mxu0 }
 0x2f6   : > { %v1810_v47 = vpack.c.bf16 %v1569_v55, %v1569_v55  ;;  %v2153_v48 = vpop.f32.mrf.mxu1 }
 0x2f7   : > { %v2158_v56 = vpop.f32.mrf.mxu0 }
 0x2f8   : > { %1827 = vst.msk [vmem:[%s2721_s23 + $0x14] sm:$0x3] %vm1816_vm5, %v1810_v47  ;;  %v1614_v29 = vpop.f32.mrf.mxu1 }
 0x2f9   : > { %v1572_v30 = vpop.f32.mrf.mxu0  ;;  %v1811_v40 = vpack.c.bf16 %v1614_v29, %v1614_v29 }
 0x2fa   : > { %v2164_v54 = vpop.f32.mrf.mxu1 }
 0x2fb   : > { %1828 = vst.msk [vmem:[%s2721_s23 + $0x16] sm:$0x3] %vm1816_vm5, %v1811_v40  ;;  %v2159_v41 = vpop.f32.mrf.mxu0 }
 0x2fc   : > { %v1617_v4 = vpop.f32.mrf.mxu1 }
 0x2fd   : > { %v1659_v9 = vpop.f32.mrf.mxu0 }
 0x2fe   : > { %v1812_v11 = vpack.c.bf16 %v1659_v9, %v1659_v9  ;;  %v2165_v33 = vpop.f32.mrf.mxu1 }
 0x2ff   : > { %v2170_v49 = vpop.f32.mrf.mxu0 }
 0x300   : > { %1829 = vst.msk [vmem:[%s2721_s23 + $0x18] sm:$0x3] %vm1816_vm5, %v1812_v11  ;;  %v1704_v58 = vpop.f32.mrf.mxu1 }
 0x301   : > { %v1662_v34 = vpop.f32.mrf.mxu0  ;;  %v1813_v1 = vpack.c.bf16 %v1704_v58, %v1704_v58 }
 0x302   : > { %v2176_v2 = vpop.f32.mrf.mxu1 }
 0x303   : > { %1830 = vst.msk [vmem:[%s2721_s23 + $0x1a] sm:$0x3] %vm1816_vm5, %v1813_v1  ;;  %v2171_v3 = vpop.f32.mrf.mxu0 }
 0x304   : > { %v1707_v5 = vpop.f32.mrf.mxu1 }
 0x305   : > { %v1749_v10 = vpop.f32.mrf.mxu0 }
 0x306   : > { %v1814_v50 = vpack.c.bf16 %v1749_v10, %v1749_v10  ;;  %v2177_v36 = vpop.f32.mrf.mxu1 }
 0x307   : > { %v2182_v61 = vpop.f32.mrf.mxu0 }
 0x308   : > { %1831 = vst.msk [vmem:[%s2721_s23 + $0x1c] sm:$0x3] %vm1816_vm5, %v1814_v50  ;;  %v1794_v6 = vpop.f32.mrf.mxu1 }
 0x309   : > { %v1752_v57 = vpop.f32.mrf.mxu0  ;;  %v1815_v45 = vpack.c.bf16 %v1794_v6, %v1794_v6 }
 0x30a   : > { %v2188_v13 = vpop.f32.mrf.mxu1 }
 0x30b   : > { %1832 = vst.msk [vmem:[%s2721_s23 + $0x1e] sm:$0x3] %vm1816_vm5, %v1815_v45  ;;  %v2183_v46 = vpop.f32.mrf.mxu0 }
 0x30c   : > { %v1797_v8 = vpop.f32.mrf.mxu1 }
 0x30e   : > { %v2189_v53 = vpop.f32.mrf.mxu1 }
 0x30f PF: > { %s12_s9 = sadd.s32 1, %s2272_s9  }
 0x310   : > { %p9_p4 = scmp.ge.s32.totalorder %s12_s9, 4  }
 0x312   :  { %11 = sbr.rel (!%p9_p4) target bundleno = 1 (0x1), region = 58 }

// kernel: fully_attentional_block.5
= control target key start
LH: loop header
LB: loop body
LE: loop exit
PB: predicated region body
PF: predicated region fallthrough
CT: control target
= control target key end

     0   :  { %s7130_s26 = smov 0   ;;  %s10074_s0 = inlined_call_operand.<no memory space> [shape: f32[1,1], index: 0, kind: input, shape index: {}]   ;;  %s10075_s1 = inlined_call_operand.vmem [shape: bf16[2,16,16,4], index: 1, kind: input, shape index: {}]   ;;  %s10076_s2 = inlined_call_operand.vmem [shape: bf16[2,16,16,4], index: 2, kind: input, shape index: {}]   ;;  %s10077_s3 = inlined_call_operand.vmem [shape: f32[2,16,16,4], index: 3, kind: input, shape index: {}]   ;;  %s10078_s4 = inlined_call_operand.vmem [shape: bf16[9,4,8], index: 4, kind: input, shape index: {}]   ;;  %s10079_s5 = inlined_call_operand.vmem [shape: f32[1,8], index: 5, kind: input, shape index: {}]   ;;  %s10080_s6 = inlined_call_operand.vmem [shape: f32[1,8], index: 6, kind: input, shape index: {}]   ;;  %s10081_s7 = inlined_call_operand.vmem [shape: f32[2,16,16,8], index: 7, kind: output, shape index: {}]  }
   0x1   :  { %v12_v0 = vstv %s10074_s0 }
   0x2   :  { %13 = vst [vmem:[#allocation3] sm:$0x1] %v12_v0 }
   0x3 LB: > { %s5954_s27 = sadd.s32 4294967295, %s7084_s26   ;;  %p5958_p0 = scmp.ge.s32.totalorder %s7084_s26, 1  ;;  %s7084_s26 = sphi %s7130_s26, %s19_s26  }
   0x4   : > { %p259_p1 = scmp.lt.s32.totalorder %s7084_s26, 3 }
   0x6   : > { %p260_p2 = pnand %p5958_p0, %p259_p1 }
   0x8   : > { %263 = sbr.rel (%p260_p2) target bundleno = 685 (0x2ad), region = 48 }
   0xd   : > { %v322_v1 = vld [vmem:[#allocation3] sm:$0x1]  ;;  %v5999_v2 = vld [vmem:[%s10078_s4 + $0x2] sm:$0x3]  ;;  %vm1709_vm0 = vcmask 1041408   ;;  %vm581_vm1 = vcmask 27648  }
   0xe   : > { %7012 = vpush %v322_v1  ;;  %7002 = vmatprep.subr.msk.bf16.mxu0 %vm1709_vm0, %v5999_v2  ;;  %7003 = vmatprep.subr.msk.bf16.mxu1 %vm1709_vm0, %v5999_v2  ;;  %v1711_v3 = vsel %vm1709_vm0, %v5999_v2, 0  ;;  %vm584_vm2 = vcmask 24576   ;;  %v7086_v4 = vmov 0   ;;  %v1206_v5 = vld [vmem:[%s10078_s4] sm:$0x3]  ;;  %p301_p3 = scmp.lt.s32.totalorder %s5954_s27, 1 }
   0xf   : > { %6695 = vmatpush3.bf16.msra.mxu0 %v1711_v3  ;;  %7001 = vmatpush3.bf16.msra.mxu1 %v1711_v3  ;;  %582 = vst.msk [vmem:[#allocation2] sm:$0xf] %vm581_vm1, %v7086_v4  ;;  %583 = vst.msk [vmem:[#allocation2 + $0x4] sm:$0xf] %vm581_vm1, %v7086_v4  ;;  %v6080_v6 = vld [vmem:[%s10078_s4 + $0x4] sm:$0x3] }
  0x10   : > { %585 = vst.msk [vmem:[#allocation2 + $0x8] sm:$0x1] %vm584_vm2, %v7086_v4  ;;  %588 = vst.msk [vmem:[#allocation2 + $0x14] sm:$0x1] %vm584_vm2, %v7086_v4  ;;  %7004 = vmatprep.subr.msk.bf16.mxu1 %vm1709_vm0, %v1206_v5  ;;  %7005 = vmatprep.subr.msk.bf16.mxu0 %vm1709_vm0, %v6080_v6  ;;  %vm1223_vm3 = vsmask.f32 3328 }
  0x11   : > { %586 = vst.msk [vmem:[#allocation2 + $0xc] sm:$0xf] %vm581_vm1, %v7086_v4  ;;  %587 = vst.msk [vmem:[#allocation2 + $0x10] sm:$0xf] %vm581_vm1, %v7086_v4  ;;  %vm1224_vm4 = vsmask.f32 7440 }
  0x12   : > { %589 = vst.msk [vmem:[#allocation2 + $0x18] sm:$0xf] %vm581_vm1, %v7086_v4  ;;  %590 = vst.msk [vmem:[#allocation2 + $0x1c] sm:$0xf] %vm581_vm1, %v7086_v4  ;;  %s10359_s27 = smov (!%p301_p3, %s5954_s27), 1  ;;  %vm1660_vm6 = vcmask 31744  }
  0x13   : > { %591 = vst.msk [vmem:[#allocation2 + $0x20] sm:$0x1] %vm584_vm2, %v7086_v4  ;;  %594 = vst.msk [vmem:[#allocation2 + $0x2c] sm:$0x1] %vm584_vm2, %v7086_v4  ;;  %s6347_s10 = sshll.u32 %s10359_s27, 7  ;;  %v7239_v34 = vsel %vm1709_vm0, %v1206_v5, 0 }
  0x14   : > { %592 = vst.msk [vmem:[#allocation2 + $0x24] sm:$0xf] %vm581_vm1, %v7086_v4  ;;  %593 = vst.msk [vmem:[#allocation2 + $0x28] sm:$0xf] %vm581_vm1, %v7086_v4  ;;  %s7225_s13 = scalar_lea.vmem %s10075_s1, %s6347_s10  ;;  %s7230_s16 = scalar_lea.vmem %s10076_s2, %s6347_s10  ;;  %v7242_v35 = vsel %vm1709_vm0, %v6080_v6, 0  ;;  %vm2214_vm13 = vcmask 1042432  }
  0x15   : > { %595 = vst.msk [vmem:[#allocation2 + $0x30] sm:$0xf] %vm581_vm1, %v7086_v4  ;;  %596 = vst.msk [vmem:[#allocation2 + $0x34] sm:$0xf] %vm581_vm1, %v7086_v4  ;;  %v6384_v28 = vld [vmem:[%s7225_s13] sm:$0xff]   ;;  %v6517_v30 = vld [vmem:[%s7225_s13 + $0x38] sm:$0xff]  }
  0x16   : > { %597 = vst.msk [vmem:[#allocation2 + $0x38] sm:$0x1] %vm584_vm2, %v7086_v4  ;;  %600 = vst.msk [vmem:[#allocation2 + $0x44] sm:$0x1] %vm584_vm2, %v7086_v4  ;;  %v1174_v7 = vld [vmem:[#allocation2] sm:$0xf]  ;;  %v6385_v36 = vunpack.c.l.bf16 %v6384_v28  ;;  %v6386_v37 = vunpack.c.h.bf16 %v6384_v28  ;;  %v6413_v42 = vunpack.c.l.bf16 %v6517_v30  ;;  %v6414_v43 = vunpack.c.h.bf16 %v6517_v30 }
  0x17   : > { %598 = vst.msk [vmem:[#allocation2 + $0x3c] sm:$0xf] %vm581_vm1, %v7086_v4  ;;  %599 = vst.msk [vmem:[#allocation2 + $0x40] sm:$0xf] %vm581_vm1, %v7086_v4  ;;  %v1175_v8 = vld [vmem:[#allocation2 + $0x4] sm:$0xf] }
  0x18   : > { %601 = vst.msk [vmem:[#allocation2 + $0x48] sm:$0xf] %vm581_vm1, %v7086_v4  ;;  %602 = vst.msk [vmem:[#allocation2 + $0x4c] sm:$0xf] %vm581_vm1, %v7086_v4  ;;  %v1207_v9 = vld [vmem:[#allocation2 + $0x8] sm:$0x1] }
  0x19   : > { %603 = vst.msk [vmem:[#allocation2 + $0x50] sm:$0x1] %vm584_vm2, %v7086_v4  ;;  %606 = vst.msk [vmem:[#allocation2 + $0x5c] sm:$0x1] %vm584_vm2, %v7086_v4  ;;  %v1227_v10 = vshrl.u32 %v1174_v7, 16  ;;  %v1230_v11 = vshll.u32 %v1174_v7, 16 }
  0x1a   : > { %604 = vst.msk [vmem:[#allocation2 + $0x54] sm:$0xf] %vm581_vm1, %v7086_v4  ;;  %605 = vst.msk [vmem:[#allocation2 + $0x58] sm:$0xf] %vm581_vm1, %v7086_v4  ;;  %v1236_v12 = vshll.u32 %v1175_v8, 16  ;;  %v1240_v13 = vshrl.u32 %v1175_v8, 16 }
  0x1b   : > { %607 = vst.msk [vmem:[#allocation2 + $0x60] sm:$0xf] %vm581_vm1, %v7086_v4  ;;  %608 = vst.msk [vmem:[#allocation2 + $0x64] sm:$0xf] %vm581_vm1, %v7086_v4  ;;  %v1246_v14 = vshll.u32 %v1207_v9, 16  ;;  %v1229_v15 = vrot.slane %v1227_v10, 4 }
  0x1c   : > { %609 = vst.msk [vmem:[#allocation2 + $0x68] sm:$0x1] %vm584_vm2, %v7086_v4  ;;  %612 = vst.msk [vmem:[#allocation2 + $0x74] sm:$0x1] %vm584_vm2, %v7086_v4  ;;  %v1232_v16 = vrot.slane %v1230_v11, 5  ;;  %v1238_v17 = vrot.slane %v1236_v12, 5 }
  0x1d   : > { %610 = vst.msk [vmem:[#allocation2 + $0x6c] sm:$0xf] %vm581_vm1, %v7086_v4  ;;  %611 = vst.msk [vmem:[#allocation2 + $0x70] sm:$0xf] %vm581_vm1, %v7086_v4  ;;  %v1242_v18 = vrot.slane %v1240_v13, 4  ;;  %v1248_v21 = vrot.slane %v1246_v14, 5 }
  0x1e   : > { %613 = vst.msk [vmem:[#allocation2 + $0x78] sm:$0xf] %vm581_vm1, %v7086_v4  ;;  %614 = vst.msk [vmem:[#allocation2 + $0x7c] sm:$0xf] %vm581_vm1, %v7086_v4  ;;  %v1233_v19 = vor.u32 %v1232_v16, %v1229_v15  ;;  %v6448_v29 = vld [vmem:[%s7230_s16] sm:$0xff]   ;;  %v6532_v31 = vld [vmem:[%s7230_s16 + $0x38] sm:$0xff]  }
  0x1f   : > { %615 = vst.msk [vmem:[#allocation2 + $0x80] sm:$0x1] %vm584_vm2, %v7086_v4  ;;  %618 = vst.msk [vmem:[#allocation2 + $0x8c] sm:$0x1] %vm584_vm2, %v7086_v4  ;;  %v1243_v20 = vor.u32 %v1242_v18, %v1238_v17  ;;  %v6511_v32 = vld [vmem:[%s7225_s13 + $0x8] sm:$0xff]   ;;  %v6449_v38 = vunpack.c.l.bf16 %v6448_v29  ;;  %v6450_v39 = vunpack.c.h.bf16 %v6448_v29  ;;  %v6518_v40 = vld [vmem:[%s7225_s13 + $0x40] sm:$0xff]   ;;  %v6477_v44 = vunpack.c.l.bf16 %v6532_v31 }
  0x20   : > { %616 = vst.msk [vmem:[#allocation2 + $0x84] sm:$0xf] %vm581_vm1, %v7086_v4  ;;  %617 = vst.msk [vmem:[#allocation2 + $0x88] sm:$0xf] %vm581_vm1, %v7086_v4  ;;  %v1234_v23 = vrot.slane %v1233_v19, 4  ;;  %v6526_v33 = vld [vmem:[%s7230_s16 + $0x8] sm:$0xff]   ;;  %v6478_v45 = vunpack.c.h.bf16 %v6532_v31  ;;  %v6389_v48 = vunpack.c.l.bf16 %v6511_v32  ;;  %v6390_v49 = vunpack.c.h.bf16 %v6511_v32 }
  0x21   : > { %619 = vst.msk [vmem:[#allocation2 + $0x90] sm:$0xf] %vm581_vm1, %v7086_v4  ;;  %620 = vst.msk [vmem:[#allocation2 + $0x94] sm:$0xf] %vm581_vm1, %v7086_v4  ;;  %v1244_v24 = vrot.slane %v1243_v20, 4  ;;  %v6533_v41 = vld [vmem:[%s7230_s16 + $0x40] sm:$0xff]   ;;  %v6453_v50 = vunpack.c.l.bf16 %v6526_v33  ;;  %v6454_v51 = vunpack.c.h.bf16 %v6526_v33  ;;  %v6417_v54 = vunpack.c.l.bf16 %v6518_v40 }
  0x22   : > { %621 = vst.msk [vmem:[#allocation2 + $0x98] sm:$0x1] %vm584_vm2, %v7086_v4  ;;  %624 = vst.msk [vmem:[#allocation2 + $0xa4] sm:$0x1] %vm584_vm2, %v7086_v4  ;;  %v6519_v46 = vld [vmem:[%s7225_s13 + $0x48] sm:$0xff]   ;;  %v6512_v52 = vld [vmem:[%s7225_s13 + $0x10] sm:$0xff]   ;;  %v6418_v55 = vunpack.c.h.bf16 %v6518_v40  ;;  %v6481_v56 = vunpack.c.l.bf16 %v6533_v41  ;;  %v6482_v57 = vunpack.c.h.bf16 %v6533_v41  ;;  %v7254_v14 = vadd.f32 %v6449_v38, %v6385_v36 }
  0x23   : > { %622 = vst.msk [vmem:[#allocation2 + $0x9c] sm:$0xf] %vm581_vm1, %v7086_v4  ;;  %623 = vst.msk [vmem:[#allocation2 + $0xa0] sm:$0xf] %vm581_vm1, %v7086_v4  ;;  %v6534_v47 = vld [vmem:[%s7230_s16 + $0x48] sm:$0xff]   ;;  %v6527_v53 = vld [vmem:[%s7230_s16 + $0x10] sm:$0xff]   ;;  %v6421_v60 = vunpack.c.l.bf16 %v6519_v46  ;;  %v6422_v61 = vunpack.c.h.bf16 %v6519_v46  ;;  %v6393_v2 = vunpack.c.l.bf16 %v6512_v52  ;;  %v6394_v3 = vunpack.c.h.bf16 %v6512_v52 }
  0x24   : > { %625 = vst.msk [vmem:[#allocation2 + $0xa8] sm:$0xf] %vm581_vm1, %v7086_v4  ;;  %626 = vst.msk [vmem:[#allocation2 + $0xac] sm:$0xf] %vm581_vm1, %v7086_v4  ;;  %v6513_v58 = vld [vmem:[%s7225_s13 + $0x18] sm:$0xff]   ;;  %v6485_v62 = vunpack.c.l.bf16 %v6534_v47  ;;  %v6486_v63 = vunpack.c.h.bf16 %v6534_v47  ;;  %v6520_v0 = vld [vmem:[%s7225_s13 + $0x50] sm:$0xff]   ;;  %v6458_v5 = vunpack.c.h.bf16 %v6527_v53  ;;  %v7256_v15 = vadd.f32 %v6450_v39, %v6386_v37 }
  0x25   : > { %627 = vst.msk [vmem:[#allocation2 + $0xb0] sm:$0x1] %vm584_vm2, %v7086_v4  ;;  %630 = vst.msk [vmem:[#allocation2 + $0xbc] sm:$0x1] %vm584_vm2, %v7086_v4  ;;  %v6528_v59 = vld [vmem:[%s7230_s16 + $0x18] sm:$0xff]   ;;  %v6535_v1 = vld [vmem:[%s7230_s16 + $0x50] sm:$0xff]   ;;  %v6397_v6 = vunpack.c.l.bf16 %v6513_v58  ;;  %v6398_v7 = vunpack.c.h.bf16 %v6513_v58  ;;  %v6425_v10 = vunpack.c.l.bf16 %v6520_v0  ;;  %v6426_v11 = vunpack.c.h.bf16 %v6520_v0 }
  0x26   : > { %628 = vst.msk [vmem:[#allocation2 + $0xb4] sm:$0xf] %vm581_vm1, %v7086_v4  ;;  %629 = vst.msk [vmem:[#allocation2 + $0xb8] sm:$0xf] %vm581_vm1, %v7086_v4  ;;  %v6461_v8 = vunpack.c.l.bf16 %v6528_v59  ;;  %v6462_v9 = vunpack.c.h.bf16 %v6528_v59  ;;  %v6489_v12 = vunpack.c.l.bf16 %v6535_v1  ;;  %v6490_v13 = vunpack.c.h.bf16 %v6535_v1  ;;  %v6514_v29 = vld [vmem:[%s7225_s13 + $0x20] sm:$0xff]   ;;  %v6515_v37 = vld [vmem:[%s7225_s13 + $0x28] sm:$0xff]  }
  0x27   : > { %631 = vst.msk [vmem:[#allocation2 + $0xc0] sm:$0xf] %vm581_vm1, %v7086_v4  ;;  %632 = vst.msk [vmem:[#allocation2 + $0xc4] sm:$0xf] %vm581_vm1, %v7086_v4  ;;  %v7258_v16 = vadd.f32 %v6477_v44, %v6413_v42  ;;  %v7262_v18 = vadd.f32 %v6453_v50, %v6389_v48  ;;  %v7264_v19 = vadd.f32 %v6454_v51, %v6390_v49  ;;  %v6529_v30 = vld [vmem:[%s7230_s16 + $0x20] sm:$0xff]   ;;  %v6530_v38 = vld [vmem:[%s7230_s16 + $0x28] sm:$0xff]   ;;  %v6402_v46 = vunpack.c.h.bf16 %v6514_v29 }
  0x28   : > { %633 = vst.msk [vmem:[#allocation2 + $0xc8] sm:$0x1] %vm584_vm2, %v7086_v4  ;;  %636 = vst.msk [vmem:[#allocation2 + $0xd4] sm:$0x1] %vm584_vm2, %v7086_v4  ;;  %v7266_v20 = vadd.f32 %v6481_v56, %v6417_v54  ;;  %v7278_v28 = vadd.f32 %v6458_v5, %v6394_v3  ;;  %v7282_v31 = vadd.f32 %v6461_v8, %v6397_v6  ;;  %v6537_v44 = vld [vmem:[%s7230_s16 + $0x60] sm:$0xff]   ;;  %v6465_v47 = vunpack.c.l.bf16 %v6529_v30  ;;  %v6523_v49 = vld [vmem:[%s7225_s13 + $0x68] sm:$0xff]  }
  0x29   : > { %634 = vst.msk [vmem:[#allocation2 + $0xcc] sm:$0xf] %vm581_vm1, %v7086_v4  ;;  %635 = vst.msk [vmem:[#allocation2 + $0xd0] sm:$0xf] %vm581_vm1, %v7086_v4  ;;  %v6457_v4 = vunpack.c.l.bf16 %v6527_v53  ;;  %v7284_v32 = vadd.f32 %v6462_v9, %v6398_v7  ;;  %v7286_v33 = vadd.f32 %v6489_v12, %v6425_v10  ;;  %v7288_v36 = vadd.f32 %v6490_v13, %v6426_v11  ;;  %v6538_v50 = vld [vmem:[%s7230_s16 + $0x68] sm:$0xff]   ;;  %s6349_s17 = sshll.u32 %s10359_s27, 8 }
  0x2a   : > { %vm7208_vm5 = vmor %vm1223_vm3, %vm1224_vm4  ;;  %v6466_v48 = vunpack.c.h.bf16 %v6529_v30  ;;  %v6405_v51 = vunpack.c.l.bf16 %v6515_v37  ;;  %v6406_v52 = vunpack.c.h.bf16 %v6515_v37  ;;  %v6469_v53 = vunpack.c.l.bf16 %v6530_v38  ;;  %v6531_v56 = vld [vmem:[%s7230_s16 + $0x30] sm:$0xff]   ;;  %s7304_s20 = scalar_lea.vmem %s10077_s3, %s6349_s17  ;;  %s9866_s23 = scalar_lea.vmem %s10081_s7, %s6349_s17 }
  0x2b   : > { %v1239_v25 = vsel %vm7208_vm5, %v1234_v23, %v1238_v17  ;;  %v1249_v26 = vsel %vm7208_vm5, %v1244_v24, %v1248_v21  ;;  %v7260_v17 = vadd.f32 %v6478_v45, %v6414_v43  ;;  %v7268_v21 = vadd.f32 %v6482_v57, %v6418_v55  ;;  %v6521_v23 = vld [vmem:[%s7225_s13 + $0x58] sm:$0xff]   ;;  %v6522_v43 = vld [vmem:[%s7225_s13 + $0x60] sm:$0xff]   ;;  %v6516_v55 = vld [vmem:[%s7225_s13 + $0x30] sm:$0xff]  }
  0x2c   : > { %v6000_v27 = vcombine.low %v1239_v25, %v1249_v26  ;;  %v6536_v24 = vld [vmem:[%s7230_s16 + $0x58] sm:$0xff]   ;;  %v7272_v25 = vadd.f32 %v6485_v62, %v6421_v60  ;;  %v7274_v26 = vadd.f32 %v6486_v63, %v6422_v61  ;;  %v6429_v39 = vunpack.c.l.bf16 %v6521_v23  ;;  %v7307_v5 = vld [vmem:[%s7225_s13 + $0x70] sm:$0xff]  }
  0x2d   : > { %v6430_v40 = vunpack.c.h.bf16 %v6521_v23  ;;  %v6493_v41 = vunpack.c.l.bf16 %v6536_v24  ;;  %v6494_v42 = vunpack.c.h.bf16 %v6536_v24  ;;  %v6401_v45 = vunpack.c.l.bf16 %v6514_v29  ;;  %v7318_v10 = vld [vmem:[%s7230_s16 + $0x70] sm:$0xff]   ;;  %v517_v24 = vld [vmem:[%s7304_s20] sm:$0xff]  ;;  %v518_v29 = vld [vmem:[%s7304_s20 + $0x8] sm:$0xff] }
  0x2e   : > { %6696 = vmatprep.mubr.msk.bf16.mxu0 %vm1660_vm6, %v6000_v27  ;;  %v7276_v27 = vadd.f32 %v6457_v4, %v6393_v2  ;;  %v6470_v54 = vunpack.c.h.bf16 %v6530_v38  ;;  %v6433_v57 = vunpack.c.l.bf16 %v6522_v43  ;;  %v6434_v58 = vunpack.c.h.bf16 %v6522_v43  ;;  %v519_v43 = vld [vmem:[%s7304_s20 + $0x10] sm:$0xff] }
  0x2f   : > { %v6497_v59 = vunpack.c.l.bf16 %v6537_v44  ;;  %v6498_v60 = vunpack.c.h.bf16 %v6537_v44  ;;  %v6437_v61 = vunpack.c.l.bf16 %v6523_v49  ;;  %v6438_v62 = vunpack.c.h.bf16 %v6523_v49 }
  0x30   : > { %v6501_v63 = vunpack.c.l.bf16 %v6538_v50  ;;  %v6502_v0 = vunpack.c.h.bf16 %v6538_v50  ;;  %v6409_v1 = vunpack.c.l.bf16 %v6516_v55  ;;  %v6410_v2 = vunpack.c.h.bf16 %v6516_v55 }
  0x31   : > { %v6473_v3 = vunpack.c.l.bf16 %v6531_v56  ;;  %v6474_v4 = vunpack.c.h.bf16 %v6531_v56  ;;  %vm733_vm7 = vsmask.f32 256  ;;  %vm734_vm8 = vsmask.f32 4368 }
  0x32   : > { %v7309_v6 = vadd.f32 %v6493_v41, %v6429_v39  ;;  %v7311_v7 = vadd.f32 %v6494_v42, %v6430_v40  ;;  %v7313_v8 = vadd.f32 %v6465_v47, %v6401_v45  ;;  %v7315_v9 = vadd.f32 %v6466_v48, %v6402_v46  ;;  %v531_v41 = vld [vmem:[%s7304_s20 + $0x70] sm:$0xff]  ;;  %v532_v42 = vld [vmem:[%s7304_s20 + $0x78] sm:$0xff]  ;;  %vm7371_vm10 = vmor %vm733_vm7, %vm734_vm8 }
  0x33   : > { %vm1058_vm9 = vsmask.f32 7938  ;;  %v7320_v11 = vadd.f32 %v6469_v53, %v6405_v51  ;;  %v7322_v12 = vadd.f32 %v6470_v54, %v6406_v52  ;;  %v7324_v13 = vadd.f32 %v6497_v59, %v6433_v57  ;;  %v520_v51 = vld [vmem:[%s7304_s20 + $0x18] sm:$0xff]  ;;  %v533_v52 = vld [vmem:[%s7304_s20 + $0x80] sm:$0xff]  ;;  %v534_v53 = vld [vmem:[%s7304_s20 + $0x88] sm:$0xff] }
  0x34   : > { %v7326_v23 = vadd.f32 %v6498_v60, %v6434_v58  ;;  %v7330_v30 = vadd.f32 %v6501_v63, %v6437_v61  ;;  %v7332_v37 = vadd.f32 %v6502_v0, %v6438_v62  ;;  %v6441_v38 = vunpack.c.l.bf16 %v7307_v5  ;;  %vm7377_vm11 = vmand %vm581_vm1, %vm1058_vm9 }
  0x35   : > { %v6442_v39 = vunpack.c.h.bf16 %v7307_v5  ;;  %v7341_v44 = vadd.f32 %v6473_v3, %v6409_v1  ;;  %v7343_v45 = vadd.f32 %v6474_v4, %v6410_v2  ;;  %v6505_v46 = vunpack.c.l.bf16 %v7318_v10  ;;  %vm7383_vm12 = vmand %vm584_vm2, %vm733_vm7 }
  0x36   : > { %vm2215_vm14 = vcmask 1046532  }
  0x37   : > { %vm7792_vm15 = vmor %vm2214_vm13, %vm2215_vm14 }
  0x3f   : > { %s7013_s21 = spop %7012 }
  0x40   : > { %v7336_v40 = vstv %s7013_s21 }
  0x41   : > { %10106 = vst [vmem:[#allocation4_spill] sm:$0xff] %v7336_v40  ;;  %v485_v47 = vmul.f32 %v7336_v40, %v7254_v14  ;;  %v486_v48 = vmul.f32 %v7336_v40, %v7256_v15  ;;  %v499_v49 = vmul.f32 %v7336_v40, %v7258_v16  ;;  %v500_v50 = vmul.f32 %v7336_v40, %v7260_v17 }
  0x42   : > { %v487_v54 = vmul.f32 %v7336_v40, %v7262_v18  ;;  %v488_v55 = vmul.f32 %v7336_v40, %v7264_v19  ;;  %v501_v14 = vmul.f32 %v7336_v40, %v7266_v20  ;;  %v502_v15 = vmul.f32 %v7336_v40, %v7268_v21 }
  0x43   : > { %v549_v56 = vadd.f32 %v517_v24, %v485_v47  ;;  %v550_v16 = vadd.f32 %v518_v29, %v486_v48  ;;  %v563_v57 = vadd.f32 %v531_v41, %v499_v49  ;;  %v564_v58 = vadd.f32 %v532_v42, %v500_v50 }
  0x44   : > { %v551_v17 = vadd.f32 %v519_v43, %v487_v54  ;;  %v552_v59 = vadd.f32 %v520_v51, %v488_v55  ;;  %v565_v60 = vadd.f32 %v533_v52, %v501_v14  ;;  %v566_v61 = vadd.f32 %v534_v53, %v502_v15  ;;  %v1060_v51 = vld [vmem:[#allocation2 + $0xc] sm:$0xf]  ;;  %v1066_v55 = vld [vmem:[#allocation2 + $0x14] sm:$0x1] }
  0x45   : > { %v6351_v62 = vpack.c.bf16 %v549_v56, %v549_v56  ;;  %v6352_v63 = vpack.c.bf16 %v550_v16, %v550_v16  ;;  %v6365_v18 = vpack.c.bf16 %v563_v57, %v563_v57  ;;  %v6366_v0 = vpack.c.bf16 %v564_v58, %v564_v58 }
  0x46   : > { %v6353_v1 = vpack.c.bf16 %v551_v17, %v551_v17  ;;  %v6354_v19 = vpack.c.bf16 %v552_v59, %v552_v59  ;;  %v7365_v2 = vpack.c.bf16 %v565_v60, %v565_v60  ;;  %v7367_v20 = vpack.c.bf16 %v566_v61, %v566_v61  ;;  %v1111_v60 = vld [vmem:[#allocation2 + $0x60] sm:$0xf]  ;;  %v1115_v61 = vld [vmem:[#allocation2 + $0x68] sm:$0x1] }
  0x47   : > { %v737_v3 = vshrl.u32 %v6351_v62, 16  ;;  %v740_v21 = vshll.u32 %v6351_v62, 16  ;;  %v745_v4 = vshrl.u32 %v6352_v63, 16  ;;  %v748_v24 = vshll.u32 %v6352_v63, 16 }
  0x48   : > { %v10107_v29 = vmov 0  ;;  %v856_v41 = vshrl.u32 %v6365_v18, 16  ;;  %v859_v42 = vshll.u32 %v6365_v18, 16  ;;  %v864_v43 = vshrl.u32 %v6366_v0, 16 }
  0x49   : > { %v10108_v29 = vsel %vm7371_vm10, 4294967295, %v10107_v29  ;;  %v867_v47 = vshll.u32 %v6366_v0, 16  ;;  %v739_v48 = vrot.slane %v737_v3, 7  ;;  %v747_v49 = vrot.slane %v745_v4, 7 }
  0x4a   : > { %10109 = vst [vmem:[#allocation5_spill] sm:$0xff] %v10108_v29  ;;  %v10110_v50 = vmov 0  ;;  %v754_v52 = vshrl.u32 %v6353_v1, 16  ;;  %v757_v53 = vshll.u32 %v6353_v1, 16  ;;  %v10113_v54 = vmov 0 }
  0x4b   : > { %v10111_v50 = vsel %vm7377_vm11, 4294967295, %v10110_v50  ;;  %v10114_v54 = vsel %vm7383_vm12, 4294967295, %v10113_v54  ;;  %v858_v14 = vrot.slane %v856_v41, 7  ;;  %v866_v15 = vrot.slane %v864_v43, 7  ;;  %v1069_v43 = vld [vmem:[#allocation2 + $0x18] sm:$0xf] }
  0x4c   : > { %10112 = vst [vmem:[#allocation6_spill] sm:$0xff] %v10111_v50  ;;  %10115 = vst [vmem:[#allocation7_spill] sm:$0xff] %v10114_v54  ;;  %v762_v56 = vshrl.u32 %v6354_v19, 16  ;;  %v765_v16 = vshll.u32 %v6354_v19, 16  ;;  %v742_v57 = vor.u32 %v740_v21, %v739_v48  ;;  %v743_v58 = vrot.slane %v739_v48, 4 }
  0x4d   : > { %v750_v17 = vor.u32 %v748_v24, %v747_v49  ;;  %v752_v59 = vrot.slane %v747_v49, 4  ;;  %v861_v62 = vor.u32 %v859_v42, %v858_v14  ;;  %v862_v63 = vrot.slane %v858_v14, 4  ;;  %v1073_v49 = vld [vmem:[#allocation2 + $0x20] sm:$0x1] }
  0x4e   : > { %v869_v18 = vor.u32 %v867_v47, %v866_v15  ;;  %v871_v0 = vrot.slane %v866_v15, 4  ;;  %v1061_v3 = vsel %vm7377_vm11, %v742_v57, %v1060_v51  ;;  %v756_v19 = vrot.slane %v754_v52, 7 }
  0x4f   : > { %v751_v1 = vsel %vm7371_vm10, %v743_v58, %v750_v17  ;;  %v1067_v4 = vsel %vm7383_vm12, %v752_v59, %v1066_v55  ;;  %1062 = vst [vmem:[#allocation2 + $0xc] sm:$0xf] %v1061_v3  ;;  %v1112_v24 = vsel %vm7377_vm11, %v861_v62, %v1111_v60  ;;  %v764_v42 = vrot.slane %v762_v56, 7  ;;  %v535_v56 = vld [vmem:[%s7304_s20 + $0x90] sm:$0xff]  ;;  %v536_v58 = vld [vmem:[%s7304_s20 + $0x98] sm:$0xff] }
  0x50   : > { %1063 = vst.msk [vmem:[#allocation2 + $0x10] sm:$0xf] %vm581_vm1, %v751_v1  ;;  %1068 = vst [vmem:[#allocation2 + $0x14] sm:$0x1] %v1067_v4  ;;  %v870_v21 = vsel %vm7371_vm10, %v862_v63, %v869_v18  ;;  %v1116_v41 = vsel %vm7383_vm12, %v871_v0, %v1115_v61  ;;  %v759_v47 = vor.u32 %v757_v53, %v756_v19  ;;  %v760_v48 = vrot.slane %v756_v19, 4  ;;  %v521_v18 = vld [vmem:[%s7304_s20 + $0x20] sm:$0xff] }
  0x51   : > { %1113 = vst [vmem:[#allocation2 + $0x60] sm:$0xf] %v1112_v24  ;;  %1114 = vst.msk [vmem:[#allocation2 + $0x64] sm:$0xf] %vm581_vm1, %v870_v21  ;;  %v873_v51 = vshrl.u32 %v7365_v2, 16  ;;  %v6506_v52 = vunpack.c.h.bf16 %v7318_v10  ;;  %v767_v55 = vor.u32 %v765_v16, %v764_v42  ;;  %v769_v14 = vrot.slane %v764_v42, 4 }
  0x52   : > { %1117 = vst [vmem:[#allocation2 + $0x68] sm:$0x1] %v1116_v41  ;;  %v876_v15 = vshll.u32 %v7365_v2, 16  ;;  %v881_v57 = vshrl.u32 %v7367_v20, 16  ;;  %v1070_v17 = vsel %vm7377_vm11, %v759_v47, %v1069_v43  ;;  %v503_v53 = vmul.f32 %v7336_v40, %v7272_v25  ;;  %v1118_v62 = vld [vmem:[#allocation2 + $0x6c] sm:$0xf] }
  0x53   : > { %v7409_v59 = vrot.slane %v873_v51, 7  ;;  %v504_v60 = vmul.f32 %v7336_v40, %v7274_v26  ;;  %v768_v16 = vsel %vm7371_vm10, %v760_v48, %v767_v55  ;;  %1071 = vst [vmem:[#allocation2 + $0x18] sm:$0xf] %v1070_v17  ;;  %v1074_v2 = vsel %vm7383_vm12, %v769_v14, %v1073_v49 }
  0x54   : > { %v7419_v61 = vrot.slane %v881_v57, 7  ;;  %v489_v63 = vmul.f32 %v7336_v40, %v7276_v27  ;;  %1072 = vst.msk [vmem:[#allocation2 + $0x1c] sm:$0xf] %vm581_vm1, %v768_v16  ;;  %1075 = vst [vmem:[#allocation2 + $0x20] sm:$0x1] %v1074_v2  ;;  %v884_v26 = vshll.u32 %v7367_v20, 16  ;;  %v567_v0 = vadd.f32 %v535_v56, %v503_v53 }
  0x55   : > { %v878_v25 = vor.u32 %v876_v15, %v7409_v59  ;;  %v568_v1 = vadd.f32 %v536_v58, %v504_v60  ;;  %v879_v3 = vrot.slane %v7409_v59, 4  ;;  %v7433_v19 = vadd.f32 %v6505_v46, %v6441_v38 }
  0x56   : > { %v888_v4 = vrot.slane %v7419_v61, 4  ;;  %v7437_v27 = vadd.f32 %v6506_v52, %v6442_v39  ;;  %v1176_v21 = vld [vmem:[#allocation2 + $0xc] sm:$0xf]  ;;  %v886_v20 = vor.u32 %v884_v26, %v7419_v61  ;;  %v7444_v43 = vmul.f32 %v7336_v40, %v7278_v28 }
  0x57   : > { %v1177_v24 = vld [vmem:[#allocation2 + $0x10] sm:$0xf]  ;;  %v1208_v41 = vld [vmem:[#allocation2 + $0x14] sm:$0x1]  ;;  %v1119_v42 = vsel %vm7377_vm11, %v878_v25, %v1118_v62  ;;  %v7446_v47 = vadd.f32 %v521_v18, %v489_v63  ;;  %v1251_v10 = vshrl.u32 %v1176_v21, 16  ;;  %v1254_v38 = vshll.u32 %v1176_v21, 16 }
  0x58   : > { %v1260_v46 = vshll.u32 %v1177_v24, 16  ;;  %v1264_v5 = vshrl.u32 %v1177_v24, 16  ;;  %v1190_v39 = vld [vmem:[#allocation2 + $0x60] sm:$0xf]  ;;  %1120 = vst [vmem:[#allocation2 + $0x6c] sm:$0xf] %v1119_v42  ;;  %v7448_v52 = vpack.c.bf16 %v567_v0, %v567_v0  ;;  %v7450_v55 = vpack.c.bf16 %v568_v1, %v568_v1 }
  0x59   : > { %v1270_v48 = vshll.u32 %v1208_v41, 16  ;;  %v1191_v49 = vld [vmem:[#allocation2 + $0x64] sm:$0xf]  ;;  %v1419_v51 = vshrl.u32 %v1190_v39, 16  ;;  %v1253_v14 = vrot.slane %v1251_v10, 4  ;;  %v1256_v15 = vrot.slane %v1254_v38, 5 }
  0x5a   : > { %v1262_v57 = vrot.slane %v1260_v46, 5  ;;  %v1266_v28 = vrot.slane %v1264_v5, 4  ;;  %v1215_v56 = vld [vmem:[#allocation2 + $0x68] sm:$0x1]  ;;  %v1422_v17 = vshll.u32 %v1190_v39, 16  ;;  %v1428_v53 = vshll.u32 %v1191_v49, 16 }
  0x5b   : > { %v1421_v58 = vrot.slane %v1419_v51, 4  ;;  %v1178_v60 = vld [vmem:[#allocation2 + $0x18] sm:$0xf]  ;;  %v7454_v16 = vmul.f32 %v7336_v40, %v7282_v31  ;;  %v1257_v2 = vor.u32 %v1256_v15, %v1253_v14  ;;  %v1432_v63 = vshrl.u32 %v1191_v49, 16  ;;  %v1179_v25 = vld [vmem:[#allocation2 + $0x1c] sm:$0xf] }
  0x5c   : > { %v1267_v62 = vor.u32 %v1266_v28, %v1262_v57  ;;  %v1438_v18 = vshll.u32 %v1215_v56, 16  ;;  %v1272_v26 = vrot.slane %v1270_v48, 5  ;;  %v1424_v0 = vrot.slane %v1422_v17, 5  ;;  %v1209_v46 = vld [vmem:[#allocation2 + $0x20] sm:$0x1] }
  0x5d   : > { %v1430_v1 = vrot.slane %v1428_v53, 5  ;;  %v1275_v21 = vshrl.u32 %v1178_v60, 16  ;;  %v1258_v24 = vrot.slane %v1257_v2, 4  ;;  %v1434_v42 = vrot.slane %v1432_v63, 4  ;;  %v1122_v15 = vld [vmem:[#allocation2 + $0x74] sm:$0x1] }
  0x5e   : > { %v1268_v41 = vrot.slane %v1267_v62, 4  ;;  %v1440_v10 = vrot.slane %v1438_v18, 5  ;;  %v1425_v38 = vor.u32 %v1424_v0, %v1421_v58  ;;  %v1278_v39 = vshll.u32 %v1178_v60, 16  ;;  %v6146_v60 = vld [vmem:[%s10078_s4 + $0x8] sm:$0x3] }
  0x5f   : > { %v1277_v5 = vrot.slane %v1275_v21, 4  ;;  %v1284_v51 = vshll.u32 %v1179_v25, 16  ;;  %v1263_v31 = vsel %vm7208_vm5, %v1258_v24, %v1262_v57  ;;  %v1435_v14 = vor.u32 %v1434_v42, %v1430_v1  ;;  %v1192_v28 = vld [vmem:[#allocation2 + $0x6c] sm:$0xf] }
  0x60   : > { %v1273_v49 = vsel %vm7208_vm5, %v1268_v41, %v1272_v26  ;;  %v1288_v48 = vshrl.u32 %v1179_v25, 16  ;;  %v1426_v17 = vrot.slane %v1425_v38, 4  ;;  %v1280_v53 = vrot.slane %v1278_v39, 5  ;;  %v522_v0 = vld [vmem:[%s7304_s20 + $0x28] sm:$0xff] }
  0x61   : > { %v6001_v56 = vcombine.low %v1263_v31, %v1273_v49  ;;  %v1286_v2 = vrot.slane %v1284_v51, 5  ;;  %v1436_v58 = vrot.slane %v1435_v14, 4  ;;  %v1294_v63 = vshll.u32 %v1209_v46, 16  ;;  %v1125_v51 = vld [vmem:[#allocation2 + $0x78] sm:$0xf] }
  0x62   : > { %v1290_v62 = vrot.slane %v1288_v48, 4  ;;  %v887_v57 = vsel %vm7371_vm10, %v879_v3, %v886_v20  ;;  %v1431_v18 = vsel %vm7208_vm5, %v1426_v17, %v1430_v1  ;;  %v1281_v25 = vor.u32 %v1280_v53, %v1277_v5 }
  0x63   : > { %6697 = vmatmul.mubr.msk.bf16.vlgmr.msra.gmra.mxu0 %vm1660_vm6, %v6001_v56  ;;  %1121 = vst.msk [vmem:[#allocation2 + $0x70] sm:$0xf] %vm581_vm1, %v887_v57  ;;  %v1123_v59 = vsel %vm7383_vm12, %v888_v4, %v1122_v15  ;;  %v1443_v26 = vshrl.u32 %v1192_v28, 16  ;;  %v1441_v3 = vsel %vm7208_vm5, %v1436_v58, %v1440_v10  ;;  %v1296_v21 = vrot.slane %v1294_v63, 5  ;;  %v1129_v15 = vld [vmem:[#allocation2 + $0x80] sm:$0x1] }
  0x64   : > { %v1291_v20 = vor.u32 %v1290_v62, %v1286_v2  ;;  %1124 = vst [vmem:[#allocation2 + $0x74] sm:$0x1] %v1123_v59  ;;  %v1446_v24 = vshll.u32 %v1192_v28, 16  ;;  %6763 = vmatpush3.bf16.msra.mxu0 %v7242_v35  ;;  %v6008_v1 = vcombine.low %v1431_v18, %v1441_v3  ;;  %v1282_v41 = vrot.slane %v1281_v25, 4  ;;  %v1076_v3 = vld [vmem:[#allocation2 + $0x24] sm:$0xf] }
  0x65   : > { %v1445_v42 = vrot.slane %v1443_v26, 4  ;;  %v890_v38 = vshrl.u32 %v7448_v52, 16  ;;  %7007 = vmatprep.subr.msk.bf16.mxu0 %vm1709_vm0, %v6146_v60  ;;  %v893_v46 = vshll.u32 %v7448_v52, 16  ;;  %v898_v5 = vshrl.u32 %v7450_v55, 16 }
  0x66   : > { %v1292_v61 = vrot.slane %v1291_v20, 4  ;;  %v1448_v4 = vrot.slane %v1446_v24, 5  ;;  %6712 = vmatprep.mubr.msk.bf16.mxu1 %vm1660_vm6, %v6008_v1  ;;  %v1287_v10 = vsel %vm7208_vm5, %v1282_v41, %v1286_v2  ;;  %v901_v35 = vshll.u32 %v7450_v55, 16  ;;  %v523_v20 = vld [vmem:[%s7304_s20 + $0x30] sm:$0xff] }
  0x67   : > { %v892_v39 = vrot.slane %v890_v38, 7  ;;  %v554_v31 = vadd.f32 %v522_v0, %v7444_v43  ;;  %v900_v48 = vrot.slane %v898_v5, 7  ;;  %v6355_v52 = vpack.c.bf16 %v7446_v47, %v7446_v47 }
  0x68   : > { %v1297_v49 = vsel %vm7208_vm5, %v1292_v61, %v1296_v21  ;;  %v1449_v14 = vor.u32 %v1448_v4, %v1445_v42  ;;  %v524_v42 = vld [vmem:[%s7304_s20 + $0x38] sm:$0xff]  ;;  %v492_v5 = vmul.f32 %v7336_v40, %v7284_v32 }
  0x69   : > { %v6002_v28 = vcombine.low %v1287_v10, %v1297_v49  ;;  %v895_v56 = vor.u32 %v893_v46, %v892_v39  ;;  %v896_v17 = vrot.slane %v892_v39, 4  ;;  %v6356_v53 = vpack.c.bf16 %v554_v31, %v554_v31  ;;  %v1080_v46 = vld [vmem:[#allocation2 + $0x2c] sm:$0x1]  ;;  %v537_v10 = vld [vmem:[%s7304_s20 + $0xa0] sm:$0xff] }
  0x6a   : > { %v1193_v2 = vld [vmem:[#allocation2 + $0x70] sm:$0xf]  ;;  %v1450_v58 = vrot.slane %v1449_v14, 4  ;;  %v903_v55 = vor.u32 %v901_v35, %v900_v48  ;;  %v905_v62 = vrot.slane %v900_v48, 4  ;;  %v771_v63 = vshrl.u32 %v6355_v52, 16  ;;  %v538_v49 = vld [vmem:[%s7304_s20 + $0xa8] sm:$0xff] }
  0x6b   : > { %6700 = vmatprep.mubr.msk.bf16.mxu0 %vm1660_vm6, %v6002_v28  ;;  %v1216_v43 = vld [vmem:[#allocation2 + $0x74] sm:$0x1]  ;;  %v1452_v57 = vshll.u32 %v1193_v2, 16  ;;  %v1456_v60 = vshrl.u32 %v1193_v2, 16  ;;  %v1126_v18 = vsel %vm7377_vm11, %v895_v56, %v1125_v51  ;;  %v774_v47 = vshll.u32 %v6355_v52, 16 }
  0x6c   : > { %v1462_v25 = vshll.u32 %v1216_v43, 16  ;;  %v904_v59 = vsel %vm7371_vm10, %v896_v17, %v903_v55  ;;  %1127 = vst [vmem:[#allocation2 + $0x78] sm:$0xf] %v1126_v18  ;;  %v1130_v26 = vsel %vm7383_vm12, %v905_v62, %v1129_v15  ;;  %v773_v0 = vrot.slane %v771_v63, 7  ;;  %v6113_v43 = vld [vmem:[%s10078_s4 + $0x6] sm:$0x3] }
  0x6d   : > { %v1454_v21 = vrot.slane %v1452_v57, 5  ;;  %v1458_v24 = vrot.slane %v1456_v60, 4  ;;  %1128 = vst.msk [vmem:[#allocation2 + $0x7c] sm:$0xf] %vm581_vm1, %v904_v59  ;;  %1131 = vst [vmem:[#allocation2 + $0x80] sm:$0x1] %v1130_v26  ;;  %v555_v31 = vadd.f32 %v523_v20, %v7454_v16  ;;  %v556_v48 = vadd.f32 %v524_v42, %v492_v5 }
  0x6e   : > { %v779_v1 = vshrl.u32 %v6356_v53, 16  ;;  %v782_v41 = vshll.u32 %v6356_v53, 16  ;;  %v1464_v38 = vrot.slane %v1462_v25, 5  ;;  %v776_v61 = vor.u32 %v774_v47, %v773_v0  ;;  %v1083_v20 = vld [vmem:[#allocation2 + $0x30] sm:$0xf] }
  0x6f   : > { %v777_v4 = vrot.slane %v773_v0, 4  ;;  %v1455_v39 = vsel %vm7208_vm5, %v1450_v58, %v1454_v21  ;;  %v1459_v35 = vor.u32 %v1458_v24, %v1454_v21  ;;  %v505_v15 = vmul.f32 %v7336_v40, %v7286_v33 }
  0x70   : > { %v781_v51 = vrot.slane %v779_v1, 7  ;;  %v1077_v14 = vsel %vm7377_vm11, %v776_v61, %v1076_v3  ;;  %v506_v52 = vmul.f32 %v7336_v40, %v7288_v36  ;;  %v6357_v17 = vpack.c.bf16 %v555_v31, %v555_v31 }
  0x71   : > { %v1460_v32 = vrot.slane %v1459_v35, 4  ;;  %1078 = vst [vmem:[#allocation2 + $0x24] sm:$0xf] %v1077_v14  ;;  %v6358_v53 = vpack.c.bf16 %v556_v48, %v556_v48  ;;  %v569_v2 = vadd.f32 %v537_v10, %v505_v15  ;;  %v507_v16 = vmul.f32 %v7336_v40, %v7309_v6  ;;  %v1087_v48 = vld [vmem:[#allocation2 + $0x38] sm:$0x1] }
  0x72   : > { %v784_v28 = vor.u32 %v782_v41, %v781_v51  ;;  %v786_v56 = vrot.slane %v781_v51, 4  ;;  %v570_v58 = vadd.f32 %v538_v49, %v506_v52  ;;  %v788_v63 = vshrl.u32 %v6357_v17, 16  ;;  %v539_v51 = vld [vmem:[%s7304_s20 + $0xb0] sm:$0xff] }
  0x73   : > { %v1465_v55 = vsel %vm7208_vm5, %v1460_v32, %v1464_v38  ;;  %v1194_v62 = vld [vmem:[#allocation2 + $0x78] sm:$0xf]  ;;  %v7527_v25 = vpack.c.bf16 %v569_v2, %v569_v2  ;;  %v791_v1 = vshll.u32 %v6357_v17, 16  ;;  %v796_v41 = vshrl.u32 %v6358_v53, 16 }
  0x74   : > { %v785_v33 = vsel %vm7371_vm10, %v777_v4, %v784_v28  ;;  %v1081_v36 = vsel %vm7383_vm12, %v786_v56, %v1080_v46  ;;  %v6009_v57 = vcombine.low %v1455_v39, %v1465_v55  ;;  %v1195_v60 = vld [vmem:[#allocation2 + $0x7c] sm:$0xf]  ;;  %v1217_v18 = vld [vmem:[#allocation2 + $0x80] sm:$0x1]  ;;  %v1467_v47 = vshrl.u32 %v1194_v62, 16 }
  0x75   : > { %v1470_v6 = vshll.u32 %v1194_v62, 16  ;;  %1079 = vst.msk [vmem:[#allocation2 + $0x28] sm:$0xf] %vm581_vm1, %v785_v33  ;;  %1082 = vst [vmem:[#allocation2 + $0x2c] sm:$0x1] %v1081_v36  ;;  %v1476_v59 = vshll.u32 %v1195_v60, 16  ;;  %v6372_v15 = vpack.c.bf16 %v570_v58, %v570_v58  ;;  %v508_v55 = vmul.f32 %v7336_v40, %v7311_v7 }
  0x76   : > { %v1480_v26 = vshrl.u32 %v1195_v60, 16  ;;  %v1486_v0 = vshll.u32 %v1217_v18, 16  ;;  %v790_v3 = vrot.slane %v788_v63, 7  ;;  %6713 = vmatmul.mubr.msk.bf16.vlgmr.msra.gmra.mxu1 %vm1660_vm6, %v6009_v57  ;;  %v1469_v21 = vrot.slane %v1467_v47, 4 }
  0x77   : > { %v1472_v24 = vrot.slane %v1470_v6, 5  ;;  %6729 = vmatpush3.bf16.msra.mxu1 %v7239_v34  ;;  %v1478_v42 = vrot.slane %v1476_v59, 5  ;;  %v798_v39 = vrot.slane %v796_v41, 7  ;;  %v799_v35 = vshll.u32 %v6358_v53, 16 }
  0x78   : > { %v1482_v38 = vrot.slane %v1480_v26, 4  ;;  %v1488_v61 = vrot.slane %v1486_v0, 5  ;;  %v794_v4 = vrot.slane %v790_v3, 4  ;;  %v1180_v5 = vld [vmem:[#allocation2 + $0x24] sm:$0xf]  ;;  %v793_v10 = vor.u32 %v791_v1, %v790_v3  ;;  %7006 = vmatprep.subr.msk.bf16.mxu1 %vm1709_vm0, %v6113_v43 }
  0x79   : > { %v1473_v46 = vor.u32 %v1472_v24, %v1469_v21  ;;  %v1299_v49 = vshrl.u32 %v1180_v5, 16  ;;  %v1302_v14 = vshll.u32 %v1180_v5, 16  ;;  %v801_v32 = vor.u32 %v799_v35, %v798_v39 }
  0x7a   : > { %v1483_v31 = vor.u32 %v1482_v38, %v1478_v42  ;;  %v803_v34 = vrot.slane %v798_v39, 4  ;;  %v1084_v28 = vsel %vm7377_vm11, %v793_v10, %v1083_v20  ;;  %v571_v62 = vadd.f32 %v539_v51, %v507_v16  ;;  %v540_v16 = vld [vmem:[%s7304_s20 + $0xb8] sm:$0xff] }
  0x7b   : > { %v1474_v52 = vrot.slane %v1473_v46, 4  ;;  %v1301_v53 = vrot.slane %v1299_v49, 4  ;;  %1085 = vst [vmem:[#allocation2 + $0x30] sm:$0xf] %v1084_v28  ;;  %v1304_v33 = vrot.slane %v1302_v14, 5  ;;  %v802_v60 = vsel %vm7371_vm10, %v794_v4, %v801_v32 }
  0x7c   : > { %v1484_v56 = vrot.slane %v1483_v31, 4  ;;  %v7535_v17 = vld [vmem:[#allocation2 + $0x28] sm:$0xf]  ;;  %v7537_v2 = vld [vmem:[#allocation2 + $0x2c] sm:$0x1]  ;;  %v1088_v7 = vsel %vm7383_vm12, %v803_v34, %v1087_v48  ;;  %v907_v0 = vshrl.u32 %v7527_v25, 16  ;;  %v572_v41 = vadd.f32 %v540_v16, %v508_v55 }
  0x7d   : > { %v1479_v58 = vsel %vm7208_vm5, %v1474_v52, %v1478_v42  ;;  %v1308_v36 = vshll.u32 %v7535_v17, 16  ;;  %v1312_v63 = vshrl.u32 %v7535_v17, 16  ;;  %v1318_v57 = vshll.u32 %v7537_v2, 16  ;;  %1086 = vst.msk [vmem:[#allocation2 + $0x34] sm:$0xf] %vm581_vm1, %v802_v60  ;;  %v526_v16 = vld [vmem:[%s7304_s20 + $0x48] sm:$0xff] }
  0x7e   : > { %v1489_v43 = vsel %vm7208_vm5, %v1484_v56, %v1488_v61  ;;  %v1305_v47 = vor.u32 %v1304_v33, %v1301_v53  ;;  %1089 = vst [vmem:[#allocation2 + $0x38] sm:$0x1] %v1088_v7  ;;  %v910_v3 = vshll.u32 %v7527_v25, 16  ;;  %v915_v20 = vshrl.u32 %v6372_v15, 16  ;;  %v1132_v25 = vld [vmem:[#allocation2 + $0x84] sm:$0xf] }
  0x7f   : > { %v6010_v18 = vcombine.low %v1479_v58, %v1489_v43  ;;  %v1310_v6 = vrot.slane %v1308_v36, 5  ;;  %v1314_v59 = vrot.slane %v1312_v63, 4  ;;  %v1320_v26 = vrot.slane %v1318_v57, 5  ;;  %v1136_v52 = vld [vmem:[#allocation2 + $0x8c] sm:$0x1]  ;;  %v525_v7 = vld [vmem:[%s7304_s20 + $0x40] sm:$0xff] }
  0x80   : > { %v1306_v21 = vrot.slane %v1305_v47, 4  ;;  %v918_v1 = vshll.u32 %v6372_v15, 16  ;;  %v909_v42 = vrot.slane %v907_v0, 7  ;;  %v917_v38 = vrot.slane %v915_v20, 7 }
  0x81   : > { %6716 = vmatprep.mubr.msk.bf16.mxu1 %vm1660_vm6, %v6010_v18  ;;  %v1315_v24 = vor.u32 %v1314_v59, %v1310_v6  ;;  %v6373_v61 = vpack.c.bf16 %v571_v62, %v571_v62  ;;  %v493_v4 = vmul.f32 %v7336_v40, %v7313_v8  ;;  %v6374_v39 = vpack.c.bf16 %v572_v41, %v572_v41 }
  0x82   : > { %v1311_v46 = vsel %vm7208_vm5, %v1306_v21, %v1310_v6  ;;  %v7561_v10 = vld [vmem:[#allocation2 + $0x30] sm:$0xf]  ;;  %v494_v35 = vmul.f32 %v7336_v40, %v7315_v9  ;;  %v912_v49 = vor.u32 %v910_v3, %v909_v42  ;;  %v913_v14 = vrot.slane %v909_v42, 4 }
  0x83   : > { %v1316_v5 = vrot.slane %v1315_v24, 4  ;;  %v1323_v51 = vshrl.u32 %v7561_v10, 16  ;;  %v1326_v31 = vshll.u32 %v7561_v10, 16  ;;  %v920_v48 = vor.u32 %v918_v1, %v917_v38 }
  0x84   : > { %v922_v15 = vrot.slane %v917_v38, 4  ;;  %v924_v32 = vshrl.u32 %v6373_v61, 16  ;;  %v7569_v28 = vld [vmem:[#allocation2 + $0x34] sm:$0xf]  ;;  %v1133_v55 = vsel %vm7377_vm11, %v912_v49, %v1132_v25  ;;  %v927_v60 = vshll.u32 %v6373_v61, 16  ;;  %v528_v61 = vld [vmem:[%s7304_s20 + $0x58] sm:$0xff] }
  0x85   : > { %v1321_v8 = vsel %vm7208_vm5, %v1316_v5, %v1320_v26  ;;  %v7571_v56 = vld [vmem:[#allocation2 + $0x38] sm:$0x1]  ;;  %v1325_v9 = vrot.slane %v1323_v51, 4  ;;  %v1328_v53 = vrot.slane %v1326_v31, 5  ;;  %v1332_v62 = vshll.u32 %v7569_v28, 16  ;;  %v527_v38 = vld [vmem:[%s7304_s20 + $0x50] sm:$0xff] }
  0x86   : > { %v6003_v34 = vcombine.low %v1311_v46, %v1321_v8  ;;  %v1336_v58 = vshrl.u32 %v7569_v28, 16  ;;  %v1342_v33 = vshll.u32 %v7571_v56, 16  ;;  %v921_v36 = vsel %vm7371_vm10, %v913_v14, %v920_v48  ;;  %1134 = vst [vmem:[#allocation2 + $0x84] sm:$0xf] %v1133_v55  ;;  %v1139_v26 = vld [vmem:[#allocation2 + $0x90] sm:$0xf] }
  0x87   : > { %v1329_v63 = vor.u32 %v1328_v53, %v1325_v9  ;;  %1135 = vst.msk [vmem:[#allocation2 + $0x88] sm:$0xf] %vm581_vm1, %v921_v36  ;;  %v1137_v43 = vsel %vm7383_vm12, %v922_v15, %v1136_v52  ;;  %v926_v57 = vrot.slane %v924_v32, 7  ;;  %v1334_v18 = vrot.slane %v1332_v62, 5 }
  0x88   : > { %6701 = vmatmul.mubr.msk.bf16.gmra.mxu0 %vm1660_vm6, %v6003_v34  ;;  %v1338_v47 = vrot.slane %v1336_v58, 4  ;;  %v1344_v6 = vrot.slane %v1342_v33, 5  ;;  %1138 = vst [vmem:[#allocation2 + $0x8c] sm:$0x1] %v1137_v43  ;;  %v932_v59 = vshrl.u32 %v6374_v39, 16  ;;  %v935_v21 = vshll.u32 %v6374_v39, 16 }
  0x89   : > { %v1330_v0 = vrot.slane %v1329_v63, 4  ;;  %v929_v3 = vor.u32 %v927_v60, %v926_v57  ;;  %v930_v20 = vrot.slane %v926_v57, 4  ;;  %v557_v41 = vadd.f32 %v525_v7, %v493_v4  ;;  %v1143_v4 = vld [vmem:[#allocation2 + $0x98] sm:$0x1] }
  0x8a   : > { %v1339_v24 = vor.u32 %v1338_v47, %v1334_v18  ;;  %v934_v1 = vrot.slane %v932_v59, 7  ;;  %v558_v42 = vadd.f32 %v526_v16, %v494_v35  ;;  %v495_v25 = vmul.f32 %v7336_v40, %v7320_v11 }
  0x8b   : > { %v1335_v46 = vsel %vm7208_vm5, %v1330_v0, %v1334_v18  ;;  %v1140_v5 = vsel %vm7377_vm11, %v929_v3, %v1139_v26  ;;  %v496_v51 = vmul.f32 %v7336_v40, %v7322_v12  ;;  %v6359_v35 = vpack.c.bf16 %v557_v41, %v557_v41 }
  0x8c   : > { %v1340_v31 = vrot.slane %v1339_v24, 4  ;;  %v937_v39 = vor.u32 %v935_v21, %v934_v1  ;;  %v939_v49 = vrot.slane %v934_v1, 4  ;;  %1141 = vst [vmem:[#allocation2 + $0x90] sm:$0xf] %v1140_v5  ;;  %v6360_v8 = vpack.c.bf16 %v558_v42, %v558_v42 }
  0x8d   : > { %v7596_v14 = vld [vmem:[#allocation2 + $0x84] sm:$0xf]  ;;  %v559_v48 = vadd.f32 %v527_v38, %v495_v25  ;;  %v560_v15 = vadd.f32 %v528_v61, %v496_v51  ;;  %v7600_v52 = vmul.f32 %v7336_v40, %v7324_v13  ;;  %v805_v43 = vshrl.u32 %v6359_v35, 16 }
  0x8e   : > { %v1345_v11 = vsel %vm7208_vm5, %v1340_v31, %v1344_v6  ;;  %v7604_v32 = vld [vmem:[#allocation2 + $0x88] sm:$0xf]  ;;  %v1491_v12 = vshrl.u32 %v7596_v14, 16  ;;  %v1494_v34 = vshll.u32 %v7596_v14, 16  ;;  %v938_v9 = vsel %vm7371_vm10, %v930_v20, %v937_v39  ;;  %v1090_v20 = vld [vmem:[#allocation2 + $0x3c] sm:$0xf] }
  0x8f   : > { %v6004_v53 = vcombine.low %v1335_v46, %v1345_v11  ;;  %v7610_v55 = vld [vmem:[#allocation2 + $0x8c] sm:$0x1]  ;;  %v1500_v62 = vshll.u32 %v7604_v32, 16  ;;  %v1504_v13 = vshrl.u32 %v7604_v32, 16  ;;  %1142 = vst.msk [vmem:[#allocation2 + $0x94] sm:$0xf] %vm581_vm1, %v938_v9  ;;  %v1144_v58 = vsel %vm7383_vm12, %v939_v49, %v1143_v4 }
  0x90   : > { %v1493_v33 = vrot.slane %v1491_v12, 4  ;;  %v1496_v36 = vrot.slane %v1494_v34, 5  ;;  %v1510_v63 = vshll.u32 %v7610_v55, 16  ;;  %1145 = vst [vmem:[#allocation2 + $0x98] sm:$0x1] %v1144_v58  ;;  %v808_v7 = vshll.u32 %v6359_v35, 16 }
  0x91   : > { %6704 = vmatprep.mubr.msk.bf16.mxu0 %vm1660_vm6, %v6004_v53  ;;  %v1502_v57 = vrot.slane %v1500_v62, 5  ;;  %v1506_v60 = vrot.slane %v1504_v13, 4  ;;  %v813_v16 = vshrl.u32 %v6360_v8, 16  ;;  %v807_v6 = vrot.slane %v805_v43, 7  ;;  %v1094_v61 = vld [vmem:[#allocation2 + $0x44] sm:$0x1] }
  0x92   : > { %v1497_v18 = vor.u32 %v1496_v36, %v1493_v33  ;;  %v1512_v47 = vrot.slane %v1510_v63, 5  ;;  %v816_v59 = vshll.u32 %v6360_v8, 16  ;;  %v6361_v21 = vpack.c.bf16 %v559_v48, %v559_v48  ;;  %v541_v13 = vld [vmem:[%s7304_s20 + $0xc0] sm:$0xff] }
  0x93   : > { %v1507_v26 = vor.u32 %v1506_v60, %v1502_v57  ;;  %v7619_v0 = vld [vmem:[#allocation2 + $0x90] sm:$0xf]  ;;  %v815_v3 = vrot.slane %v813_v16, 7  ;;  %v6362_v24 = vpack.c.bf16 %v560_v15, %v560_v15  ;;  %v810_v38 = vor.u32 %v808_v7, %v807_v6  ;;  %v1097_v16 = vld [vmem:[#allocation2 + $0x48] sm:$0xf] }
  0x94   : > { %10116 = vst [vmem:[#allocation8_spill] sm:$0xff] %v7619_v0  ;;  %v1498_v1 = vrot.slane %v1497_v18, 4  ;;  %v1515_v41 = vshrl.u32 %v7619_v0, 16  ;;  %v1518_v42 = vshll.u32 %v7619_v0, 16  ;;  %v811_v5 = vrot.slane %v807_v6, 4  ;;  %v542_v18 = vld [vmem:[%s7304_s20 + $0xc8] sm:$0xff] }
  0x95   : > { %v1508_v46 = vrot.slane %v1507_v26, 4  ;;  %v818_v25 = vor.u32 %v816_v59, %v815_v3  ;;  %v820_v51 = vrot.slane %v815_v3, 4  ;;  %v1091_v35 = vsel %vm7377_vm11, %v810_v38, %v1090_v20  ;;  %v543_v3 = vld [vmem:[%s7304_s20 + $0xd0] sm:$0xff] }
  0x96   : > { %v1503_v31 = vsel %vm7208_vm5, %v1498_v1, %v1502_v57  ;;  %v7625_v39 = vld [vmem:[#allocation2 + $0x94] sm:$0xf]  ;;  %v1517_v49 = vrot.slane %v1515_v41, 4  ;;  %v1520_v4 = vrot.slane %v1518_v42, 5  ;;  %1092 = vst [vmem:[#allocation2 + $0x3c] sm:$0xf] %v1091_v35  ;;  %v510_v59 = vmul.f32 %v7336_v40, %v7326_v23 }
  0x97   : > { %v1513_v8 = vsel %vm7208_vm5, %v1508_v46, %v1512_v47  ;;  %v7631_v48 = vld [vmem:[#allocation2 + $0x98] sm:$0x1]  ;;  %v1524_v15 = vshll.u32 %v7625_v39, 16  ;;  %v1528_v11 = vshrl.u32 %v7625_v39, 16  ;;  %v819_v12 = vsel %vm7371_vm10, %v811_v5, %v818_v25  ;;  %v1101_v5 = vld [vmem:[#allocation2 + $0x50] sm:$0x1] }
  0x98   : > { %v6011_v34 = vcombine.low %v1503_v31, %v1513_v8  ;;  %v1521_v9 = vor.u32 %v1520_v4, %v1517_v49  ;;  %v1534_v53 = vshll.u32 %v7631_v48, 16  ;;  %1093 = vst.msk [vmem:[#allocation2 + $0x40] sm:$0xf] %vm581_vm1, %v819_v12  ;;  %v1095_v62 = vsel %vm7383_vm12, %v820_v51, %v1094_v61 }
  0x99   : > { %v1526_v58 = vrot.slane %v1524_v15, 5  ;;  %v1530_v33 = vrot.slane %v1528_v11, 4  ;;  %1096 = vst [vmem:[#allocation2 + $0x44] sm:$0x1] %v1095_v62  ;;  %v822_v36 = vshrl.u32 %v6361_v21, 16  ;;  %v825_v63 = vshll.u32 %v6361_v21, 16 }
  0x9a   : > { %6717 = vmatmul.mubr.msk.bf16.gmra.mxu1 %vm1660_vm6, %v6011_v34  ;;  %v1522_v43 = vrot.slane %v1521_v9, 4  ;;  %v1536_v57 = vrot.slane %v1534_v53, 5  ;;  %v830_v60 = vshrl.u32 %v6362_v24, 16  ;;  %v833_v7 = vshll.u32 %v6362_v24, 16  ;;  %v544_v34 = vld [vmem:[%s7304_s20 + $0xd8] sm:$0xff] }
  0x9b   : > { %v1531_v47 = vor.u32 %v1530_v33, %v1526_v58  ;;  %v824_v6 = vrot.slane %v822_v36, 7  ;;  %v573_v26 = vadd.f32 %v541_v13, %v7600_v52  ;;  %v511_v1 = vmul.f32 %v7336_v40, %v7330_v30 }
  0x9c   : > { %v1527_v20 = vsel %vm7208_vm5, %v1522_v43, %v1526_v58  ;;  %v832_v21 = vrot.slane %v830_v60, 7  ;;  %v512_v24 = vmul.f32 %v7336_v40, %v7332_v37  ;;  %v574_v61 = vadd.f32 %v542_v18, %v510_v59 }
  0x9d   : > { %v1532_v41 = vrot.slane %v1531_v47, 4  ;;  %v827_v42 = vor.u32 %v825_v63, %v824_v6  ;;  %v828_v38 = vrot.slane %v824_v6, 4  ;;  %v7654_v46 = vld [vmem:[#allocation2 + $0x3c] sm:$0xf]  ;;  %v6375_v25 = vpack.c.bf16 %v573_v26, %v573_v26 }
  0x9e   : > { %v835_v23 = vor.u32 %v833_v7, %v832_v21  ;;  %v837_v52 = vrot.slane %v832_v21, 4  ;;  %v575_v51 = vadd.f32 %v543_v3, %v511_v1  ;;  %v1347_v30 = vshrl.u32 %v7654_v46, 16  ;;  %v2171_v29 = vld [vmem:[#allocation2 + $0x3c] sm:$0xe] }
  0x9f   : > { %v1537_v31 = vsel %vm7208_vm5, %v1532_v41, %v1536_v57  ;;  %v7658_v49 = vld [vmem:[#allocation2 + $0x40] sm:$0xf]  ;;  %v1350_v37 = vshll.u32 %v7654_v46, 16  ;;  %v1098_v4 = vsel %vm7377_vm11, %v827_v42, %v1097_v16  ;;  %v6376_v36 = vpack.c.bf16 %v574_v61, %v574_v61 }
  0xa0   : > { %v6012_v35 = vcombine.low %v1527_v20, %v1537_v31  ;;  %v7664_v8 = vld [vmem:[#allocation2 + $0x44] sm:$0x1]  ;;  %v1356_v15 = vshll.u32 %v7658_v49, 16  ;;  %v1360_v11 = vshrl.u32 %v7658_v49, 16  ;;  %v836_v12 = vsel %vm7371_vm10, %v828_v38, %v835_v23  ;;  %1099 = vst [vmem:[#allocation2 + $0x48] sm:$0xf] %v1098_v4 }
  0xa1   : > { %v1349_v9 = vrot.slane %v1347_v30, 4  ;;  %v1352_v53 = vrot.slane %v1350_v37, 5  ;;  %v1366_v62 = vshll.u32 %v7664_v8, 16  ;;  %1100 = vst.msk [vmem:[#allocation2 + $0x4c] sm:$0xf] %vm581_vm1, %v836_v12  ;;  %v1102_v13 = vsel %vm7383_vm12, %v837_v52, %v1101_v5 }
  0xa2   : > { %6720 = vmatprep.mubr.msk.bf16.mxu1 %vm1660_vm6, %v6012_v35  ;;  %v1358_v58 = vrot.slane %v1356_v15, 5  ;;  %v1362_v33 = vrot.slane %v1360_v11, 4  ;;  %1103 = vst [vmem:[#allocation2 + $0x50] sm:$0x1] %v1102_v13  ;;  %v941_v63 = vshrl.u32 %v6375_v25, 16  ;;  %v944_v60 = vshll.u32 %v6375_v25, 16 }
  0xa3   : > { %v1353_v43 = vor.u32 %v1352_v53, %v1349_v9  ;;  %v1368_v57 = vrot.slane %v1366_v62, 5  ;;  %v576_v7 = vadd.f32 %v544_v34, %v512_v24  ;;  %v949_v47 = vshrl.u32 %v6376_v36, 16  ;;  %v1146_v38 = vld [vmem:[#allocation2 + $0x9c] sm:$0xf]  ;;  %v1150_v37 = vld [vmem:[#allocation2 + $0xa4] sm:$0x1] }
  0xa4   : > { %v1363_v16 = vor.u32 %v1362_v33, %v1358_v58  ;;  %v943_v18 = vrot.slane %v941_v63, 7  ;;  %v952_v6 = vshll.u32 %v6376_v36, 16  ;;  %v6377_v26 = vpack.c.bf16 %v575_v51, %v575_v51  ;;  %v529_v13 = vld [vmem:[%s7304_s20 + $0x60] sm:$0xff] }
  0xa5   : > { %v1354_v59 = vrot.slane %v1353_v43, 4  ;;  %v6378_v3 = vpack.c.bf16 %v576_v7, %v576_v7  ;;  %v497_v20 = vmul.f32 %v7336_v40, %v7341_v44  ;;  %v951_v42 = vrot.slane %v949_v47, 7  ;;  %v1153_v43 = vld [vmem:[#allocation2 + $0xa8] sm:$0xf] }
  0xa6   : > { %v1364_v21 = vrot.slane %v1363_v16, 4  ;;  %v946_v1 = vor.u32 %v944_v60, %v943_v18  ;;  %v947_v41 = vrot.slane %v943_v18, 4  ;;  %v958_v24 = vshrl.u32 %v6377_v26, 16  ;;  %v530_v47 = vld [vmem:[%s7304_s20 + $0x68] sm:$0xff] }
  0xa7   : > { %v1359_v61 = vsel %vm7208_vm5, %v1354_v59, %v1358_v58  ;;  %v7680_v23 = vld [vmem:[#allocation2 + $0x48] sm:$0xf]  ;;  %v961_v52 = vshll.u32 %v6377_v26, 16  ;;  %v966_v5 = vshrl.u32 %v6378_v3, 16  ;;  %v954_v30 = vor.u32 %v952_v6, %v951_v42 }
  0xa8   : > { %v1369_v25 = vsel %vm7208_vm5, %v1364_v21, %v1368_v57  ;;  %v7684_v51 = vld [vmem:[#allocation2 + $0x4c] sm:$0xf]  ;;  %v1371_v44 = vshrl.u32 %v7680_v23, 16  ;;  %v1374_v31 = vshll.u32 %v7680_v23, 16  ;;  %v956_v12 = vrot.slane %v951_v42, 4 }
  0xa9   : > { %v6005_v4 = vcombine.low %v1359_v61, %v1369_v25  ;;  %v7688_v35 = vld [vmem:[#allocation2 + $0x50] sm:$0x1]  ;;  %v1380_v15 = vshll.u32 %v7684_v51, 16  ;;  %v1384_v11 = vshrl.u32 %v7684_v51, 16  ;;  %v955_v62 = vsel %vm7371_vm10, %v947_v41, %v954_v30 }
  0xaa   : > { %v1373_v34 = vrot.slane %v1371_v44, 4  ;;  %v1376_v9 = vrot.slane %v1374_v31, 5  ;;  %v1390_v53 = vshll.u32 %v7688_v35, 16  ;;  %v1147_v36 = vsel %vm7377_vm11, %v946_v1, %v1146_v38  ;;  %1149 = vst.msk [vmem:[#allocation2 + $0xa0] sm:$0xf] %vm581_vm1, %v955_v62 }
  0xab   : > { %6705 = vmatmul.mubr.msk.bf16.gmra.mxu0 %vm1660_vm6, %v6005_v4  ;;  %v1382_v58 = vrot.slane %v1380_v15, 5  ;;  %v1386_v33 = vrot.slane %v1384_v11, 4  ;;  %v1151_v63 = vsel %vm7383_vm12, %v956_v12, %v1150_v37  ;;  %v1157_v57 = vld [vmem:[#allocation2 + $0xb0] sm:$0x1]  ;;  %1148 = vst [vmem:[#allocation2 + $0x9c] sm:$0xf] %v1147_v36  ;;  %v498_v26 = vmul.f32 %v7336_v40, %v7343_v45 }
  0xac   : > { %v1377_v60 = vor.u32 %v1376_v9, %v1373_v34  ;;  %v1392_v7 = vrot.slane %v1390_v53, 5  ;;  %1152 = vst [vmem:[#allocation2 + $0xa4] sm:$0x1] %v1151_v63  ;;  %v960_v16 = vrot.slane %v958_v24, 7  ;;  %v968_v18 = vrot.slane %v966_v5, 7 }
  0xad   : > { %v1387_v6 = vor.u32 %v1386_v33, %v1382_v58  ;;  %v969_v59 = vshll.u32 %v6378_v3, 16  ;;  %v561_v21 = vadd.f32 %v529_v13, %v497_v20  ;;  %v562_v44 = vadd.f32 %v530_v47, %v498_v26  ;;  %v545_v20 = vld [vmem:[%s7304_s20 + $0xe0] sm:$0xff]  ;;  %v7718_v15 = vld [vmem:[#allocation2 + $0x8] sm:$0x1] }
  0xae   : > { %v1378_v1 = vrot.slane %v1377_v60, 4  ;;  %v963_v41 = vor.u32 %v961_v52, %v960_v16  ;;  %v964_v42 = vrot.slane %v960_v16, 4  ;;  %v973_v38 = vrot.slane %v968_v18, 4  ;;  %v546_v60 = vld [vmem:[%s7304_s20 + $0xe8] sm:$0xff] }
  0xaf   : > { %v1388_v61 = vrot.slane %v1387_v6, 4  ;;  %v971_v25 = vor.u32 %v969_v59, %v968_v18  ;;  %v6363_v31 = vpack.c.bf16 %v561_v21, %v561_v21  ;;  %v513_v45 = vmul.f32 %v7336_v40, %v7433_v19  ;;  %v1104_v6 = vld [vmem:[#allocation2 + $0x54] sm:$0xf] }
  0xb0   : > { %v1383_v24 = vsel %vm7208_vm5, %v1378_v1, %v1382_v58  ;;  %v1154_v5 = vsel %vm7377_vm11, %v963_v41, %v1153_v43  ;;  %v1158_v3 = vsel %vm7383_vm12, %v973_v38, %v1157_v57  ;;  %v6364_v37 = vpack.c.bf16 %v562_v44, %v562_v44 }
  0xb1   : > { %v1393_v52 = vsel %vm7208_vm5, %v1388_v61, %v1392_v7  ;;  %v972_v30 = vsel %vm7371_vm10, %v964_v42, %v971_v25  ;;  %1155 = vst [vmem:[#allocation2 + $0xa8] sm:$0xf] %v1154_v5  ;;  %1159 = vst [vmem:[#allocation2 + $0xb0] sm:$0x1] %v1158_v3  ;;  %v839_v4 = vshrl.u32 %v6363_v31, 16  ;;  %v2222_v11 = vrot.slane %v7718_v15, 5 }
  0xb2   : > { %v6006_v12 = vcombine.low %v1383_v24, %v1393_v52  ;;  %v7721_v34 = vld [vmem:[#allocation2 + $0xa0] sm:$0xf]  ;;  %1156 = vst.msk [vmem:[#allocation2 + $0xac] sm:$0xf] %vm581_vm1, %v972_v30  ;;  %v842_v19 = vshll.u32 %v6363_v31, 16  ;;  %v514_v58 = vmul.f32 %v7336_v40, %v7437_v27  ;;  %v577_v33 = vadd.f32 %v545_v20, %v513_v45 }
  0xb3   : > { %v7724_v9 = vld [vmem:[#allocation2 + $0x9c] sm:$0xf]  ;;  %v7726_v53 = vld [vmem:[#allocation2 + $0xa4] sm:$0x1]  ;;  %v1548_v62 = vshll.u32 %v7721_v34, 16  ;;  %v1552_v13 = vshrl.u32 %v7721_v34, 16 }
  0xb4   : > { %6708 = vmatprep.mubr.msk.bf16.mxu0 %vm1660_vm6, %v6006_v12  ;;  %v1539_v36 = vshrl.u32 %v7724_v9, 16  ;;  %v1542_v63 = vshll.u32 %v7724_v9, 16  ;;  %v1558_v43 = vshll.u32 %v7726_v53, 16  ;;  %v841_v57 = vrot.slane %v839_v4, 7 }
  0xb5   : > { %v1550_v7 = vrot.slane %v1548_v62, 5  ;;  %v1554_v16 = vrot.slane %v1552_v13, 4  ;;  %v847_v18 = vshrl.u32 %v6364_v37, 16  ;;  %v850_v47 = vshll.u32 %v6364_v37, 16 }
  0xb6   : > { %v1541_v59 = vrot.slane %v1539_v36, 4  ;;  %v1544_v26 = vrot.slane %v1542_v63, 5  ;;  %v1560_v21 = vrot.slane %v1558_v43, 5  ;;  %v844_v27 = vor.u32 %v842_v19, %v841_v57  ;;  %v7750_v19 = vld [vmem:[#allocation2 + $0x10] sm:$0xf] }
  0xb7   : > { %v1555_v1 = vor.u32 %v1554_v16, %v1550_v7  ;;  %v845_v41 = vrot.slane %v841_v57, 4  ;;  %v849_v42 = vrot.slane %v847_v18, 7  ;;  %v578_v31 = vadd.f32 %v546_v60, %v514_v58  ;;  %v1108_v60 = vld [vmem:[#allocation2 + $0x5c] sm:$0x1] }
  0xb8   : > { %v1545_v38 = vor.u32 %v1544_v26, %v1541_v59  ;;  %v7737_v61 = vld [vmem:[#allocation2 + $0xa8] sm:$0xf]  ;;  %v7739_v25 = vld [vmem:[#allocation2 + $0xb0] sm:$0x1]  ;;  %v1105_v44 = vsel %vm7377_vm11, %v844_v27, %v1104_v6  ;;  %v6379_v24 = vpack.c.bf16 %v577_v33, %v577_v33  ;;  %v2226_v62 = vrot.slane %v7750_v19, 5 }
  0xb9   : > { %10117 = vst [vmem:[#allocation9_spill] sm:$0xff] %v7737_v61  ;;  %v1556_v5 = vrot.slane %v1555_v1, 4  ;;  %v7743_v3 = vld [vmem:[#allocation2 + $0xac] sm:$0xf]  ;;  %v1563_v45 = vshrl.u32 %v7737_v61, 16  ;;  %v1566_v20 = vshll.u32 %v7737_v61, 16  ;;  %v852_v12 = vor.u32 %v850_v47, %v849_v42 }
  0xba   : > { %10118 = vst [vmem:[#allocation10_spill] sm:$0xff] %v7743_v3  ;;  %v1582_v52 = vshll.u32 %v7739_v25, 16  ;;  %1106 = vst [vmem:[#allocation2 + $0x54] sm:$0xf] %v1105_v44  ;;  %v1546_v30 = vrot.slane %v1545_v38, 4  ;;  %v1572_v37 = vshll.u32 %v7743_v3, 16  ;;  %v6380_v6 = vpack.c.bf16 %v578_v31, %v578_v31 }
  0xbb   : > { %v1576_v4 = vshrl.u32 %v7743_v3, 16  ;;  %v1561_v13 = vsel %vm7208_vm5, %v1556_v5, %v1560_v21  ;;  %v1565_v58 = vrot.slane %v1563_v45, 4  ;;  %v1568_v33 = vrot.slane %v1566_v20, 5  ;;  %v7765_v31 = vld [vmem:[#allocation2 + $0x4] sm:$0xf] }
  0xbc   : > { %v1551_v36 = vsel %vm7208_vm5, %v1546_v30, %v1550_v7  ;;  %v1574_v63 = vrot.slane %v1572_v37, 5  ;;  %v853_v57 = vsel %vm7371_vm10, %v845_v41, %v852_v12  ;;  %v854_v47 = vrot.slane %v849_v42, 4  ;;  %v1160_v41 = vld [vmem:[#allocation2 + $0xb4] sm:$0xf] }
  0xbd   : > { %v1578_v43 = vrot.slane %v1576_v4, 4  ;;  %v6013_v16 = vcombine.low %v1551_v36, %v1561_v13  ;;  %v1569_v18 = vor.u32 %v1568_v33, %v1565_v58  ;;  %1107 = vst.msk [vmem:[#allocation2 + $0x58] sm:$0xf] %vm581_vm1, %v853_v57  ;;  %v1584_v26 = vrot.slane %v1582_v52, 5  ;;  %v2166_v4 = vld [vmem:[#allocation2] sm:$0xe] }
  0xbe   : > { %v975_v21 = vshrl.u32 %v6379_v24, 16  ;;  %v1109_v7 = vsel %vm7383_vm12, %v854_v47, %v1108_v60  ;;  %v978_v1 = vshll.u32 %v6379_v24, 16  ;;  %v983_v38 = vshrl.u32 %v6380_v6, 16  ;;  %v1164_v60 = vld [vmem:[#allocation2 + $0xbc] sm:$0x1] }
  0xbf   : > { %v1579_v59 = vor.u32 %v1578_v43, %v1574_v63  ;;  %6721 = vmatmul.mubr.msk.bf16.gmra.mxu1 %vm1660_vm6, %v6013_v16  ;;  %v1570_v27 = vrot.slane %v1569_v18, 4  ;;  %1110 = vst [vmem:[#allocation2 + $0x5c] sm:$0x1] %v1109_v7  ;;  %v986_v45 = vshll.u32 %v6380_v6, 16  ;;  %v2219_v20 = vrot.slane %v7765_v31, 5 }
  0xc0   : > { %v977_v42 = vrot.slane %v975_v21, 7  ;;  %v985_v24 = vrot.slane %v983_v38, 7  ;;  %v2167_v16 = vld [vmem:[#allocation2 + $0xc] sm:$0xe]  ;;  %v6064_v6 = vrot.slane %v2166_v4, 9 }
  0xc1   : > { %v1580_v44 = vrot.slane %v1579_v59, 4  ;;  %v7763_v5 = vld [vmem:[#allocation2 + $0x54] sm:$0xf]  ;;  %v1575_v52 = vsel %vm7208_vm5, %v1570_v27, %v1574_v63  ;;  %v2221_v59 = vrot.slane %v2219_v20, 4  ;;  %v6065_v38 = vrot.slane %v2167_v16, 9 }
  0xc2   : > { %v1395_v30 = vshrl.u32 %v7763_v5, 16  ;;  %v1398_v37 = vshll.u32 %v7763_v5, 16  ;;  %v980_v13 = vor.u32 %v978_v1, %v977_v42  ;;  %v981_v58 = vrot.slane %v977_v42, 4 }
  0xc3   : > { %v1585_v12 = vsel %vm7208_vm5, %v1580_v44, %v1584_v26  ;;  %v988_v57 = vor.u32 %v986_v45, %v985_v24  ;;  %v990_v63 = vrot.slane %v985_v24, 4  ;;  %v7059_v44 = vld [vmem:[#allocation2 + $0x14] sm:$0x1]  ;;  %v7817_v15 = vsel %vm7792_vm15, %v6065_v38, %v2226_v62 }
  0xc4   : > { %v6014_v33 = vcombine.low %v1575_v52, %v1585_v12  ;;  %v1397_v36 = vrot.slane %v1395_v30, 4  ;;  %v1400_v43 = vrot.slane %v1398_v37, 5  ;;  %v7774_v18 = vld [vmem:[#allocation2 + $0x58] sm:$0xf]  ;;  %v1161_v47 = vsel %vm7377_vm11, %v980_v13, %v1160_v41 }
  0xc5   : > { %v1404_v21 = vshll.u32 %v7774_v18, 16  ;;  %v1408_v27 = vshrl.u32 %v7774_v18, 16  ;;  %v989_v7 = vsel %vm7371_vm10, %v981_v58, %v988_v57  ;;  %1162 = vst [vmem:[#allocation2 + $0xb4] sm:$0xf] %v1161_v47  ;;  %v1165_v1 = vsel %vm7383_vm12, %v990_v63, %v1164_v60  ;;  %v2168_v13 = vld [vmem:[#allocation2 + $0x18] sm:$0xe] }
  0xc6   : > { %6724 = vmatprep.mubr.msk.bf16.mxu1 %vm1660_vm6, %v6014_v33  ;;  %v1401_v26 = vor.u32 %v1400_v43, %v1397_v36  ;;  %1163 = vst.msk [vmem:[#allocation2 + $0xb8] sm:$0xf] %vm581_vm1, %v989_v7  ;;  %v2228_v41 = vrot.slane %v2226_v62, 4  ;;  %v2229_v42 = vrot.slane %v7059_v44, 5  ;;  %v7788_v45 = vld [vmem:[#allocation2 + $0x5c] sm:$0x1]  ;;  %v2220_v12 = vsel %vm7792_vm15, %v6064_v6, %v2219_v20 }
  0xc7   : > { %v1406_v30 = vrot.slane %v1404_v21, 5  ;;  %v1410_v37 = vrot.slane %v1408_v27, 4  ;;  %1166 = vst [vmem:[#allocation2 + $0xbc] sm:$0x1] %v1165_v1  ;;  %v1414_v4 = vshll.u32 %v7788_v45, 16  ;;  %v2223_v33 = vsel %vm7792_vm15, %v2221_v59, %v2222_v11 }
  0xc8   : > { %v1402_v52 = vrot.slane %v1401_v26, 4  ;;  %v7805_v36 = vsel %vm7792_vm15, %v2228_v41, %v2229_v42  ;;  %v7807_v43 = vld [vmem:[#allocation2 + $0x1c] sm:$0xf]  ;;  %v7810_v60 = vld [vmem:[#allocation2 + $0x68] sm:$0x1]  ;;  %v6066_v47 = vrot.slane %v2168_v13, 9  ;;  %v6081_v59 = vcombine.low %v2220_v12, %v2223_v33 }
  0xc9   : > { %v1411_v58 = vor.u32 %v1410_v37, %v1406_v30  ;;  %v2233_v57 = vrot.slane %v7807_v43, 5  ;;  %v1416_v63 = vrot.slane %v1414_v4, 5  ;;  %v7823_v26 = vld [vmem:[#allocation2] sm:$0xf]  ;;  %v6082_v27 = vcombine.low %v7817_v15, %v7805_v36  ;;  %v7829_v7 = vld [vmem:[#allocation2 + $0xc] sm:$0xf] }
  0xca   : > { %v1407_v11 = vsel %vm7208_vm5, %v1402_v52, %v1406_v30  ;;  %v2240_v12 = vrot.slane %v7535_v17, 5  ;;  %v7064_v36 = vld [vmem:[#allocation2 + $0x20] sm:$0x1]  ;;  %v2247_v62 = vrot.slane %v7569_v28, 5  ;;  %v2243_v21 = vrot.slane %v7537_v2, 5 }
  0xcb   : > { %v1412_v20 = vrot.slane %v1411_v58, 4  ;;  %v2235_v42 = vrot.slane %v2233_v57, 4  ;;  %v2234_v33 = vsel %vm7792_vm15, %v6066_v47, %v2233_v57  ;;  %v2236_v15 = vrot.slane %v7064_v36, 5  ;;  %v7856_v47 = vld [vmem:[#allocation2 + $0x18] sm:$0xf] }
  0xcc   : > { %v7821_v6 = vld [vmem:[#allocation2 + $0xb4] sm:$0xf]  ;;  %v2242_v36 = vrot.slane %v2240_v12, 4  ;;  %v2249_v54 = vrot.slane %v2247_v62, 4 }
  0xcd   : > { %10121 = vst [vmem:[#allocation11_spill] sm:$0xff] %v7821_v6  ;;  %v1417_v1 = vsel %vm7208_vm5, %v1412_v20, %v1416_v63  ;;  %v7835_v38 = vld [vmem:[#allocation2 + $0xb8] sm:$0xf]  ;;  %v1587_v41 = vshrl.u32 %v7821_v6, 16  ;;  %v1590_v44 = vshll.u32 %v7821_v6, 16 }
  0xce   : > { %10122 = vst [vmem:[#allocation12_spill] sm:$0xff] %v7835_v38  ;;  %v6007_v52 = vcombine.low %v1407_v11, %v1417_v1  ;;  %v7839_v30 = vld [vmem:[#allocation2 + $0xbc] sm:$0x1]  ;;  %v1596_v37 = vshll.u32 %v7835_v38, 16  ;;  %v1600_v4 = vshrl.u32 %v7835_v38, 16 }
  0xcf   : > { %10123 = vst [vmem:[#allocation13_spill] sm:$0xff] %v7839_v30  ;;  %v1589_v13 = vrot.slane %v1587_v41, 4  ;;  %v1592_v58 = vrot.slane %v1590_v44, 5  ;;  %v2169_v20 = vld [vmem:[#allocation2 + $0x24] sm:$0xe]  ;;  %v1606_v1 = vshll.u32 %v7839_v30, 16 }
  0xd0   : > { %6709 = vmatmul.mubr.msk.bf16.gmra.mxu0 %vm1660_vm6, %v6007_v52  ;;  %v1598_v63 = vrot.slane %v1596_v37, 5  ;;  %v1602_v11 = vrot.slane %v1600_v4, 4  ;;  %v7065_v41 = vld [vmem:[%s10078_s4 + $0x6] sm:$0x3]  ;;  %v7067_v52 = vld [vmem:[%s10078_s4 + $0x8] sm:$0x3] }
  0xd1   : > { %v1593_v16 = vor.u32 %v1592_v58, %v1589_v13  ;;  %6764 = vmatprep.mubr.msk.bf16.mxu0 %vm1660_vm6, %v6081_v59  ;;  %v7854_v57 = vsel %vm1709_vm0, %v7065_v41, 0  ;;  %v3512_v37 = vsel %vm1709_vm0, %v7067_v52, 0  ;;  %v2170_v4 = vld [vmem:[#allocation2 + $0x30] sm:$0xe]  ;;  %v2237_v13 = vsel %vm7792_vm15, %v2235_v42, %v2236_v15 }
  0xd2   : > { %v1603_v59 = vor.u32 %v1602_v11, %v1598_v63  ;;  %v6067_v58 = vrot.slane %v2169_v20, 9  ;;  %v2254_v44 = vrot.slane %v7658_v49, 5  ;;  %v1608_v40 = vrot.slane %v1606_v1, 5 }
  0xd3   : > { %v1594_v41 = vrot.slane %v1593_v16, 4  ;;  %v6068_v30 = vrot.slane %v2170_v4, 9  ;;  %v6083_v0 = vcombine.low %v2234_v33, %v2237_v13  ;;  %v2250_v42 = vrot.slane %v7571_v56, 5 }
  0xd4   : > { %v1604_v50 = vrot.slane %v1603_v59, 4  ;;  %v2256_v15 = vrot.slane %v2254_v44, 4  ;;  %v2244_v16 = vsel %vm7792_vm15, %v2242_v36, %v2243_v21  ;;  %v6069_v20 = vrot.slane %v2171_v29, 9  ;;  %v2172_v59 = vld [vmem:[#allocation2 + $0x48] sm:$0xe] }
  0xd5   : > { %v1599_v11 = vsel %vm7208_vm5, %v1594_v41, %v1598_v63  ;;  %v2261_v1 = vrot.slane %v7684_v51, 5  ;;  %v7880_v52 = vsel %vm7792_vm15, %v2249_v54, %v2250_v42  ;;  %v2257_v33 = vrot.slane %v7664_v8, 5  ;;  %v2174_v63 = vld [vmem:[#allocation2 + $0x60] sm:$0xe]  ;;  %v2173_v21 = vld [vmem:[#allocation2 + $0x54] sm:$0xe] }
  0xd6   : > { %v1609_v2 = vsel %vm7208_vm5, %v1604_v50, %v1608_v40  ;;  %v7888_v40 = vld [vmem:[%s10078_s4 + $0xc] sm:$0x3]  ;;  %v2241_v29 = vsel %vm7792_vm15, %v6067_v58, %v2240_v12  ;;  %v7893_v50 = vld [vmem:[#allocation2 + $0x24] sm:$0xf]  ;;  %v2248_v8 = vsel %vm7792_vm15, %v6068_v30, %v2247_v62  ;;  %v2268_v13 = vrot.slane %v7774_v18, 5 }
  0xd7   : > { %v6015_v4 = vcombine.low %v1599_v11, %v1609_v2  ;;  %v6035_v54 = vcombine.low %v7893_v50, %v7535_v17  ;;  %v6070_v12 = vrot.slane %v2172_v59, 9  ;;  %v2263_v58 = vrot.slane %v2261_v1, 4  ;;  %v7906_v36 = vld [vmem:[#allocation2 + $0x64] sm:$0xf] }
  0xd8   : > { %6765 = vmatmul.mubr.msk.bf16.vlgmr.msra.gmra.mxu0 %vm1660_vm6, %v6082_v27  ;;  %v7904_v27 = vsel %vm7792_vm15, %v2256_v15, %v2257_v33  ;;  %v2275_v41 = vrot.slane %v7906_v36, 5  ;;  %v10124_v62 = vcombine.low %v7823_v26, %v7765_v31  ;;  %v6084_v30 = vcombine.low %v2241_v29, %v2244_v16  ;;  %v2175_v15 = vld [vmem:[#allocation2 + $0x6c] sm:$0xe]  ;;  %v2176_v31 = vld [vmem:[#allocation2 + $0x78] sm:$0xe]  ;;  %v10132_v6 = vld [vmem:[#allocation13_spill] sm:$0xff] }
  0xd9   : > { %6725 = vmatmul.mubr.msk.bf16.gmra.mxu1 %vm1660_vm6, %v6015_v4  ;;  %6768 = vmatprep.mubr.msk.bf16.mxu0 %vm1660_vm6, %v6083_v0  ;;  %v6085_v11 = vcombine.low %v2248_v8, %v7880_v52  ;;  %v2270_v42 = vrot.slane %v2268_v13, 4  ;;  %v7918_v2 = vsel %vm7792_vm15, %v6069_v20, %v2254_v44  ;;  %v2264_v59 = vrot.slane %v7688_v35, 5  ;;  %v7926_v16 = vld [vmem:[#allocation2 + $0x70] sm:$0xf]  ;;  %v7937_v8 = vld [vmem:[#allocation2 + $0x7c] sm:$0xf] }
  0xda   : > { %6730 = vmatprep.mubr.msk.bf16.mxu1 %vm1660_vm6, %v10124_v62  ;;  %6831 = vmatpush3.bf16.msra.mxu0 %v3512_v37  ;;  %v6071_v4 = vrot.slane %v2173_v21, 9  ;;  %v2277_v33 = vrot.slane %v2275_v41, 4  ;;  %v6086_v26 = vcombine.low %v7918_v2, %v7904_v27  ;;  %v2271_v37 = vrot.slane %v7788_v45, 5  ;;  %v2983_v27 = vld [vmem:[#allocation2 + $0x14] sm:$0x1] }
  0xdb   : > { %7009 = vmatprep.subr.msk.bf16.mxu0 %vm1709_vm0, %v7888_v40  ;;  %v6072_v52 = vrot.slane %v2174_v63, 9  ;;  %v2282_v29 = vrot.slane %v7926_v16, 5  ;;  %v7931_v44 = vsel %vm7792_vm15, %v6070_v12, %v2261_v1  ;;  %v7935_v35 = vsel %vm7792_vm15, %v2263_v58, %v2264_v59  ;;  %v7072_v59 = vld [vmem:[#allocation2 + $0x74] sm:$0x1] }
  0xdc   : > { %v6073_v20 = vrot.slane %v2175_v15, 9  ;;  %v2289_v21 = vrot.slane %v7937_v8, 5  ;;  %v7942_v45 = vsel %vm7792_vm15, %v2270_v42, %v2271_v37  ;;  %v10125_v63 = vrot.slane %v7810_v60, 5  ;;  %v2177_v37 = vld [vmem:[#allocation2 + $0x84] sm:$0xe] }
  0xdd   : > { %v2284_v1 = vrot.slane %v2282_v29, 4  ;;  %v6074_v12 = vrot.slane %v2176_v31, 9  ;;  %v7952_v58 = vsel %vm7792_vm15, %v6071_v4, %v2268_v13  ;;  %v2285_v56 = vrot.slane %v7072_v59, 5  ;;  %v7967_v4 = vld [vmem:[#allocation2 + $0x6c] sm:$0xf] }
  0xde   : > { %v7948_v62 = vsel %vm7792_vm15, %v2277_v33, %v10125_v63  ;;  %v2291_v0 = vrot.slane %v2289_v21, 4  ;;  %v6087_v60 = vcombine.low %v7931_v44, %v7935_v35  ;;  %v7961_v42 = vsel %vm7792_vm15, %v6072_v52, %v2275_v41  ;;  %v7963_v33 = vld [vmem:[#allocation2 + $0x60] sm:$0xf]  ;;  %v2179_v63 = vld [vmem:[#allocation2 + $0x9c] sm:$0xe] }
  0xdf   : > { %v10126_v41 = vcombine.low %v7829_v7, %v7750_v19  ;;  %v7987_v35 = vsel %vm7792_vm15, %v2284_v1, %v2285_v56  ;;  %v7075_v59 = vld [vmem:[#allocation2 + $0x80] sm:$0x1]  ;;  %v10127_v19 = vcombine.low %v7856_v47, %v7807_v43  ;;  %v7996_v7 = vsel %vm7792_vm15, %v6073_v20, %v2282_v29  ;;  %v2178_v1 = vld [vmem:[#allocation2 + $0x90] sm:$0xe]  ;;  %v2981_v44 = vld [vmem:[#allocation2 + $0xc] sm:$0xf] }
  0xe0   : > { %6769 = vmatmul.mubr.msk.bf16.gmra.mxu0 %vm1660_vm6, %v6084_v30  ;;  %v7974_v30 = vld [vmem:[%s10078_s4 + $0xa] sm:$0x3]  ;;  %v2292_v31 = vrot.slane %v7075_v59, 5  ;;  %v6075_v47 = vrot.slane %v2177_v37, 9  ;;  %v2299_v29 = vrot.slane %v7610_v55, 5  ;;  %v6077_v20 = vrot.slane %v2179_v63, 9 }
  0xe1   : > { %6731 = vmatmul.mubr.msk.bf16.vlgmr.msra.gmra.mxu1 %vm1660_vm6, %v10126_v41  ;;  %6772 = vmatprep.mubr.msk.bf16.mxu0 %vm1660_vm6, %v6085_v11  ;;  %v8000_v11 = vsel %vm7792_vm15, %v6074_v12, %v2289_v21  ;;  %v8002_v41 = vld [vmem:[#allocation2 + $0x78] sm:$0xf]  ;;  %v2180_v59 = vld [vmem:[#allocation2 + $0xa8] sm:$0xe]  ;;  %v2317_v55 = vrot.slane %v7743_v3, 5  ;;  %v2313_v21 = vrot.slane %v7726_v53, 5 }
  0xe2   : > { %6797 = vmatpush3.bf16.msra.mxu1 %v7854_v57  ;;  %6734 = vmatprep.mubr.msk.bf16.mxu1 %vm1660_vm6, %v10127_v19  ;;  %v2296_v57 = vrot.slane %v7604_v32, 5  ;;  %v8009_v43 = vsel %vm7792_vm15, %v2291_v0, %v2292_v31  ;;  %v2310_v19 = vrot.slane %v7721_v34, 5  ;;  %v6076_v0 = vrot.slane %v2178_v1, 9  ;;  %v8033_v56 = vld [vmem:[#allocation2 + $0x10] sm:$0xf] }
  0xe3   : > { %7008 = vmatprep.subr.msk.bf16.mxu1 %vm1709_vm0, %v7974_v30  ;;  %v2303_v31 = vrot.slane %v7625_v39, 5  ;;  %v6078_v37 = vrot.slane %v2180_v59, 9  ;;  %v2319_v52 = vrot.slane %v2317_v55, 4  ;;  %v2320_v1 = vrot.slane %v7739_v25, 5  ;;  %10128 = vst [vmem:[#allocation14_spill] sm:$0xff] %v8033_v56 }
  0xe4   : > { %v2298_v13 = vrot.slane %v2296_v57, 4  ;;  %v2312_v15 = vrot.slane %v2310_v19, 4  ;;  %v8028_v12 = vsel %vm7792_vm15, %v6077_v20, %v2310_v19  ;;  %v2324_v25 = vrot.slane %v7835_v38, 5  ;;  %v8096_v3 = vld [vmem:[#allocation2 + $0x28] sm:$0xf] }
  0xe5   : > { %v8045_v20 = vsel %vm7792_vm15, %v6078_v37, %v2317_v55  ;;  %v8059_v2 = vsel %vm7792_vm15, %v2319_v52, %v2320_v1  ;;  %v10129_v37 = vcombine.low %v7561_v10, %v7569_v28  ;;  %v8067_v17 = vsel %vm7792_vm15, %v6075_v47, %v2296_v57  ;;  %v8073_v52 = vld [vmem:[#allocation2 + $0x1c] sm:$0xf]  ;;  %v2987_v1 = vld [vmem:[#allocation2 + $0x24] sm:$0xf] }
  0xe6   : > { %v8041_v53 = vsel %vm7792_vm15, %v2312_v15, %v2313_v21  ;;  %v3033_v15 = vshll.u32 %v2981_v44, 16  ;;  %v2984_v21 = vld [vmem:[#allocation2 + $0x18] sm:$0xf]  ;;  %v2306_v50 = vrot.slane %v7631_v48, 5  ;;  %10130 = vst [vmem:[#allocation15_spill] sm:$0xff] %v8073_v52  ;;  %v3043_v55 = vshrl.u32 %v8033_v56, 16 }
  0xe7   : > { %v8082_v57 = vsel %vm7792_vm15, %v6076_v0, %v2303_v31  ;;  %v2181_v48 = vld [vmem:[#allocation2 + $0xb4] sm:$0xe]  ;;  %v3057_v19 = vshll.u32 %v2984_v21, 16  ;;  %v2305_v59 = vrot.slane %v2303_v31, 4  ;;  %v3063_v0 = vshll.u32 %v8073_v52, 16 }
  0xe8   : > { %6773 = vmatmul.mubr.msk.bf16.gmra.mxu0 %vm1660_vm6, %v6086_v26  ;;  %v3030_v26 = vshrl.u32 %v2981_v44, 16  ;;  %v8077_v44 = vsel %vm7792_vm15, %v2298_v13, %v2299_v29  ;;  %v3035_v28 = vrot.slane %v3033_v15, 5  ;;  %v3045_v13 = vrot.slane %v3043_v55, 4 }
  0xe9   : > { %6735 = vmatmul.mubr.msk.bf16.gmra.mxu1 %vm1660_vm6, %v6035_v54  ;;  %6776 = vmatprep.mubr.msk.bf16.mxu0 %vm1660_vm6, %v6087_v60  ;;  %v3039_v60 = vshll.u32 %v8033_v56, 16  ;;  %v2326_v54 = vrot.slane %v2324_v25, 4  ;;  %v8090_v56 = vld [vmem:[#allocation2 + $0x20] sm:$0x1]  ;;  %v6079_v38 = vrot.slane %v2181_v48, 9  ;;  %v3049_v55 = vshll.u32 %v2983_v27, 16 }
  0xea   : > { %6738 = vmatprep.mubr.msk.bf16.mxu1 %vm1660_vm6, %v10129_v37  ;;  %v3032_v10 = vrot.slane %v3030_v26, 4  ;;  %v3054_v37 = vshrl.u32 %v2984_v21, 16  ;;  %v10131_v26 = vld [vmem:[#allocation8_spill] sm:$0xff]  ;;  %v2327_v21 = vrot.slane %v10132_v6, 5  ;;  %v3059_v29 = vrot.slane %v3057_v19, 5 }
  0xeb   : > { %v8084_v47 = vrot.slane %v3039_v60, 5  ;;  %v3067_v60 = vshrl.u32 %v8073_v52, 16  ;;  %v3081_v61 = vshll.u32 %v2987_v1, 16  ;;  %v10134_v52 = vcombine.low %v7654_v46, %v7658_v49 }
  0xec   : > { %v3036_v63 = vor.u32 %v3035_v28, %v3032_v10  ;;  %v3078_v10 = vshrl.u32 %v2987_v1, 16  ;;  %v10133_v28 = vcombine.low %v7952_v58, %v7942_v45  ;;  %v3056_v15 = vrot.slane %v3054_v37, 4 }
  0xed   : > { %v3046_v31 = vor.u32 %v3045_v13, %v8084_v47  ;;  %v10135_v6 = vcombine.low %v7961_v42, %v7948_v62  ;;  %v8112_v48 = vsel %vm7792_vm15, %v2305_v59, %v2306_v50  ;;  %v8116_v45 = vsel %vm7792_vm15, %v2326_v54, %v2327_v21  ;;  %v8135_v13 = vld [vmem:[#allocation2 + $0x34] sm:$0xf] }
  0xee   : > { %v3037_v58 = vrot.slane %v3036_v63, 4  ;;  %v3073_v19 = vshll.u32 %v8090_v56, 16  ;;  %v10136_v46 = vcombine.low %v7680_v23, %v7684_v51  ;;  %v8123_v62 = vrot.slane %v3063_v0, 5 }
  0xef   : > { %v3047_v49 = vrot.slane %v3046_v31, 4  ;;  %v3069_v42 = vrot.slane %v3067_v60, 4  ;;  %v3087_v27 = vshll.u32 %v8096_v3, 16  ;;  %v8128_v59 = vsel %vm7792_vm15, %v6079_v38, %v2324_v25 }
  0xf0   : > { %6777 = vmatmul.mubr.msk.bf16.gmra.mxu0 %vm1660_vm6, %v10133_v28  ;;  %v3080_v50 = vrot.slane %v3078_v10, 4  ;;  %v3083_v54 = vrot.slane %v3081_v61, 5  ;;  %v3091_v63 = vshrl.u32 %v8096_v3, 16  ;;  %v6093_v23 = vcombine.low %v8082_v57, %v8112_v48  ;;  %v8142_v61 = vld [vmem:[#allocation2 + $0x2c] sm:$0x1] }
  0xf1   : > { %6739 = vmatmul.mubr.msk.bf16.gmra.mxu1 %vm1660_vm6, %v10134_v52  ;;  %6780 = vmatprep.mubr.msk.bf16.mxu0 %vm1660_vm6, %v10135_v6  ;;  %v2990_v52 = vld [vmem:[#allocation2 + $0x30] sm:$0xf]  ;;  %v6096_v51 = vcombine.low %v8128_v59, %v8116_v45  ;;  %v3051_v1 = vrot.slane %v3049_v55, 5  ;;  %v3060_v37 = vor.u32 %v3059_v29, %v3056_v15  ;;  %v3042_v38 = vsel %vm7208_vm5, %v3037_v58, %v8084_v47  ;;  %v2993_v15 = vld [vmem:[#allocation2 + $0x3c] sm:$0xf] }
  0xf2   : > { %6742 = vmatprep.mubr.msk.bf16.mxu1 %vm1660_vm6, %v10136_v46  ;;  %v8140_v25 = vrot.slane %v3073_v19, 5  ;;  %v8144_v0 = vrot.slane %v3087_v27, 5  ;;  %v3093_v60 = vrot.slane %v3091_v63, 4  ;;  %v3070_v31 = vor.u32 %v3069_v42, %v8123_v62  ;;  %v8152_v58 = vld [vmem:[#allocation2 + $0x40] sm:$0xf] }
  0xf3   : > { %v3052_v21 = vsel %vm7208_vm5, %v3047_v49, %v3051_v1  ;;  %v3102_v10 = vshrl.u32 %v2990_v52, 16  ;;  %v3105_v29 = vshll.u32 %v2990_v52, 16  ;;  %v3084_v28 = vor.u32 %v3083_v54, %v3080_v50  ;;  %v3002_v48 = vld [vmem:[#allocation2 + $0x60] sm:$0xf] }
  0xf4   : > { %v3094_v55 = vor.u32 %v3093_v60, %v8144_v0  ;;  %v3111_v47 = vshll.u32 %v8135_v13, 16  ;;  %v3115_v6 = vshrl.u32 %v8135_v13, 16  ;;  %v10137_v19 = vcombine.low %v7996_v7, %v7987_v35  ;;  %v8171_v7 = vld [vmem:[#allocation2 + $0x38] sm:$0x1]  ;;  %v2996_v60 = vld [vmem:[#allocation2 + $0x48] sm:$0xf] }
  0xf5   : > { %v3061_v46 = vrot.slane %v3060_v37, 4  ;;  %v3097_v49 = vshll.u32 %v8142_v61, 16  ;;  %v3104_v42 = vrot.slane %v3102_v10, 4  ;;  %v3107_v27 = vrot.slane %v3105_v29, 5 }
  0xf6   : > { %v10138_v50 = vcombine.low %v7763_v5, %v7774_v18  ;;  %v10139_v54 = vcombine.low %v8000_v11, %v8009_v43  ;;  %v8169_v35 = vsel %vm1709_vm0, %v7974_v30, 0  ;;  %v8173_v63 = vrot.slane %v3111_v47, 5 }
  0xf7   : > { %v3117_v52 = vrot.slane %v3115_v6, 4  ;;  %v3126_v1 = vshrl.u32 %v2993_v15, 16  ;;  %v10140_v5 = vcombine.low %v7963_v33, %v7906_v36  ;;  %v8179_v18 = vcombine.low %v3042_v38, %v3052_v21 }
  0xf8   : > { %6781 = vmatmul.mubr.msk.bf16.gmra.mxu0 %vm1660_vm6, %v10137_v19  ;;  %v3071_v11 = vrot.slane %v3070_v31, 4  ;;  %v3129_v43 = vshll.u32 %v2993_v15, 16  ;;  %v3135_v37 = vshll.u32 %v8152_v58, 16  ;;  %v3085_v30 = vrot.slane %v3084_v28, 4  ;;  %v8183_v19 = vld [vmem:[#allocation2 + $0x4c] sm:$0xf] }
  0xf9   : > { %6743 = vmatmul.mubr.msk.bf16.gmra.mxu1 %vm1660_vm6, %v10138_v50  ;;  %6784 = vmatprep.mubr.msk.bf16.mxu0 %vm1660_vm6, %v10139_v54  ;;  %v3095_v10 = vrot.slane %v3094_v55, 4  ;;  %v3108_v29 = vor.u32 %v3107_v27, %v3104_v42  ;;  %v3139_v47 = vshrl.u32 %v8152_v58, 16  ;;  %v3118_v6 = vor.u32 %v3117_v52, %v8173_v63  ;;  %v2999_v54 = vld [vmem:[#allocation2 + $0x54] sm:$0xf] }
  0xfa   : > { %6746 = vmatprep.mubr.msk.bf16.mxu1 %vm1660_vm6, %v10140_v5  ;;  %v3128_v50 = vrot.slane %v3126_v1, 4  ;;  %v3131_v36 = vrot.slane %v3129_v43, 5  ;;  %v8186_v33 = vrot.slane %v3135_v37, 5  ;;  %v3066_v38 = vsel %vm7208_vm5, %v3061_v46, %v8123_v62  ;;  %v8203_v1 = vld [vmem:[#allocation2 + $0x58] sm:$0xf] }
  0xfb   : > { %v3099_v21 = vrot.slane %v3097_v49, 5  ;;  %v3141_v31 = vrot.slane %v3139_v47, 4  ;;  %v3150_v15 = vshrl.u32 %v2996_v60, 16  ;;  %v3076_v28 = vsel %vm7208_vm5, %v3071_v11, %v8140_v25  ;;  %v8209_v11 = vld [vmem:[#allocation2 + $0x44] sm:$0x1] }
  0xfc   : > { %v3121_v55 = vshll.u32 %v8171_v7, 16  ;;  %v3153_v42 = vshll.u32 %v2996_v60, 16  ;;  %v3159_v27 = vshll.u32 %v8183_v19, 16  ;;  %v3090_v52 = vsel %vm7208_vm5, %v3085_v30, %v8144_v0 }
  0xfd   : > { %v3100_v62 = vsel %vm7208_vm5, %v3095_v10, %v3099_v21  ;;  %v8201_v46 = vrot.slane %v3108_v29, 4  ;;  %v3152_v49 = vrot.slane %v3150_v15, 4  ;;  %v10141_v25 = vcombine.low %v8067_v17, %v8077_v44 }
  0xfe   : > { %v3119_v5 = vrot.slane %v3118_v6, 4  ;;  %v3132_v43 = vor.u32 %v3131_v36, %v3128_v50  ;;  %v3142_v37 = vor.u32 %v3141_v31, %v8186_v33  ;;  %v3155_v0 = vrot.slane %v3153_v42, 5  ;;  %v8237_v50 = vld [vmem:[#allocation2 + $0x50] sm:$0x1] }
  0xff   : > { %v10142_v60 = vcombine.low %v7967_v4, %v7926_v16  ;;  %v8220_v17 = vcombine.low %v3066_v38, %v3076_v28  ;;  %v8222_v44 = vrot.slane %v3159_v27, 5  ;;  %v3163_v30 = vshrl.u32 %v8183_v19, 16 }
 0x100   : > { %6785 = vmatmul.mubr.msk.bf16.gmra.mxu0 %vm1660_vm6, %v10141_v25  ;;  %v3174_v10 = vshrl.u32 %v2999_v54, 16  ;;  %v10143_v29 = vcombine.low %v8002_v41, %v7937_v8  ;;  %v8229_v16 = vcombine.low %v3090_v52, %v3100_v62  ;;  %v3123_v4 = vrot.slane %v3121_v55, 5  ;;  %v8239_v41 = vld [vmem:[#allocation2 + $0x64] sm:$0xf] }
 0x101   : > { %6747 = vmatmul.mubr.msk.bf16.gmra.mxu1 %vm1660_vm6, %v10142_v60  ;;  %6788 = vmatprep.mubr.msk.bf16.mxu0 %vm1660_vm6, %v6093_v23  ;;  %v3177_v47 = vshll.u32 %v2999_v54, 16  ;;  %v3183_v57 = vshll.u32 %v8203_v1, 16  ;;  %v3114_v23 = vsel %vm7208_vm5, %v8201_v46, %v8173_v63  ;;  %v3145_v6 = vshll.u32 %v8209_v11, 16  ;;  %v3005_v46 = vld [vmem:[#allocation2 + $0x6c] sm:$0xf] }
 0x102   : > { %6750 = vmatprep.mubr.msk.bf16.mxu1 %vm1660_vm6, %v10143_v29  ;;  %v3156_v36 = vor.u32 %v3155_v0, %v3152_v49  ;;  %v3165_v8 = vrot.slane %v3163_v30, 4  ;;  %v3124_v38 = vsel %vm7208_vm5, %v3119_v5, %v3123_v4  ;;  %v3133_v21 = vrot.slane %v3132_v43, 4  ;;  %v8249_v5 = vld [vmem:[#allocation2 + $0x5c] sm:$0x1] }
 0x103   : > { %v3143_v31 = vrot.slane %v3142_v37, 4  ;;  %v3176_v15 = vrot.slane %v3174_v10, 4  ;;  %v3179_v55 = vrot.slane %v3177_v47, 5  ;;  %v3187_v42 = vshrl.u32 %v8203_v1, 16 }
 0x104   : > { %v3166_v28 = vor.u32 %v3165_v8, %v8222_v44  ;;  %v3198_v63 = vshrl.u32 %v3002_v48, 16  ;;  %v3169_v27 = vshll.u32 %v8237_v50, 16  ;;  %v8246_v54 = vrot.slane %v3183_v57, 5 }
 0x105   : > { %v3201_v52 = vshll.u32 %v3002_v48, 16  ;;  %v3207_v62 = vshll.u32 %v8239_v41, 16  ;;  %v3147_v49 = vrot.slane %v3145_v6, 5  ;;  %v3157_v25 = vrot.slane %v3156_v36, 4  ;;  %v8271_v48 = vld [vmem:[#allocation2 + $0x70] sm:$0xf] }
 0x106   : > { %v3189_v43 = vrot.slane %v3187_v42, 4  ;;  %v3200_v37 = vrot.slane %v3198_v63, 4  ;;  %v10144_v0 = vcombine.low %v8028_v12, %v8041_v53  ;;  %v3167_v60 = vrot.slane %v3166_v28, 4  ;;  %v3008_v42 = vld [vmem:[#allocation2 + $0x78] sm:$0xf] }
 0x107   : > { %v3203_v30 = vrot.slane %v3201_v52, 5  ;;  %v8255_v10 = vrot.slane %v3207_v62, 5  ;;  %v3211_v29 = vshrl.u32 %v8239_v41, 16  ;;  %v10145_v4 = vcombine.low %v7596_v14, %v7604_v32 }
 0x108   : > { %6789 = vmatmul.mubr.msk.bf16.gmra.mxu0 %vm1660_vm6, %v10144_v0  ;;  %v10146_v47 = vcombine.low %v8045_v20, %v8059_v2  ;;  %v3138_v12 = vsel %vm7208_vm5, %v3133_v21, %v8186_v33  ;;  %v3148_v53 = vsel %vm7208_vm5, %v3143_v31, %v3147_v49  ;;  %v3180_v57 = vor.u32 %v3179_v55, %v3176_v15  ;;  %v8284_v21 = vld [vmem:[#allocation2 + $0x68] sm:$0x1]  ;;  %v8296_v49 = vld [vmem:[#allocation2 + $0x74] sm:$0x1] }
 0x109   : > { %6751 = vmatmul.mubr.msk.bf16.gmra.mxu1 %vm1660_vm6, %v10145_v4  ;;  %v3222_v6 = vshrl.u32 %v3005_v46, 16  ;;  %v10147_v14 = vcombine.low %v10131_v26, %v7625_v39  ;;  %v3171_v32 = vrot.slane %v3169_v27, 5  ;;  %v3190_v20 = vor.u32 %v3189_v43, %v8246_v54 }
 0x10a   : > { %6792 = vmatprep.mubr.msk.bf16.mxu0 %vm1660_vm6, %v10146_v47  ;;  %v3193_v2 = vshll.u32 %v8249_v5, 16  ;;  %v3213_v36 = vrot.slane %v3211_v29, 4  ;;  %v8279_v8 = vcombine.low %v3114_v23, %v3124_v38  ;;  %v3162_v33 = vsel %vm7208_vm5, %v3157_v25, %v8222_v44  ;;  %v8293_v44 = vld [vmem:[#allocation2 + $0x7c] sm:$0xf] }
 0x10b   : > { %6754 = vmatprep.mubr.msk.bf16.mxu1 %vm1660_vm6, %v10147_v14  ;;  %v3204_v31 = vor.u32 %v3203_v30, %v3200_v37  ;;  %v3225_v15 = vshll.u32 %v3005_v46, 16  ;;  %v3172_v39 = vsel %vm7208_vm5, %v3167_v60, %v3171_v32  ;;  %v3231_v28 = vshll.u32 %v8271_v48, 16  ;;  %v3011_v30 = vld [vmem:[#allocation2 + $0x84] sm:$0xf]  ;;  %v10150_v32 = vld [vmem:[#allocation10_spill] sm:$0xff] }
 0x10c   : > { %v3214_v26 = vor.u32 %v3213_v36, %v8255_v10  ;;  %v3235_v55 = vshrl.u32 %v8271_v48, 16  ;;  %v8291_v23 = vcombine.low %v3138_v12, %v3148_v53  ;;  %v3181_v38 = vrot.slane %v3180_v57, 4  ;;  %v10149_v14 = vld [vmem:[#allocation9_spill] sm:$0xff] }
 0x10d   : > { %v3224_v63 = vrot.slane %v3222_v6, 4  ;;  %v3227_v27 = vrot.slane %v3225_v15, 5  ;;  %v3191_v52 = vrot.slane %v3190_v20, 4  ;;  %v3195_v62 = vrot.slane %v3193_v2, 5  ;;  %v8320_v6 = vld [vmem:[#allocation2 + $0x88] sm:$0xf] }
 0x10e   : > { %v3217_v46 = vshll.u32 %v8284_v21, 16  ;;  %v8298_v25 = vrot.slane %v3231_v28, 5  ;;  %v8300_v43 = vcombine.low %v3162_v33, %v3172_v39  ;;  %v3205_v37 = vrot.slane %v3204_v31, 4  ;;  %v8329_v20 = vld [vmem:[#allocation2 + $0x80] sm:$0x1] }
 0x10f   : > { %v3237_v0 = vrot.slane %v3235_v55, 4  ;;  %v3246_v60 = vshrl.u32 %v3008_v42, 16  ;;  %v3215_v29 = vrot.slane %v3214_v26, 4  ;;  %v3249_v4 = vshll.u32 %v3008_v42, 16  ;;  %v3014_v55 = vld [vmem:[#allocation2 + $0x90] sm:$0xf] }
 0x110   : > { %6793 = vmatmul.mubr.msk.bf16.gmra.mxu0 %vm1660_vm6, %v6096_v51  ;;  %v3255_v47 = vshll.u32 %v8293_v44, 16  ;;  %v3259_v12 = vshrl.u32 %v8293_v44, 16  ;;  %v10148_v53 = vcombine.low %v7724_v9, %v7721_v34  ;;  %v4341_v57 = vsel %vm1709_vm0, %v7888_v40, 0 }
 0x111   : > { %6832 = vmatprep.mubr.msk.bf16.mxu0 %vm1660_vm6, %v8179_v18  ;;  %v3186_v45 = vsel %vm7208_vm5, %v3181_v38, %v8246_v54  ;;  %v3228_v59 = vor.u32 %v3227_v27, %v3224_v63  ;;  %v3238_v51 = vor.u32 %v3237_v0, %v8298_v25  ;;  %v10151_v34 = vcombine.low %v10149_v14, %v10150_v32  ;;  %v7024_v0 = vld [vmem:[#allocation2 + $0xc] sm:$0xff]  }
 0x112   : > { %6755 = vmatmul.mubr.msk.bf16.gmra.mxu1 %vm1660_vm6, %v10148_v53  ;;  %v3196_v9 = vsel %vm7208_vm5, %v3191_v52, %v3195_v62  ;;  %v3219_v18 = vrot.slane %v3217_v46, 5  ;;  %v3241_v40 = vshll.u32 %v8296_v49, 16  ;;  %v3270_v2 = vshrl.u32 %v3011_v30, 16  ;;  %v8341_v52 = vld [vmem:[#allocation2 + $0x94] sm:$0xf] }
 0x113   : > { %6758 = vmatprep.mubr.msk.bf16.mxu1 %vm1660_vm6, %v10151_v34  ;;  %v3210_v54 = vsel %vm7208_vm5, %v3205_v37, %v8255_v10  ;;  %v3248_v36 = vrot.slane %v3246_v60, 4  ;;  %v3251_v33 = vrot.slane %v3249_v4, 5  ;;  %v3273_v31 = vshll.u32 %v3011_v30, 16  ;;  %v8345_v30 = vld [vmem:[#allocation2 + $0x8c] sm:$0x1]  ;;  %v10153_v32 = vld [vmem:[#allocation11_spill] sm:$0xff] }
 0x114   : > { %v3220_v15 = vsel %vm7208_vm5, %v3215_v29, %v3219_v18  ;;  %v8336_v39 = vrot.slane %v3255_v47, 5  ;;  %v3261_v26 = vrot.slane %v3259_v12, 4  ;;  %v3279_v28 = vshll.u32 %v8320_v6, 16  ;;  %v8358_v14 = vld [vmem:[%s10078_s4 + $0x10] sm:$0x3]  ;;  %v10154_v34 = vld [vmem:[#allocation12_spill] sm:$0xff] }
 0x115   : > { %v3229_v42 = vrot.slane %v3228_v59, 4  ;;  %v3239_v38 = vrot.slane %v3238_v51, 4  ;;  %v3265_v63 = vshll.u32 %v8329_v20, 16  ;;  %v3283_v27 = vshrl.u32 %v8320_v6, 16  ;;  %v3017_v51 = vld [vmem:[#allocation2 + $0x9c] sm:$0xf] }
 0x116   : > { %v8343_v10 = vcombine.low %v3186_v45, %v3196_v9  ;;  %v3243_v62 = vrot.slane %v3241_v40, 5  ;;  %v3272_v46 = vrot.slane %v3270_v2, 4  ;;  %v3275_v37 = vrot.slane %v3273_v31, 5  ;;  %10152 = vst [vmem:[#allocation8_spill] sm:$0xff] %v8358_v14 }
 0x117   : > { %v3252_v60 = vor.u32 %v3251_v33, %v3248_v36  ;;  %v8347_v29 = vrot.slane %v3279_v28, 5  ;;  %v3285_v4 = vrot.slane %v3283_v27, 4  ;;  %v3294_v47 = vshrl.u32 %v3014_v55, 16  ;;  %v3020_v27 = vld [vmem:[#allocation2 + $0xa8] sm:$0xf] }
 0x118   : > { %6833 = vmatmul.mubr.msk.bf16.vlgmr.msra.gmra.mxu0 %vm1660_vm6, %v8220_v17  ;;  %v8351_v12 = vcombine.low %v3210_v54, %v3220_v15  ;;  %v3262_v53 = vor.u32 %v3261_v26, %v8336_v39  ;;  %v3297_v45 = vshll.u32 %v3014_v55, 16  ;;  %v3303_v59 = vshll.u32 %v8341_v52, 16  ;;  %v8373_v54 = vld [vmem:[#allocation2 + $0xa0] sm:$0xf]  ;;  %v8381_v26 = vld [vmem:[#allocation2 + $0x98] sm:$0x1] }
 0x119   : > { %v10155_v9 = vcombine.low %v10153_v32, %v10154_v34  ;;  %6836 = vmatprep.mubr.msk.bf16.mxu0 %vm1660_vm6, %v8229_v16  ;;  %v3234_v17 = vsel %vm7208_vm5, %v3229_v42, %v8298_v25  ;;  %v3244_v18 = vsel %vm7208_vm5, %v3239_v38, %v3243_v62  ;;  %v8371_v40 = vrot.slane %v3265_v63, 5  ;;  %6899 = vmatpush3.bf16.msra.mxu0 %v4341_v57 }
 0x11a   : > { %v3296_v2 = vrot.slane %v3294_v47, 4  ;;  %v3276_v36 = vor.u32 %v3275_v37, %v3272_v46  ;;  %v3289_v33 = vshll.u32 %v8345_v30, 16  ;;  %v3299_v31 = vrot.slane %v3297_v45, 5  ;;  %7011 = vmatprep.subr.msk.bf16.mxu0 %vm1709_vm0, %v8358_v14  ;;  %v8455_v14 = vld [vmem:[#allocation2 + $0xbc] sm:$0x1] }
 0x11b   : > { %6759 = vmatmul.mubr.msk.bf16.gmra.mxu1 %vm1660_vm6, %v10155_v9  ;;  %v3307_v16 = vshrl.u32 %v8341_v52, 16  ;;  %v8378_v15 = vrot.slane %v3252_v60, 4  ;;  %v3286_v25 = vor.u32 %v3285_v4, %v8347_v29  ;;  %v3318_v28 = vshrl.u32 %v3017_v51, 16  ;;  %v8391_v60 = vld [vmem:[#allocation2 + $0xac] sm:$0xf] }
 0x11c   : > { %6798 = vmatprep.mubr.msk.bf16.mxu1 %vm1660_vm6, %v7024_v0  ;;  %v3321_v55 = vshll.u32 %v3017_v51, 16  ;;  %v8385_v42 = vrot.slane %v3262_v53, 4  ;;  %v8387_v57 = vrot.slane %v3303_v59, 5  ;;  %v3327_v63 = vshll.u32 %v8373_v54, 16  ;;  %10156 = vst [vmem:[#allocation13_spill] sm:$0xff] %v8391_v60  ;;  %v7025_v51 = vld [vmem:[#allocation2 + $0x18] sm:$0xff]  }
 0x11d   : > { %v3309_v38 = vrot.slane %v3307_v16, 4  ;;  %v3300_v62 = vor.u32 %v3299_v31, %v3296_v2  ;;  %v3320_v46 = vrot.slane %v3318_v28, 4  ;;  %v3331_v0 = vshrl.u32 %v8373_v54, 16  ;;  %v8399_v53 = vld [vmem:[#allocation2 + $0xa4] sm:$0x1] }
 0x11e   : > { %v3323_v37 = vrot.slane %v3321_v55, 5  ;;  %v8393_v4 = vcombine.low %v3234_v17, %v3244_v18  ;;  %v8395_v47 = vrot.slane %v3276_v36, 4  ;;  %v8397_v45 = vrot.slane %v3289_v33, 5  ;;  %v7026_v31 = vld [vmem:[#allocation2 + $0x24] sm:$0xff]   ;;  %v8417_v16 = vld [vmem:[%s10078_s4 + $0xe] sm:$0x3] }
 0x11f   : > { %v8401_v59 = vrot.slane %v3327_v63, 5  ;;  %v8403_v32 = vrot.slane %v3286_v25, 4  ;;  %v3313_v34 = vshll.u32 %v8381_v26, 16  ;;  %v3333_v9 = vrot.slane %v3331_v0, 4  ;;  %10157 = vst [vmem:[#allocation9_spill] sm:$0xff] %v8417_v16 }
 0x120   : > { %v3342_v2 = vshrl.u32 %v3020_v27, 16  ;;  %6837 = vmatmul.mubr.msk.bf16.gmra.mxu0 %vm1660_vm6, %v8279_v8  ;;  %v3310_v18 = vor.u32 %v3309_v38, %v8387_v57  ;;  %v3345_v36 = vshll.u32 %v3020_v27, 16  ;;  %v3351_v33 = vshll.u32 %v8391_v60, 16  ;;  %v3023_v38 = vld [vmem:[#allocation2 + $0xb4] sm:$0xf] }
 0x121   : > { %6840 = vmatprep.mubr.msk.bf16.mxu0 %vm1660_vm6, %v8291_v23  ;;  %v3268_v8 = vsel %vm7208_vm5, %v8385_v42, %v8371_v40  ;;  %v3301_v25 = vrot.slane %v3300_v62, 4  ;;  %v3324_v28 = vor.u32 %v3323_v37, %v3320_v46  ;;  %v3337_v55 = vshll.u32 %v8399_v53, 16 }
 0x122   : > { %v3334_v63 = vor.u32 %v3333_v9, %v8401_v59  ;;  %v3344_v27 = vrot.slane %v3342_v2, 4  ;;  %v3347_v0 = vrot.slane %v3345_v36, 5  ;;  %v3355_v23 = vshrl.u32 %v8391_v60, 16 }
 0x123   : > { %6799 = vmatmul.mubr.msk.bf16.vlgmr.msra.gmra.mxu1 %vm1660_vm6, %v7025_v51  ;;  %v8431_v51 = vld [vmem:[#allocation2 + $0xb8] sm:$0xf]  ;;  %v3282_v40 = vsel %vm7208_vm5, %v8395_v47, %v8347_v29  ;;  %v3315_v42 = vrot.slane %v3313_v34, 5  ;;  %v8441_v62 = vrot.slane %v3351_v33, 5  ;;  %v3311_v46 = vrot.slane %v3310_v18, 4 }
 0x124   : > { %6865 = vmatpush3.bf16.msra.mxu1 %v8169_v35  ;;  %6802 = vmatprep.mubr.msk.bf16.mxu1 %vm1660_vm6, %v7026_v31  ;;  %v3292_v35 = vsel %vm7208_vm5, %v8403_v32, %v8397_v45  ;;  %v3357_v37 = vrot.slane %v3355_v23, 4  ;;  %v3366_v9 = vshrl.u32 %v3023_v38, 16  ;;  %v3369_v2 = vshll.u32 %v3023_v38, 16  ;;  %v8448_v31 = vld [vmem:[#allocation2 + $0xb0] sm:$0x1]  ;;  %v6525_v34 = vld [vmem:[%s7225_s13 + $0x78] sm:$0xff]  }
 0x125   : > { %7010 = vmatprep.subr.msk.bf16.mxu1 %vm1709_vm0, %v8417_v16  ;;  %v3306_v29 = vsel %vm7208_vm5, %v3301_v25, %v8387_v57  ;;  %v3325_v47 = vrot.slane %v3324_v28, 4  ;;  %v3375_v45 = vshll.u32 %v8431_v51, 16  ;;  %v3379_v32 = vshrl.u32 %v8431_v51, 16  ;;  %v6540_v18 = vld [vmem:[%s7230_s16 + $0x78] sm:$0xff]   ;;  %v7027_v23 = vld [vmem:[#allocation2 + $0x30] sm:$0xff]  }
 0x126   : > { %v3335_v36 = vrot.slane %v3334_v63, 4  ;;  %v3339_v33 = vrot.slane %v3337_v55, 5  ;;  %v3348_v17 = vor.u32 %v3347_v0, %v3344_v27  ;;  %v3368_v16 = vrot.slane %v3366_v9, 4  ;;  %v7028_v28 = vld [vmem:[#allocation2 + $0x3c] sm:$0xff]  }
 0x127   : > { %v3358_v38 = vor.u32 %v3357_v37, %v8441_v62  ;;  %v3371_v60 = vrot.slane %v3369_v2, 5  ;;  %v8457_v57 = vrot.slane %v3375_v45, 5  ;;  %v3381_v25 = vrot.slane %v3379_v32, 4  ;;  %v3708_v32 = vld [vmem:[#allocation2 + $0x18] sm:$0xe] }
 0x128   : > { %6841 = vmatmul.mubr.msk.bf16.gmra.mxu0 %vm1660_vm6, %v8300_v43  ;;  %v3316_v63 = vsel %vm7208_vm5, %v3311_v46, %v3315_v42  ;;  %v3361_v55 = vshll.u32 %v8448_v31, 16  ;;  %v6445_v27 = vunpack.c.l.bf16 %v6525_v34  ;;  %v6446_v0 = vunpack.c.h.bf16 %v6525_v34 }
 0x129   : > { %6844 = vmatprep.mubr.msk.bf16.mxu0 %vm1660_vm6, %v8343_v10  ;;  %v3330_v37 = vsel %vm7208_vm5, %v3325_v47, %v8401_v59  ;;  %v3372_v9 = vor.u32 %v3371_v60, %v3368_v16  ;;  %v3382_v2 = vor.u32 %v3381_v25, %v8457_v57  ;;  %v6509_v43 = vunpack.c.l.bf16 %v6540_v18 }
 0x12a   : > { %v3340_v42 = vsel %vm7208_vm5, %v3335_v36, %v3339_v33  ;;  %v8474_v46 = vrot.slane %v3348_v17, 4  ;;  %v3385_v45 = vshll.u32 %v8455_v14, 16  ;;  %v6510_v10 = vunpack.c.h.bf16 %v6540_v18 }
 0x12b   : > { %6803 = vmatmul.mubr.msk.bf16.gmra.mxu1 %vm1660_vm6, %v7027_v23  ;;  %v10158_v60 = vsel %vm7208_vm5, %v8378_v15, %v8336_v39  ;;  %v8484_v16 = vrot.slane %v3358_v38, 4  ;;  %v8486_v47 = vrot.slane %v3372_v9, 4  ;;  %v482_v34 = vadd.f32 %v6509_v43, %v6445_v27  ;;  %v547_v23 = vld [vmem:[%s7304_s20 + $0xf0] sm:$0xff]  ;;  %v10159_v39 = vld [vmem:[#allocation4_spill] sm:$0xff]  ;;  %v7029_v27 = vld [vmem:[#allocation2 + $0x48] sm:$0xff]  }
 0x12c   : > { %6806 = vmatprep.mubr.msk.bf16.mxu1 %vm1660_vm6, %v7028_v28  ;;  %v8482_v59 = vcombine.low %v10158_v60, %v3268_v8  ;;  %v8488_v36 = vcombine.low %v3282_v40, %v3292_v35  ;;  %v8490_v17 = vcombine.low %v3306_v29, %v3316_v63  ;;  %v8492_v33 = vrot.slane %v3361_v55, 5  ;;  %v548_v8 = vld [vmem:[%s7304_s20 + $0xf8] sm:$0xff]  ;;  %v3709_v60 = vld [vmem:[#allocation2 + $0x24] sm:$0xe] }
 0x12d   : > { %v483_v18 = vadd.f32 %v6510_v10, %v6446_v0  ;;  %v8495_v25 = vcombine.low %v3330_v37, %v3340_v42  ;;  %v8497_v28 = vrot.slane %v3382_v2, 4  ;;  %v515_v15 = vmul.f32 %v10159_v39, %v482_v34  ;;  %v10160_v63 = vld [vmem:[#allocation15_spill] sm:$0xff]  ;;  %v10161_v2 = vld [vmem:[#allocation14_spill] sm:$0xff]  ;;  %v7031_v37 = vld [vmem:[#allocation2 + $0x60] sm:$0xff]  }
 0x12e   : > { %v6180_v38 = vrot.slane %v3708_v32, 9  ;;  %v3354_v40 = vsel %vm7208_vm5, %v8474_v46, %v8441_v62  ;;  %v8505_v35 = vrot.slane %v3385_v45, 5  ;;  %v3780_v55 = vrot.slane %v10160_v63, 5  ;;  %v3710_v42 = vld [vmem:[#allocation2 + $0x30] sm:$0xe]  ;;  %v7030_v45 = vld [vmem:[#allocation2 + $0x54] sm:$0xff]  }
 0x12f   : > { %v516_v29 = vmul.f32 %v10159_v39, %v483_v18  ;;  %v3364_v0 = vsel %vm7208_vm5, %v8484_v16, %v8492_v33  ;;  %v579_v9 = vadd.f32 %v547_v23, %v515_v15  ;;  %v3783_v34 = vrot.slane %v8090_v56, 5  ;;  %v1171_v23 = vld [vmem:[#allocation2 + $0xc8] sm:$0x1] }
 0x130   : > { %6845 = vmatmul.mubr.msk.bf16.gmra.mxu0 %vm1660_vm6, %v8351_v12  ;;  %v3782_v32 = vrot.slane %v3780_v55, 4  ;;  %v6181_v18 = vrot.slane %v3709_v60, 9  ;;  %v8530_v15 = vsel %vm7792_vm15, %v6180_v38, %v3780_v55  ;;  %v3787_v12 = vrot.slane %v8096_v3, 5  ;;  %v3711_v55 = vld [vmem:[#allocation2 + $0x3c] sm:$0xe] }
 0x131   : > { %v580_v10 = vadd.f32 %v548_v8, %v516_v29  ;;  %6848 = vmatprep.mubr.msk.bf16.mxu0 %vm1660_vm6, %v8393_v4  ;;  %v6381_v39 = vpack.c.bf16 %v579_v9, %v579_v9  ;;  %v6182_v4 = vrot.slane %v3710_v42, 9  ;;  %v3794_v60 = vrot.slane %v8135_v13, 5 }
 0x132   : > { %v8536_v8 = vsel %vm7792_vm15, %v3782_v32, %v3783_v34  ;;  %v3790_v38 = vrot.slane %v8142_v61, 5  ;;  %v1167_v34 = vld [vmem:[#allocation2 + $0xc0] sm:$0xf]  ;;  %v3801_v43 = vrot.slane %v8152_v58, 5  ;;  %v10165_v16 = vsel %vm7208_vm5, %v8497_v28, %v8505_v35 }
 0x133   : > { %6807 = vmatmul.mubr.msk.bf16.gmra.mxu1 %vm1660_vm6, %v7029_v27  ;;  %v6382_v56 = vpack.c.bf16 %v580_v10, %v580_v10  ;;  %v992_v29 = vshrl.u32 %v6381_v39, 16  ;;  %v995_v63 = vshll.u32 %v6381_v39, 16  ;;  %v3789_v10 = vrot.slane %v3787_v12, 4 }
 0x134   : > { %6810 = vmatprep.mubr.msk.bf16.mxu1 %vm1660_vm6, %v7030_v45  ;;  %v8544_v45 = vsel %vm7792_vm15, %v6181_v18, %v3787_v12  ;;  %v8548_v13 = vsel %vm7792_vm15, %v6182_v4, %v3794_v60  ;;  %v3796_v42 = vrot.slane %v3794_v60, 4  ;;  %v3797_v39 = vrot.slane %v8171_v7, 5  ;;  %v3712_v18 = vld [vmem:[#allocation2 + $0x48] sm:$0xe]  ;;  %v3713_v7 = vld [vmem:[#allocation2 + $0x54] sm:$0xe] }
 0x135   : > { %v1000_v9 = vshrl.u32 %v6382_v56, 16  ;;  %v1003_v3 = vshll.u32 %v6382_v56, 16  ;;  %v994_v32 = vrot.slane %v992_v29, 7  ;;  %v8553_v61 = vsel %vm7792_vm15, %v3789_v10, %v3790_v38 }
 0x136   : > { %v6183_v56 = vrot.slane %v3711_v55, 9  ;;  %v8560_v60 = vsel %vm7792_vm15, %v3796_v42, %v3797_v39  ;;  %v3803_v42 = vrot.slane %v3801_v43, 4  ;;  %v6184_v39 = vrot.slane %v3712_v18, 9 }
 0x137   : > { %v1002_v27 = vrot.slane %v1000_v9, 7  ;;  %v997_v12 = vor.u32 %v995_v63, %v994_v32  ;;  %v998_v29 = vrot.slane %v994_v32, 4  ;;  %v7032_v9 = vld [vmem:[#allocation2 + $0x6c] sm:$0xff]   ;;  %v6199_v58 = vcombine.low %v8548_v13, %v8560_v60 }
 0x138   : > { %6849 = vmatmul.mubr.msk.bf16.gmra.mxu0 %vm1660_vm6, %v8482_v59  ;;  %v3804_v63 = vrot.slane %v8209_v11, 5  ;;  %v3808_v4 = vrot.slane %v8183_v19, 5  ;;  %v3714_v59 = vld [vmem:[#allocation2 + $0x60] sm:$0xe]  ;;  %v6185_v10 = vrot.slane %v3713_v7, 9  ;;  %v3811_v18 = vrot.slane %v8237_v50, 5 }
 0x139   : > { %v1005_v38 = vor.u32 %v1003_v3, %v1002_v27  ;;  %v1007_v55 = vrot.slane %v1002_v27, 4  ;;  %6852 = vmatprep.mubr.msk.bf16.mxu0 %vm1660_vm6, %v8488_v36  ;;  %v1168_v32 = vsel %vm7377_vm11, %v997_v12, %v1167_v34  ;;  %v8580_v36 = vsel %vm7792_vm15, %v6183_v56, %v3801_v43 }
 0x13a   : > { %1169 = vst [vmem:[#allocation2 + $0xc0] sm:$0xf] %v1168_v32  ;;  %v8585_v19 = vsel %vm7792_vm15, %v3803_v42, %v3804_v63  ;;  %v3810_v34 = vrot.slane %v3808_v4, 4  ;;  %v3815_v12 = vrot.slane %v8203_v1, 5  ;;  %v8593_v43 = vsel %vm7792_vm15, %v6184_v39, %v3808_v4 }
 0x13b   : > { %6811 = vmatmul.mubr.msk.bf16.gmra.mxu1 %vm1660_vm6, %v7031_v37  ;;  %v1006_v3 = vsel %vm7371_vm10, %v998_v29, %v1005_v38  ;;  %v1172_v37 = vsel %vm7383_vm12, %v1007_v55, %v1171_v23  ;;  %v3715_v29 = vld [vmem:[#allocation2 + $0x6c] sm:$0xe]  ;;  %v6200_v23 = vcombine.low %v8580_v36, %v8585_v19  ;;  %v6186_v56 = vrot.slane %v3714_v59, 9  ;;  %v3716_v55 = vld [vmem:[#allocation2 + $0x78] sm:$0xe] }
 0x13c   : > { %6814 = vmatprep.mubr.msk.bf16.mxu1 %vm1660_vm6, %v7032_v9  ;;  %1170 = vst.msk [vmem:[#allocation2 + $0xc4] sm:$0xf] %vm581_vm1, %v1006_v3  ;;  %1173 = vst [vmem:[#allocation2 + $0xc8] sm:$0x1] %v1172_v37  ;;  %v3822_v7 = vrot.slane %v8239_v41, 5  ;;  %v8598_v9 = vsel %vm7792_vm15, %v3810_v34, %v3811_v18  ;;  %v8602_v50 = vsel %vm7792_vm15, %v6185_v10, %v3815_v12  ;;  %v3817_v1 = vrot.slane %v3815_v12, 4 }
 0x13d   : > { %v3818_v38 = vrot.slane %v8249_v5, 5  ;;  %v3825_v32 = vrot.slane %v8284_v21, 5  ;;  %v6187_v42 = vrot.slane %v3715_v29, 9  ;;  %v7033_v41 = vld [vmem:[#allocation2 + $0x78] sm:$0xff]   ;;  %v3829_v27 = vrot.slane %v8271_v48, 5  ;;  %v7034_v3 = vld [vmem:[#allocation2 + $0x84] sm:$0xff]  }
 0x13e   : > { %v3824_v4 = vrot.slane %v3822_v7, 4  ;;  %v8614_v59 = vsel %vm7792_vm15, %v6186_v56, %v3822_v7  ;;  %v3832_v5 = vrot.slane %v8296_v49, 5  ;;  %v6188_v37 = vrot.slane %v3716_v55, 9  ;;  %v3717_v34 = vld [vmem:[#allocation2 + $0x84] sm:$0xe] }
 0x13f   : > { %v8610_v39 = vsel %vm7792_vm15, %v3817_v1, %v3818_v38  ;;  %v3836_v10 = vrot.slane %v8293_v44, 5  ;;  %v6160_v48 = vcombine.low %v3354_v40, %v3364_v0  ;;  %v3839_v18 = vrot.slane %v8329_v20, 5  ;;  %v3718_v12 = vld [vmem:[#allocation2 + $0x90] sm:$0xe] }
 0x140   : > { %6853 = vmatmul.mubr.msk.bf16.gmra.mxu0 %vm1660_vm6, %v8490_v17  ;;  %v8624_v11 = vsel %vm7792_vm15, %v3824_v4, %v3825_v32  ;;  %v3831_v17 = vrot.slane %v3829_v27, 4  ;;  %v10166_v62 = vsel %vm7208_vm5, %v8486_v47, %v8457_v57  ;;  %v8660_v20 = vsel %vm7792_vm15, %v6187_v42, %v3829_v27  ;;  %v3719_v47 = vld [vmem:[#allocation2 + $0x9c] sm:$0xe] }
 0x141   : > { %6856 = vmatprep.mubr.msk.bf16.mxu0 %vm1660_vm6, %v8495_v25  ;;  %v3026_v49 = vld [vmem:[#allocation2 + $0xc0] sm:$0xf]  ;;  %v6161_v46 = vcombine.low %v10166_v62, %v10165_v16  ;;  %v3838_v38 = vrot.slane %v3836_v10, 4  ;;  %v6189_v32 = vrot.slane %v3717_v34, 9  ;;  %v3843_v42 = vrot.slane %v8320_v6, 5 }
 0x142   : > { %v3390_v40 = vshrl.u32 %v3026_v49, 16  ;;  %v3393_v0 = vshll.u32 %v3026_v49, 16  ;;  %v8667_v57 = vsel %vm7792_vm15, %v3831_v17, %v3832_v5  ;;  %v8674_v27 = vsel %vm7792_vm15, %v6188_v37, %v3836_v10  ;;  %v7035_v49 = vld [vmem:[#allocation2 + $0x90] sm:$0xff]  }
 0x143   : > { %6815 = vmatmul.mubr.msk.bf16.gmra.mxu1 %vm1660_vm6, %v7033_v41  ;;  %v8654_v33 = vld [vmem:[#allocation2 + $0xc4] sm:$0xf]  ;;  %v8656_v25 = vld [vmem:[#allocation2 + $0xc8] sm:$0x1]  ;;  %v8678_v5 = vsel %vm7792_vm15, %v3838_v38, %v3839_v18  ;;  %v3845_v62 = vrot.slane %v3843_v42, 4  ;;  %v6190_v34 = vrot.slane %v3718_v12, 9  ;;  %v8689_v18 = vsel %vm7792_vm15, %v6189_v32, %v3843_v42 }
 0x144   : > { %6818 = vmatprep.mubr.msk.bf16.mxu1 %vm1660_vm6, %v7034_v3  ;;  %v3399_v29 = vshll.u32 %v8654_v33, 16  ;;  %v3403_v28 = vshrl.u32 %v8654_v33, 16  ;;  %v3409_v35 = vshll.u32 %v8656_v25, 16  ;;  %v3392_v56 = vrot.slane %v3390_v40, 4  ;;  %v7036_v40 = vld [vmem:[#allocation2 + $0x9c] sm:$0xff]  }
 0x145   : > { %v3395_v7 = vrot.slane %v3393_v0, 5  ;;  %v3846_v3 = vrot.slane %v8345_v30, 5  ;;  %v3850_v37 = vrot.slane %v8341_v52, 5  ;;  %v6191_v10 = vrot.slane %v3719_v47, 9  ;;  %v3721_v47 = vld [vmem:[#allocation2 + $0xb4] sm:$0xe] }
 0x146   : > { %v3401_v55 = vrot.slane %v3399_v29, 5  ;;  %v3405_v4 = vrot.slane %v3403_v28, 4  ;;  %v3411_v0 = vrot.slane %v3409_v35, 5  ;;  %v3720_v29 = vld [vmem:[#allocation2 + $0xa8] sm:$0xe]  ;;  %v3860_v35 = vrot.slane %v8399_v53, 5 }
 0x147   : > { %v3396_v41 = vor.u32 %v3395_v7, %v3392_v56  ;;  %v8693_v12 = vsel %vm7792_vm15, %v3845_v62, %v3846_v3  ;;  %v3852_v28 = vrot.slane %v3850_v37, 4  ;;  %v6192_v53 = vrot.slane %v3720_v29, 9  ;;  %v10167_v32 = vld [vmem:[#allocation13_spill] sm:$0xff]  ;;  %v4541_v52 = vld [vmem:[#allocation2 + $0x2c] sm:$0x1] }
 0x148   : > { %v3406_v17 = vor.u32 %v3405_v4, %v3401_v55  ;;  %6857 = vmatmul.mubr.msk.bf16.gmra.mxu0 %vm1660_vm6, %v6160_v48  ;;  %v3857_v48 = vrot.slane %v8373_v54, 5  ;;  %v8707_v54 = vsel %vm7792_vm15, %v6190_v34, %v3850_v37  ;;  %v3864_v42 = vrot.slane %v10167_v32, 5  ;;  %v7040_v37 = vld [vmem:[#allocation2 + $0x18] sm:$0xff]   ;;  %v5263_v34 = vld [vmem:[#allocation2 + $0x24] sm:$0xe] }
 0x149   : > { %v3397_v6 = vrot.slane %v3396_v41, 4  ;;  %6860 = vmatprep.mubr.msk.bf16.mxu0 %vm1660_vm6, %v6161_v46  ;;  %v3853_v46 = vrot.slane %v8381_v26, 5  ;;  %v3878_v29 = vrot.slane %v8654_v33, 5  ;;  %v5338_v36 = vrot.slane %v4541_v52, 5 }
 0x14a   : > { %v3407_v30 = vrot.slane %v3406_v17, 4  ;;  %v3859_v38 = vrot.slane %v3857_v48, 4  ;;  %v8715_v26 = vsel %vm7792_vm15, %v6191_v10, %v3857_v48  ;;  %v3871_v17 = vrot.slane %v8431_v51, 5 }
 0x14b   : > { %6819 = vmatmul.mubr.msk.bf16.gmra.mxu1 %vm1660_vm6, %v7035_v49  ;;  %v3402_v56 = vsel %vm7208_vm5, %v3397_v6, %v3401_v55  ;;  %v8711_v4 = vsel %vm7792_vm15, %v3852_v28, %v3853_v46  ;;  %v3722_v55 = vld [vmem:[#allocation2 + $0xc0] sm:$0xe]  ;;  %v6193_v49 = vrot.slane %v3721_v47, 9  ;;  %v3867_v6 = vrot.slane %v8448_v31, 5  ;;  %v7038_v28 = vld [vmem:[#allocation2 + $0xb4] sm:$0xff]  }
 0x14c   : > { %6822 = vmatprep.mubr.msk.bf16.mxu1 %vm1660_vm6, %v7036_v40  ;;  %v3412_v7 = vsel %vm7208_vm5, %v3407_v30, %v3411_v0  ;;  %v8722_v3 = vsel %vm7792_vm15, %v3859_v38, %v3860_v35  ;;  %v3866_v40 = vrot.slane %v3864_v42, 4  ;;  %v7037_v0 = vld [vmem:[#allocation2 + $0xa8] sm:$0xff]   ;;  %v3873_v10 = vrot.slane %v3871_v17, 4 }
 0x14d   : > { %v6162_v62 = vcombine.low %v3402_v56, %v3412_v7  ;;  %v3874_v30 = vrot.slane %v8455_v14, 5  ;;  %v6194_v48 = vrot.slane %v3722_v55, 9  ;;  %v3707_v46 = vld [vmem:[#allocation2 + $0xc] sm:$0xe]  ;;  %v10168_v51 = vrot.slane %v10161_v2, 5 }
 0x14e   : > { %v8735_v47 = vsel %vm7792_vm15, %v6192_v53, %v3864_v42  ;;  %v8739_v31 = vsel %vm7792_vm15, %v3866_v40, %v3867_v6  ;;  %v8743_v14 = vsel %vm7792_vm15, %v6193_v49, %v3871_v17  ;;  %v3880_v7 = vrot.slane %v3878_v29, 4  ;;  %v7077_v42 = vld [vmem:[#allocation2 + $0x14] sm:$0x1]  ;;  %v7041_v40 = vld [vmem:[#allocation2 + $0x24] sm:$0xff]  }
 0x14f   : > { %v3775_v35 = vrot.slane %v10168_v51, 4  ;;  %v8751_v56 = vsel %vm7792_vm15, %v3873_v10, %v3874_v30  ;;  %v3881_v38 = vrot.slane %v8656_v25, 5  ;;  %v6179_v32 = vrot.slane %v3707_v46, 9  ;;  %v7039_v6 = vld [vmem:[#allocation2 + $0xc0] sm:$0xff]   ;;  %v7042_v10 = vld [vmem:[#allocation2 + $0x30] sm:$0xff]  }
 0x150   : > { %6861 = vmatmul.mubr.msk.bf16.gmra.mxu0 %vm1660_vm6, %v6162_v62  ;;  %v3776_v55 = vrot.slane %v7077_v42, 5  ;;  %v8759_v49 = vsel %vm7792_vm15, %v6194_v48, %v3878_v29  ;;  %v10170_v30 = vld [vmem:[#allocation8_spill] sm:$0xff]  ;;  %v10171_v46 = vld [vmem:[#allocation9_spill] sm:$0xff]  ;;  %v4542_v62 = vld [vmem:[#allocation2 + $0x30] sm:$0xf] }
 0x151   : > { %6900 = vmatprep.mubr.msk.bf16.mxu0 %vm1660_vm6, %v7040_v37  ;;  %v8763_v17 = vsel %vm7792_vm15, %v3880_v7, %v3881_v38  ;;  %v5537_v48 = vsel %vm1709_vm0, %v10170_v30, 0  ;;  %v5067_v2 = vsel %vm1709_vm0, %v10171_v46, 0  ;;  %v4536_v7 = vld [vmem:[#allocation2 + $0x18] sm:$0xf]  ;;  %v8782_v38 = vpop.f32.mrf.mxu0  ;;  %v8789_v42 = vld [vmem:[#allocation2 + $0x28] sm:$0xf] }
 0x152   : > { %v3777_v25 = vsel %vm7792_vm15, %v3775_v35, %v3776_v55  ;;  %v4537_v35 = vld [vmem:[#allocation2 + $0x1c] sm:$0xf]  ;;  %v4539_v55 = vld [vmem:[#allocation2 + $0x24] sm:$0xf]  ;;  %v4622_v46 = vshrl.u32 %v8789_v42, 16  ;;  %vm5842_vm0 = vcmask 64512  }
 0x153   : > { %6823 = vmatmul.mubr.msk.bf16.gmra.mxu1 %vm1660_vm6, %v7037_v0  ;;  %v10169_v0 = vmov %v10168_v51  ;;  %v7044_v51 = vld [vmem:[#allocation2 + $0x48] sm:$0xff]   ;;  %v4598_v30 = vshrl.u32 %v4537_v35, 16 }
 0x154   : > { %6826 = vmatprep.mubr.msk.bf16.mxu1 %vm1660_vm6, %v7038_v28  ;;  %v3774_v37 = vsel %vm7792_vm15, %v6179_v32, %v10169_v0  ;;  %v7043_v28 = vld [vmem:[#allocation2 + $0x3c] sm:$0xff]   ;;  %v10172_v32 = vcombine.low %v8530_v15, %v8536_v8  ;;  %v4588_v0 = vshll.u32 %v4536_v7, 16  ;;  %v8795_v15 = vpop.f32.mrf.mxu0 }
 0x155   : > { %v6196_v29 = vcombine.low %v3774_v37, %v3777_v25  ;;  %v10173_v25 = vcombine.low %v8544_v45, %v8553_v61  ;;  %v5262_v37 = vld [vmem:[#allocation2 + $0x18] sm:$0xe]  ;;  %v4538_v8 = vld [vmem:[#allocation2 + $0x20] sm:$0x1]  ;;  %v8799_v45 = vld [vmem:[#allocation2 + $0x34] sm:$0xf] }
 0x156   : > { %v6294_v61 = vrot.slane %v5262_v37, 9  ;;  %v5331_v53 = vrot.slane %v4538_v8, 5  ;;  %v4600_v33 = vrot.slane %v4598_v30, 4  ;;  %v8805_v41 = vpop.f32.mrf.mxu0  ;;  %v4624_v37 = vrot.slane %v4622_v46, 4 }
 0x157   : > { %10174 = vst [vmem:[#allocation10_spill] sm:$0xff] %v8805_v41  ;;  %v4646_v30 = vshrl.u32 %v8799_v45, 16  ;;  %v4628_v46 = vshll.u32 %v4541_v52, 16 }
 0x158   : > { %6901 = vmatmul.mubr.msk.bf16.vlgmr.msra.gmra.mxu0 %vm1660_vm6, %v7041_v40  ;;  %v5328_v40 = vrot.slane %v4537_v35, 5 }
 0x159   : > { %6904 = vmatprep.mubr.msk.bf16.mxu0 %vm1660_vm6, %v7042_v10  ;;  %6967 = vmatpush3.bf16.msra.mxu0 %v5537_v48  ;;  %v4594_v10 = vshll.u32 %v4537_v35, 16  ;;  %v4609_v48 = vshrl.u32 %v4539_v55, 16 }
 0x15a   : > { %v8824_v13 = vsel %vm7792_vm15, %v6294_v61, %v5328_v40 }
 0x15b   : > { %6827 = vmatmul.mubr.msk.bf16.gmra.mxu1 %vm1660_vm6, %v7039_v6  ;;  %v4585_v6 = vshrl.u32 %v4536_v7, 16  ;;  %v4590_v7 = vrot.slane %v4588_v0, 5  ;;  %v8801_v35 = vrot.slane %v4594_v10, 5  ;;  %v4611_v16 = vrot.slane %v4609_v48, 4 }
 0x15c   : > { %6866 = vmatprep.mubr.msk.bf16.mxu1 %vm1660_vm6, %v6196_v29  ;;  %v4612_v29 = vshll.u32 %v4539_v55, 16  ;;  %v5335_v55 = vrot.slane %v8789_v42, 5  ;;  %v4636_v0 = vshll.u32 %v4542_v62, 16  ;;  %v4642_v10 = vshll.u32 %v8799_v45, 16 }
 0x15d   : > { %v6295_v48 = vrot.slane %v5263_v34, 9  ;;  %v4544_v34 = vld [vmem:[#allocation2 + $0x38] sm:$0x1] }
 0x15e   : > { %v4614_v1 = vrot.slane %v4612_v29, 5 }
 0x160   : > { %6905 = vmatmul.mubr.msk.bf16.gmra.mxu0 %vm1660_vm6, %v7043_v28  ;;  %v4618_v28 = vshll.u32 %v8789_v42, 16  ;;  %v4633_v42 = vshrl.u32 %v4542_v62, 16  ;;  %v4601_v62 = vor.u32 %v4600_v33, %v8801_v35  ;;  %v4615_v19 = vor.u32 %v4614_v1, %v4611_v16  ;;  %v7047_v33 = vld [vmem:[#allocation2 + $0x6c] sm:$0xff]   ;;  %v8845_v16 = vld [vmem:[#allocation2 + $0x40] sm:$0xf] }
 0x161   : > { %6908 = vmatprep.mubr.msk.bf16.mxu0 %vm1660_vm6, %v7044_v51  ;;  %v7046_v51 = vld [vmem:[#allocation2 + $0x60] sm:$0xff]   ;;  %v8843_v1 = vsel %vm7792_vm15, %v6295_v48, %v5335_v55  ;;  %v10179_v48 = vcombine.low %v8593_v43, %v8598_v9  ;;  %v4666_v9 = vshll.u32 %v8845_v16, 16 }
 0x162   : > { %v8807_v44 = vrot.slane %v4618_v28, 5  ;;  %v5337_v28 = vrot.slane %v5335_v55, 4  ;;  %v4652_v55 = vshll.u32 %v4544_v34, 16 }
 0x163   : > { %6867 = vmatmul.mubr.msk.bf16.vlgmr.msra.gmra.mxu1 %vm1660_vm6, %v10172_v32  ;;  %v5330_v32 = vrot.slane %v5328_v40, 4  ;;  %v5342_v40 = vrot.slane %v8799_v45, 5  ;;  %v7048_v45 = vld [vmem:[#allocation2 + $0x78] sm:$0xff]  }
 0x164   : > { %6933 = vmatpush3.bf16.msra.mxu1 %v5067_v2  ;;  %6870 = vmatprep.mubr.msk.bf16.mxu1 %vm1660_vm6, %v10173_v25  ;;  %v7045_v2 = vld [vmem:[#allocation2 + $0x54] sm:$0xff]   ;;  %v4587_v25 = vrot.slane %v4585_v6, 4  ;;  %v8814_v6 = vpop.f32.mrf.mxu1 }
 0x165   : > { %10175 = vst [vmem:[#allocation11_spill] sm:$0xff] %v8814_v6  ;;  %v8828_v29 = vsel %vm7792_vm15, %v5330_v32, %v5331_v53  ;;  %v8837_v53 = vrot.slane %v4642_v10, 5  ;;  %v4648_v32 = vrot.slane %v4646_v30, 4  ;;  %v4545_v30 = vld [vmem:[#allocation2 + $0x3c] sm:$0xf]  ;;  %v5344_v63 = vrot.slane %v5342_v40, 4 }
 0x166   : > { %v4591_v60 = vor.u32 %v4590_v7, %v4587_v25  ;;  %v8835_v61 = vpop.f32.mrf.mxu1  ;;  %v4638_v25 = vrot.slane %v4636_v0, 5  ;;  %v4630_v0 = vrot.slane %v4628_v46, 5  ;;  %v4660_v43 = vshll.u32 %v4545_v30, 16 }
 0x167   : > { %10177 = vst [vmem:[#allocation4_spill] sm:$0xff] %v8835_v61  ;;  %v8895_v61 = vrot.slane %v4666_v9, 5  ;;  %v10185_v9 = vcombine.low %v8614_v59, %v8624_v11  ;;  %v4551_v59 = vld [vmem:[#allocation2 + $0x54] sm:$0xf]  ;;  %v10187_v11 = vcombine.low %v8660_v20, %v8667_v57 }
 0x168   : > { %6909 = vmatmul.mubr.msk.bf16.gmra.mxu0 %vm1660_vm6, %v7045_v2  ;;  %v8831_v2 = vpop.f32.mrf.mxu0  ;;  %v4592_v21 = vrot.slane %v4591_v60, 4  ;;  %v4616_v60 = vrot.slane %v4615_v19, 4  ;;  %v10181_v19 = vcombine.low %v8602_v50, %v8610_v39 }
 0x169   : > { %6912 = vmatprep.mubr.msk.bf16.mxu0 %vm1660_vm6, %v7046_v51  ;;  %10176 = vst [vmem:[#allocation12_spill] sm:$0xff] %v8831_v2  ;;  %v5264_v51 = vld [vmem:[#allocation2 + $0x30] sm:$0xe]  ;;  %v10192_v2 = vcombine.low %v8674_v27, %v8678_v5 }
 0x16a   : > { %v6296_v10 = vrot.slane %v5264_v51, 9  ;;  %v8852_v7 = vpop.f32.mrf.mxu0  ;;  %v5349_v51 = vrot.slane %v8845_v16, 5 }
 0x16b   : > { %6871 = vmatmul.mubr.msk.bf16.gmra.mxu1 %vm1660_vm6, %v6199_v58  ;;  %v4604_v58 = vshll.u32 %v4538_v8, 16  ;;  %v4635_v8 = vrot.slane %v4633_v42, 4  ;;  %v8849_v42 = vsel %vm7792_vm15, %v5337_v28, %v5338_v36  ;;  %10178 = vst [vmem:[#allocation15_spill] sm:$0xff] %v8852_v7  ;;  %v5345_v28 = vrot.slane %v4544_v34, 5 }
 0x16c   : > { %6874 = vmatprep.mubr.msk.bf16.mxu1 %vm1660_vm6, %v6200_v23  ;;  %v4625_v23 = vor.u32 %v4624_v37, %v8807_v44  ;;  %v4602_v37 = vrot.slane %v4601_v62, 4  ;;  %v8859_v62 = vpop.f32.mrf.mxu1  ;;  %v4649_v36 = vor.u32 %v4648_v32, %v8837_v53  ;;  %v4597_v34 = vsel %vm7208_vm5, %v4592_v21, %v8801_v35  ;;  %v8880_v39 = vpop.f32.mrf.mxu0 }
 0x16d   : > { %v4606_v52 = vrot.slane %v4604_v58, 5  ;;  %10180 = vst [vmem:[#allocation14_spill] sm:$0xff] %v8859_v62  ;;  %v4639_v46 = vor.u32 %v4638_v25, %v4635_v8  ;;  %v8878_v50 = vsel %vm7792_vm15, %v6296_v10, %v5342_v40  ;;  %10182 = vst [vmem:[#allocation6_spill] sm:$0xff] %v8880_v39  ;;  %v4621_v32 = vsel %vm7208_vm5, %v4616_v60, %v8807_v44  ;;  %v7049_v62 = vld [vmem:[#allocation2 + $0x84] sm:$0xff]  }
 0x16e   : > { %v4626_v58 = vrot.slane %v4625_v23, 4  ;;  %v5265_v23 = vld [vmem:[#allocation2 + $0x3c] sm:$0xe]  ;;  %v8889_v21 = vsel %vm7792_vm15, %v5344_v63, %v5345_v28  ;;  %v4654_v35 = vrot.slane %v4652_v55, 5  ;;  %v4650_v10 = vrot.slane %v4649_v36, 4 }
 0x16f   : > { %v4607_v8 = vsel %vm7208_vm5, %v4602_v37, %v4606_v52  ;;  %v8891_v52 = vld [vmem:[#allocation2 + $0x4c] sm:$0xf]  ;;  %v4548_v37 = vld [vmem:[#allocation2 + $0x48] sm:$0xf]  ;;  %v4640_v40 = vrot.slane %v4639_v46, 4  ;;  %v5351_v25 = vrot.slane %v5349_v51, 4  ;;  %v8900_v46 = vpop.f32.mrf.mxu0 }
 0x170   : > { %6913 = vmatmul.mubr.msk.bf16.gmra.mxu0 %vm1660_vm6, %v7047_v33  ;;  %v4657_v33 = vshrl.u32 %v4545_v30, 16  ;;  %v8893_v30 = vpop.f32.mrf.mxu1  ;;  %v4662_v60 = vrot.slane %v4660_v43, 5  ;;  %v4681_v63 = vshrl.u32 %v4548_v37, 16  ;;  %v4684_v28 = vshll.u32 %v4548_v37, 16  ;;  %10184 = vst [vmem:[#allocation7_spill] sm:$0xff] %v8900_v46 }
 0x171   : > { %6916 = vmatprep.mubr.msk.bf16.mxu0 %vm1660_vm6, %v7048_v45  ;;  %v4670_v45 = vshrl.u32 %v8845_v16, 16  ;;  %v4631_v16 = vsel %vm7208_vm5, %v4626_v58, %v4630_v0  ;;  %10183 = vst [vmem:[#allocation5_spill] sm:$0xff] %v8893_v30  ;;  %v7050_v58 = vld [vmem:[#allocation2 + $0x90] sm:$0xff]   ;;  %v4690_v55 = vshll.u32 %v8891_v52, 16  ;;  %v4694_v6 = vshrl.u32 %v8891_v52, 16  ;;  %v8942_v57 = vpop.f32.mrf.mxu0 }
 0x172   : > { %v4659_v44 = vrot.slane %v4657_v33, 4  ;;  %v8902_v36 = vcombine.low %v4597_v34, %v4607_v8  ;;  %v4655_v34 = vsel %vm7208_vm5, %v4650_v10, %v4654_v35  ;;  %v8938_v10 = vld [vmem:[#allocation2 + $0x50] sm:$0x1]  ;;  %10188 = vst [vmem:[#allocation8_spill] sm:$0xff] %v8942_v57  ;;  %v4554_v30 = vld [vmem:[#allocation2 + $0x60] sm:$0xf] }
 0x173   : > { %6875 = vmatmul.mubr.msk.bf16.gmra.mxu1 %vm1660_vm6, %v10179_v48  ;;  %v4547_v48 = vld [vmem:[#allocation2 + $0x44] sm:$0x1]  ;;  %v4672_v0 = vrot.slane %v4670_v45, 4  ;;  %v8913_v45 = vpop.f32.mrf.mxu1  ;;  %v4696_v20 = vrot.slane %v4694_v6, 4  ;;  %v7052_v57 = vld [vmem:[#allocation2 + $0xa8] sm:$0xff]  }
 0x174   : > { %6878 = vmatprep.mubr.msk.bf16.mxu1 %vm1660_vm6, %v10181_v19  ;;  %v6297_v19 = vrot.slane %v5265_v23, 9  ;;  %v8904_v23 = vcombine.low %v4621_v32, %v4631_v16  ;;  %v5352_v43 = vrot.slane %v4547_v48, 5  ;;  %10186 = vst [vmem:[#allocation13_spill] sm:$0xff] %v8913_v45  ;;  %v4676_v32 = vshll.u32 %v4547_v48, 16  ;;  %v8924_v16 = vld [vmem:[#allocation2 + $0x58] sm:$0xf] }
 0x175   : > { %v4673_v35 = vor.u32 %v4672_v0, %v8895_v61  ;;  %v4683_v48 = vrot.slane %v4681_v63, 4  ;;  %v8946_v0 = vpop.f32.mrf.mxu1  ;;  %v8953_v6 = vld [vmem:[#allocation2 + $0x64] sm:$0xf]  ;;  %v4700_v45 = vshll.u32 %v8938_v10, 16  ;;  %v5267_v63 = vld [vmem:[#allocation2 + $0x54] sm:$0xe] }
 0x176   : > { %v8922_v8 = vsel %vm7792_vm15, %v6297_v19, %v5349_v51  ;;  %v8932_v37 = vsel %vm7792_vm15, %v5351_v25, %v5352_v43  ;;  %v4686_v19 = vrot.slane %v4684_v28, 5  ;;  %v4714_v25 = vshll.u32 %v8924_v16, 16  ;;  %10189 = vst [vmem:[#allocation9_spill] sm:$0xff] %v8946_v0 }
 0x177   : > { %v4678_v28 = vrot.slane %v4676_v32, 5  ;;  %v4674_v51 = vrot.slane %v4673_v35, 4  ;;  %v10190_v0 = vrot.slane %v8891_v52, 5  ;;  %v5363_v32 = vrot.slane %v8924_v16, 5 }
 0x178   : > { %6917 = vmatmul.mubr.msk.bf16.gmra.mxu0 %vm1660_vm6, %v7049_v62  ;;  %v4645_v62 = vsel %vm7208_vm5, %v4640_v40, %v8837_v53  ;;  %v4663_v53 = vor.u32 %v4662_v60, %v4659_v44  ;;  %v8935_v40 = vld [vmem:[#allocation2 + $0x48] sm:$0xe]  ;;  %v4718_v44 = vshrl.u32 %v8924_v16, 16  ;;  %v7051_v60 = vld [vmem:[#allocation2 + $0x9c] sm:$0xff]   ;;  %v8964_v7 = vrot.slane %v4714_v25, 5 }
 0x179   : > { %6920 = vmatprep.mubr.msk.bf16.mxu0 %vm1660_vm6, %v7050_v58  ;;  %v8940_v58 = vrot.slane %v4690_v55, 5  ;;  %v8948_v43 = vcombine.low %v4645_v62, %v4655_v34  ;;  %v6298_v55 = vrot.slane %v8935_v40, 9  ;;  %v5358_v62 = vrot.slane %v10190_v0, 4  ;;  %v8962_v40 = vpop.f32.mrf.mxu0 }
 0x17a   : > { %v4664_v33 = vrot.slane %v4663_v53, 4  ;;  %v4687_v34 = vor.u32 %v4686_v19, %v4683_v48  ;;  %10191 = vst [vmem:[#allocation16_spill] sm:$0xff] %v8962_v40  ;;  %v4553_v53 = vld [vmem:[#allocation2 + $0x5c] sm:$0x1]  ;;  %v8971_v48 = vpop.f32.mrf.mxu1  ;;  %v4729_v16 = vshrl.u32 %v4554_v30, 16  ;;  %v4732_v19 = vshll.u32 %v4554_v30, 16 }
 0x17b   : > { %6879 = vmatmul.mubr.msk.bf16.gmra.mxu1 %vm1660_vm6, %v10185_v9  ;;  %v4705_v9 = vshrl.u32 %v4551_v59, 16  ;;  %v4697_v46 = vor.u32 %v4696_v20, %v8940_v58  ;;  %10193 = vst [vmem:[#allocation17_spill] sm:$0xff] %v8971_v48  ;;  %v4738_v20 = vshll.u32 %v8953_v6, 16  ;;  %v4679_v5 = vsel %vm7208_vm5, %v4674_v51, %v4678_v28  ;;  %v8984_v0 = vpop.f32.mrf.mxu0 }
 0x17c   : > { %6882 = vmatprep.mubr.msk.bf16.mxu1 %vm1660_vm6, %v10187_v11  ;;  %v4708_v11 = vshll.u32 %v4551_v59, 16  ;;  %v5359_v59 = vrot.slane %v8938_v10, 5  ;;  %v4720_v10 = vrot.slane %v4718_v44, 4  ;;  %v4669_v27 = vsel %vm7208_vm5, %v4664_v33, %v8895_v61  ;;  %v8988_v41 = vpop.f32.mrf.mxu1  ;;  %v4556_v61 = vld [vmem:[#allocation2 + $0x68] sm:$0x1] }
 0x17d   : > { %v4707_v35 = vrot.slane %v4705_v9, 4  ;;  %v10194_v9 = vcombine.low %v8689_v18, %v8693_v12  ;;  %v4698_v30 = vrot.slane %v4697_v46, 4  ;;  %v5365_v25 = vrot.slane %v5363_v32, 4  ;;  %10195 = vst [vmem:[#allocation18_spill] sm:$0xff] %v8988_v41  ;;  %v7053_v46 = vld [vmem:[#allocation2 + $0xb4] sm:$0xff]  }
 0x17e   : > { %v4710_v39 = vrot.slane %v4708_v11, 5  ;;  %v4688_v11 = vrot.slane %v4687_v34, 4  ;;  %v5366_v44 = vrot.slane %v4553_v53, 5  ;;  %v4721_v18 = vor.u32 %v4720_v10, %v8964_v7  ;;  %v7054_v10 = vld [vmem:[#allocation2 + $0xc0] sm:$0xff]  }
 0x17f   : > { %v4724_v12 = vshll.u32 %v4553_v53, 16  ;;  %v5370_v40 = vrot.slane %v8953_v6, 5  ;;  %v4731_v33 = vrot.slane %v4729_v16, 4  ;;  %v4734_v51 = vrot.slane %v4732_v19, 5 }
 0x180   : > { %6921 = vmatmul.mubr.msk.bf16.gmra.mxu0 %vm1660_vm6, %v7051_v60  ;;  %v4742_v60 = vshrl.u32 %v8953_v6, 16  ;;  %v4711_v48 = vor.u32 %v4710_v39, %v4707_v35  ;;  %v8992_v28 = vcombine.low %v4669_v27, %v4679_v5  ;;  %v10196_v34 = vrot.slane %v8891_v52, 5  ;;  %v4557_v35 = vld [vmem:[#allocation2 + $0x6c] sm:$0xf]  ;;  %v9026_v5 = vpop.f32.mrf.mxu1 }
 0x181   : > { %6924 = vmatprep.mubr.msk.bf16.mxu0 %vm1660_vm6, %v7052_v57  ;;  %v6299_v57 = vrot.slane %v5267_v63, 9  ;;  %v9002_v6 = vsel %vm7792_vm15, %v5358_v62, %v5359_v59  ;;  %v4693_v16 = vsel %vm7208_vm5, %v4688_v11, %v8940_v58  ;;  %v9017_v59 = vld [vmem:[#allocation2 + $0x70] sm:$0xf]  ;;  %v9020_v62 = vpop.f32.mrf.mxu0  ;;  %v4748_v27 = vshll.u32 %v4556_v61, 16  ;;  %10198 = vst [vmem:[#allocation19_spill] sm:$0xff] %v9026_v5 }
 0x182   : > { %v4744_v63 = vrot.slane %v4742_v60, 4  ;;  %v8998_v39 = vsel %vm7792_vm15, %v6298_v55, %v10196_v34  ;;  %v9015_v55 = vsel %vm7792_vm15, %v5365_v25, %v5366_v44  ;;  %v5372_v60 = vrot.slane %v5370_v40, 4 }
 0x183   : > { %6883 = vmatmul.mubr.msk.bf16.gmra.mxu1 %vm1660_vm6, %v10192_v2  ;;  %v4702_v2 = vrot.slane %v4700_v45, 5  ;;  %v8990_v45 = vrot.slane %v4738_v20, 5  ;;  %v9006_v53 = vsel %vm7792_vm15, %v6299_v57, %v5363_v32  ;;  %v4712_v32 = vrot.slane %v4711_v48, 4 }
 0x184   : > { %6886 = vmatprep.mubr.msk.bf16.mxu1 %vm1660_vm6, %v10194_v9  ;;  %v5268_v9 = vld [vmem:[#allocation2 + $0x60] sm:$0xe]  ;;  %v4722_v20 = vrot.slane %v4721_v18, 4  ;;  %v10197_v58 = vcombine.low %v8707_v54, %v8711_v4  ;;  %v4735_v57 = vor.u32 %v4734_v51, %v4731_v33  ;;  %v10199_v48 = vcombine.low %v8715_v26, %v8722_v3  ;;  %v9046_v26 = vld [vmem:[#allocation2 + $0x7c] sm:$0xf]  ;;  %v9048_v3 = vpop.f32.mrf.mxu0 }
 0x185   : > { %v4703_v52 = vsel %vm7208_vm5, %v4698_v30, %v4702_v2  ;;  %v6300_v19 = vrot.slane %v5268_v9, 9  ;;  %v4726_v2 = vrot.slane %v4724_v12, 5  ;;  %v4745_v11 = vor.u32 %v4744_v63, %v8990_v45 }
 0x186   : > { %v4753_v30 = vshrl.u32 %v4557_v35, 16  ;;  %v5373_v25 = vrot.slane %v4556_v61, 5  ;;  %v4756_v44 = vshll.u32 %v4557_v35, 16  ;;  %v4762_v54 = vshll.u32 %v9017_v59, 16  ;;  %v7055_v61 = vld [vmem:[#allocation2 + $0xcc] sm:$0xff]  }
 0x187   : > { %v4766_v4 = vshrl.u32 %v9017_v59, 16  ;;  %v9038_v9 = vcombine.low %v4693_v16, %v4703_v52  ;;  %v9044_v33 = vsel %vm7792_vm15, %v6300_v19, %v5370_v40  ;;  %v4717_v51 = vsel %vm7208_vm5, %v4712_v32, %v8964_v7  ;;  %v4559_v35 = vld [vmem:[#allocation2 + $0x74] sm:$0x1]  ;;  %v4560_v40 = vld [vmem:[#allocation2 + $0x78] sm:$0xf] }
 0x188   : > { %6925 = vmatmul.mubr.msk.bf16.gmra.mxu0 %vm1660_vm6, %v7053_v46  ;;  %v4727_v63 = vsel %vm7208_vm5, %v4722_v20, %v4726_v2  ;;  %v9057_v46 = vsel %vm7792_vm15, %v5372_v60, %v5373_v25  ;;  %v4750_v34 = vrot.slane %v4748_v27, 5  ;;  %v4736_v16 = vrot.slane %v4735_v57, 4  ;;  %v5269_v19 = vld [vmem:[#allocation2 + $0x6c] sm:$0xe]  ;;  %v9065_v2 = vld [vmem:[#allocation2 + $0x80] sm:$0x1] }
 0x189   : > { %6928 = vmatprep.mubr.msk.bf16.mxu0 %vm1660_vm6, %v7054_v10  ;;  %v9059_v10 = vpop.f32.mrf.mxu1  ;;  %v4746_v52 = vrot.slane %v4745_v11, 4  ;;  %v4758_v12 = vrot.slane %v4756_v44, 5  ;;  %v9062_v7 = vrot.slane %v4762_v54, 5  ;;  %v4768_v32 = vrot.slane %v4766_v4, 4  ;;  %v9091_v11 = vld [vmem:[#allocation2 + $0x88] sm:$0xf] }
 0x18a   : > { %10200 = vst [vmem:[#allocation20_spill] sm:$0xff] %v9059_v10  ;;  %v10100_v20 = vrot.slane %v9046_v26, 5  ;;  %v4777_v60 = vshrl.u32 %v4560_v40, 16  ;;  %v4780_v27 = vshll.u32 %v4560_v40, 16  ;;  %v4786_v25 = vshll.u32 %v9046_v26, 16 }
 0x18b   : > { %6887 = vmatmul.mubr.msk.bf16.gmra.mxu1 %vm1660_vm6, %v10197_v58  ;;  %v5377_v58 = vrot.slane %v9017_v59, 5  ;;  %v4790_v18 = vshrl.u32 %v9046_v26, 16  ;;  %v9072_v59 = vcombine.low %v4717_v51, %v4727_v63  ;;  %v5380_v44 = vrot.slane %v4559_v35, 5  ;;  %v9080_v4 = vpop.f32.mrf.mxu1 }
 0x18c   : > { %6890 = vmatprep.mubr.msk.bf16.mxu1 %vm1660_vm6, %v10199_v48  ;;  %v4755_v48 = vrot.slane %v4753_v30, 4  ;;  %v6301_v30 = vrot.slane %v5269_v19, 9  ;;  %v10202_v54 = vcombine.low %v8735_v47, %v8739_v31  ;;  %10203 = vst [vmem:[#allocation22_spill] sm:$0xff] %v9080_v4  ;;  %v10204_v40 = vcombine.low %v8824_v13, %v8828_v29  ;;  %v4563_v47 = vld [vmem:[#allocation2 + $0x84] sm:$0xf] }
 0x18d   : > { %v4751_v51 = vsel %vm7208_vm5, %v4746_v52, %v4750_v34  ;;  %v5379_v63 = vrot.slane %v5377_v58, 4  ;;  %v4772_v19 = vshll.u32 %v4559_v35, 16  ;;  %v10205_v31 = vcombine.low %v8743_v14, %v8751_v56 }
 0x18e   : > { %v4759_v29 = vor.u32 %v4758_v12, %v4755_v48  ;;  %v5387_v34 = vrot.slane %v9065_v2, 5  ;;  %v4779_v35 = vrot.slane %v4777_v60, 4  ;;  %v9103_v52 = vrot.slane %v4786_v25, 5  ;;  %v9109_v48 = vpop.f32.mrf.mxu1 }
 0x18f   : > { %v4792_v4 = vrot.slane %v4790_v18, 4  ;;  %v4801_v14 = vshrl.u32 %v4563_v47, 16  ;;  %v4804_v56 = vshll.u32 %v4563_v47, 16  ;;  %v4814_v12 = vshrl.u32 %v9091_v11, 16  ;;  %10208 = vst [vmem:[#allocation25_spill] sm:$0xff] %v9109_v48 }
 0x190   : > { %v9069_v57 = vpop.f32.mrf.mxu0  ;;  %6929 = vmatmul.mubr.msk.bf16.gmra.mxu0 %vm1660_vm6, %v7055_v61  ;;  %v4741_v61 = vsel %vm7208_vm5, %v4736_v16, %v8990_v45  ;;  %v5386_v45 = vrot.slane %v10100_v20, 4  ;;  %v4782_v16 = vrot.slane %v4780_v27, 5  ;;  %v9115_v20 = vsel %vm7792_vm15, %v6301_v30, %v5377_v58  ;;  %v9121_v27 = vld [vmem:[#allocation2 + $0x94] sm:$0xf] }
 0x191   : > { %10201 = vst [vmem:[#allocation21_spill] sm:$0xff] %v9069_v57  ;;  %6968 = vmatprep.mubr.msk.bf16.mxu0 %vm1660_vm6, %v10204_v40  ;;  %v5270_v40 = vld [vmem:[#allocation2 + $0x78] sm:$0xe]  ;;  %v9119_v60 = vsel %vm7792_vm15, %v5379_v63, %v5380_v44  ;;  %v4760_v47 = vrot.slane %v4759_v29, 4  ;;  %v4774_v41 = vrot.slane %v4772_v19, 5  ;;  %v4793_v58 = vor.u32 %v4792_v4, %v9103_v52 }
 0x192   : > { %v9097_v13 = vpop.f32.mrf.mxu0  ;;  %v6302_v18 = vrot.slane %v5270_v40, 9  ;;  %v4783_v48 = vor.u32 %v4782_v16, %v4779_v35  ;;  %v4796_v30 = vshll.u32 %v9065_v2, 16  ;;  %v5391_v44 = vrot.slane %v9091_v11, 5  ;;  %v9138_v19 = vld [vmem:[#allocation2 + $0x8c] sm:$0x1] }
 0x193   : > { %6891 = vmatmul.mubr.msk.bf16.gmra.mxu1 %vm1660_vm6, %v10202_v54  ;;  %10206 = vst [vmem:[#allocation23_spill] sm:$0xff] %v9097_v13  ;;  %v4769_v54 = vor.u32 %v4768_v32, %v9062_v7  ;;  %v9111_v32 = vcombine.low %v4741_v61, %v4751_v51  ;;  %v9127_v61 = vsel %vm7792_vm15, %v5386_v45, %v5387_v34  ;;  %v4566_v51 = vld [vmem:[#allocation2 + $0x90] sm:$0xf]  ;;  %v4803_v29 = vrot.slane %v4801_v14, 4 }
 0x194   : > { %6894 = vmatprep.mubr.msk.bf16.mxu1 %vm1660_vm6, %v10205_v31  ;;  %v9105_v10 = vpop.f32.mrf.mxu0  ;;  %v4810_v31 = vshll.u32 %v9091_v11, 16  ;;  %v10210_v40 = vcombine.low %v8843_v1, %v8849_v42  ;;  %v4816_v34 = vrot.slane %v4814_v12, 4  ;;  %v10212_v2 = vcombine.low %v8759_v49, %v8763_v17  ;;  %v9171_v12 = vld [vmem:[#allocation2 + $0xa0] sm:$0xf] }
 0x195   : > { %10207 = vst [vmem:[#allocation24_spill] sm:$0xff] %v9105_v10  ;;  %v4770_v5 = vrot.slane %v4769_v54, 4  ;;  %v4806_v54 = vrot.slane %v4804_v56, 5  ;;  %v10213_v4 = vcombine.low %v8878_v50, %v8889_v21  ;;  %v4825_v1 = vshrl.u32 %v4566_v51, 16 }
 0x196   : > { %v9123_v25 = vpop.f32.mrf.mxu0  ;;  %v9140_v45 = vrot.slane %v4810_v31, 5  ;;  %v4828_v42 = vshll.u32 %v4566_v51, 16  ;;  %v4834_v16 = vshll.u32 %v9121_v27, 16  ;;  %v4838_v14 = vshrl.u32 %v9121_v27, 16 }
 0x197   : > { %10209 = vst [vmem:[#allocation26_spill] sm:$0xff] %v9123_v25  ;;  %v4765_v17 = vsel %vm7208_vm5, %v4760_v47, %v9062_v7  ;;  %v4775_v50 = vsel %vm7208_vm5, %v4770_v5, %v4774_v41  ;;  %v10214_v21 = vrot.slane %v9046_v26, 5  ;;  %v5394_v7 = vrot.slane %v9138_v19, 5  ;;  %v4569_v47 = vld [vmem:[#allocation2 + $0x9c] sm:$0xf] }
 0x198   : > { %v9132_v63 = vpop.f32.mrf.mxu0  ;;  %6969 = vmatmul.mubr.msk.bf16.vlgmr.msra.gmra.mxu0 %vm1660_vm6, %v10210_v40  ;;  %v4784_v40 = vrot.slane %v4783_v48, 4  ;;  %v4794_v41 = vrot.slane %v4793_v58, 4  ;;  %v5271_v5 = vld [vmem:[#allocation2 + $0x84] sm:$0xe]  ;;  %v5393_v26 = vrot.slane %v5391_v44, 4  ;;  %v9185_v51 = vrot.slane %v4834_v16, 5 }
 0x199   : > { %v9142_v35 = vpop.f32.mrf.mxu1  ;;  %6972 = vmatprep.mubr.msk.bf16.mxu0 %vm1660_vm6, %v10213_v4  ;;  %v9169_v31 = vsel %vm7792_vm15, %v6302_v18, %v10214_v21  ;;  %v4807_v18 = vor.u32 %v4806_v54, %v4803_v29  ;;  %v4817_v21 = vor.u32 %v4816_v34, %v9140_v45  ;;  %v4840_v48 = vrot.slane %v4838_v14, 4 }
 0x19a   : > { %10211 = vst [vmem:[#allocation27_spill] sm:$0xff] %v9142_v35  ;;  %v9156_v56 = vpop.f32.mrf.mxu0  ;;  %v4830_v35 = vrot.slane %v4828_v42, 5  ;;  %v4849_v25 = vshrl.u32 %v4569_v47, 16  ;;  %v4852_v10 = vshll.u32 %v4569_v47, 16  ;;  %v4858_v58 = vshll.u32 %v9171_v12, 16 }
 0x19b   : > { %6895 = vmatmul.mubr.msk.bf16.gmra.mxu1 %vm1660_vm6, %v10212_v2  ;;  %v4798_v2 = vrot.slane %v4796_v30, 5  ;;  %v4862_v13 = vshrl.u32 %v9171_v12, 16  ;;  %v9193_v29 = vcombine.low %v4765_v17, %v4775_v50  ;;  %v4789_v54 = vsel %vm7208_vm5, %v4784_v40, %v9103_v52  ;;  %v4568_v52 = vld [vmem:[#allocation2 + $0x98] sm:$0x1]  ;;  %v9213_v40 = vld [vmem:[#allocation2 + $0x90] sm:$0xe] }
 0x19c   : > { %6934 = vmatprep.mubr.msk.bf16.mxu1 %vm1660_vm6, %v8902_v36  ;;  %v9173_v36 = vpop.f32.mrf.mxu1  ;;  %v9178_v4 = vpop.f32.mrf.mxu0  ;;  %v6303_v34 = vrot.slane %v5271_v5, 9  ;;  %v10219_v16 = vcombine.low %v8922_v8, %v8932_v37  ;;  %v9209_v17 = vsel %vm7792_vm15, %v5393_v26, %v5394_v7  ;;  %v9211_v50 = vrot.slane %v4807_v18, 4 }
 0x19d   : > { %10215 = vst [vmem:[#allocation28_spill] sm:$0xff] %v9173_v36  ;;  %v4827_v36 = vrot.slane %v4825_v1, 4  ;;  %10218 = vst [vmem:[#allocation31_spill] sm:$0xff] %v9193_v29  ;;  %v4820_v1 = vshll.u32 %v9138_v19, 16  ;;  %v4799_v14 = vsel %vm7208_vm5, %v4794_v41, %v4798_v2  ;;  %v10101_v19 = vrot.slane %v9121_v27, 5 }
 0x19e   : > { %v9183_v49 = vpop.f32.mrf.mxu1  ;;  %v9187_v30 = vpop.f32.mrf.mxu0  ;;  %10220 = vst [vmem:[#allocation32_spill] sm:$0xff] %v9209_v17  ;;  %v10221_v8 = vcombine.low %v8998_v39, %v9002_v6  ;;  %v9224_v37 = vrot.slane %v4817_v21, 4  ;;  %v4841_v7 = vor.u32 %v4840_v48, %v9185_v51  ;;  %v5405_v41 = vrot.slane %v9171_v12, 5  ;;  %v4571_v48 = vld [vmem:[#allocation2 + $0xa4] sm:$0x1] }
 0x19f   : > { %10216 = vst [vmem:[#allocation29_spill] sm:$0xff] %v9183_v49  ;;  %v4831_v2 = vor.u32 %v4830_v35, %v4827_v36  ;;  %v4851_v26 = vrot.slane %v4849_v25, 4  ;;  %v4854_v18 = vrot.slane %v4852_v10, 5  ;;  %v9240_v6 = vsel %vm7792_vm15, %v6303_v34, %v5391_v44  ;;  %v5274_v17 = vld [vmem:[#allocation2 + $0xa8] sm:$0xe] }
 0x1a0   : > { %v9191_v57 = vpop.f32.mrf.mxu1  ;;  %v9199_v42 = vpop.f32.mrf.mxu0  ;;  %6973 = vmatmul.mubr.msk.bf16.gmra.mxu0 %vm1660_vm6, %v10219_v16  ;;  %v4864_v16 = vrot.slane %v4862_v13, 4  ;;  %10222 = vst [vmem:[#allocation33_spill] sm:$0xff] %v9240_v6  ;;  %v4822_v35 = vrot.slane %v4820_v1, 5  ;;  %v6304_v12 = vrot.slane %v9213_v40, 9  ;;  %v4844_v36 = vshll.u32 %v4568_v52, 16 }
 0x1a1   : > { %10217 = vst [vmem:[#allocation30_spill] sm:$0xff] %v9191_v57  ;;  %6976 = vmatprep.mubr.msk.bf16.mxu0 %vm1660_vm6, %v10221_v8  ;;  %v9245_v25 = vcombine.low %v4789_v54, %v4799_v14  ;;  %v5400_v13 = vrot.slane %v10101_v19, 4  ;;  %v5401_v11 = vrot.slane %v4568_v52, 5  ;;  %v4813_v34 = vsel %vm7208_vm5, %v9211_v50, %v9140_v45  ;;  %v4573_v40 = vld [vmem:[#allocation2 + $0xac] sm:$0xf] }
 0x1a2   : > { %v9216_v47 = vpop.f32.mrf.mxu1  ;;  %v9230_v5 = vpop.f32.mrf.mxu0  ;;  %v4823_v54 = vsel %vm7208_vm5, %v9224_v37, %v4822_v35  ;;  %v4832_v1 = vrot.slane %v4831_v2, 4  ;;  %v5407_v14 = vrot.slane %v5405_v41, 4  ;;  %v4842_v10 = vrot.slane %v4841_v7, 4 }
 0x1a3   : > { %6935 = vmatmul.mubr.msk.bf16.vlgmr.msra.gmra.mxu1 %vm1660_vm6, %v8904_v23  ;;  %v9232_v23 = vrot.slane %v4858_v58, 5  ;;  %10223 = vst [vmem:[#allocation34_spill] sm:$0xff] %v9245_v25  ;;  %v4572_v58 = vld [vmem:[#allocation2 + $0xa8] sm:$0xf]  ;;  %v4855_v52 = vor.u32 %v4854_v18, %v4851_v26  ;;  %v4846_v25 = vrot.slane %v4844_v36, 5  ;;  %v5408_v29 = vrot.slane %v4571_v48, 5 }
 0x1a4   : > { %6938 = vmatprep.mubr.msk.bf16.mxu1 %vm1660_vm6, %v8948_v43  ;;  %v9234_v39 = vpop.f32.mrf.mxu1  ;;  %v5273_v43 = vld [vmem:[#allocation2 + $0x9c] sm:$0xe]  ;;  %v9243_v21 = vpop.f32.mrf.mxu0  ;;  %v4873_v6 = vshrl.u32 %v4572_v58, 16  ;;  %v4876_v45 = vshll.u32 %v4572_v58, 16  ;;  %v10224_v37 = vcombine.low %v9006_v53, %v9015_v55  ;;  %v4868_v2 = vshll.u32 %v4571_v48, 16 }
 0x1a5   : > { %v6305_v19 = vrot.slane %v5273_v43, 9  ;;  %v4865_v57 = vor.u32 %v4864_v16, %v9232_v23  ;;  %v5412_v35 = vrot.slane %v4573_v40, 5  ;;  %v4882_v7 = vshll.u32 %v4573_v40, 16  ;;  %v9304_v48 = vld [vmem:[#allocation2 + $0xb0] sm:$0x1] }
 0x1a6   : > { %v6733_v44 = vpop.f32.mrf.mxu1  ;;  %v9258_v8 = vpop.f32.mrf.mxu0  ;;  %v4886_v43 = vshrl.u32 %v4573_v40, 16  ;;  %v10225_v18 = vcombine.low %v9044_v33, %v9057_v46  ;;  %v9275_v16 = vsel %vm7792_vm15, %v5400_v13, %v5401_v11  ;;  %v4837_v53 = vsel %vm7208_vm5, %v4832_v1, %v9185_v51 }
 0x1a7   : > { %v9282_v55 = vsel %vm7792_vm15, %v5407_v14, %v5408_v29  ;;  %v4847_v33 = vsel %vm7208_vm5, %v4842_v10, %v4846_v25  ;;  %v9290_v46 = vrot.slane %v4855_v52, 4  ;;  %v9292_v36 = vrot.slane %v4865_v57, 4 }
 0x1a8   : > { %v2042_v49 = vpop.f32.mrf.mxu1  ;;  %v9261_v50 = vpop.f32.mrf.mxu0  ;;  %6977 = vmatmul.mubr.msk.bf16.gmra.mxu0 %vm1660_vm6, %v10224_v37  ;;  %v6306_v13 = vrot.slane %v5274_v17, 9  ;;  %v10226_v51 = vrot.slane %v9121_v27, 5  ;;  %v4875_v58 = vrot.slane %v4873_v6, 4  ;;  %v4878_v25 = vrot.slane %v4876_v45, 5 }
 0x1a9   : > { %6980 = vmatprep.mubr.msk.bf16.mxu0 %vm1660_vm6, %v10225_v18  ;;  %v9308_v57 = vrot.slane %v4868_v2, 5  ;;  %v5414_v17 = vrot.slane %v5412_v35, 4  ;;  %v9310_v1 = vrot.slane %v4882_v7, 5  ;;  %v4888_v27 = vrot.slane %v4886_v43, 4  ;;  %v10227_v7 = vld [vmem:[#allocation10_spill] sm:$0xff] }
 0x1aa   : > { %v6736_v26 = vpop.f32.mrf.mxu1  ;;  %v9298_v29 = vsel %vm7792_vm15, %v6304_v12, %v10226_v51  ;;  %v9312_v40 = vcombine.low %v4813_v34, %v4823_v54  ;;  %v4861_v52 = vsel %vm7208_vm5, %v9290_v46, %v9232_v23  ;;  %v9332_v54 = vsel %vm7792_vm15, %v6306_v13, %v5412_v35  ;;  %v10228_v46 = vld [vmem:[#allocation12_spill] sm:$0xff]  ;;  %v10229_v35 = vld [vmem:[#allocation15_spill] sm:$0xff] }
 0x1ab   : > { %6939 = vmatmul.mubr.msk.bf16.gmra.mxu1 %vm1660_vm6, %v8992_v28  ;;  %v9286_v28 = vpop.f32.mrf.mxu0  ;;  %v6321_v12 = vcombine.low %v9298_v29, %v9275_v16  ;;  %v4871_v34 = vsel %vm7208_vm5, %v9292_v36, %v9308_v57  ;;  %v5415_v45 = vrot.slane %v9304_v48, 5  ;;  %v2048_v37 = vadd.f32 %v9216_v47, %v8782_v38 }
 0x1ac   : > { %6942 = vmatprep.mubr.msk.bf16.mxu1 %vm1660_vm6, %v9038_v9  ;;  %v2055_v11 = vpop.f32.mrf.mxu1  ;;  %v9302_v9 = vsel %vm7792_vm15, %v6305_v19, %v5405_v41  ;;  %v9316_v19 = vcombine.low %v4837_v53, %v4847_v33  ;;  %v2040_v2 = vadd.f32 %v9234_v39, %v8795_v15  ;;  %v2051_v43 = vadd.f32 %v6733_v44, %v10227_v7  ;;  %v9340_v53 = vld [vmem:[#allocation2 + $0xb8] sm:$0xf]  ;;  %v9342_v33 = vld [vmem:[#allocation2 + $0xb4] sm:$0xf]  ;;  %v10231_v39 = vld [vmem:[#allocation6_spill] sm:$0xff] }
 0x1ad   : > { %v9306_v10 = vpop.f32.mrf.mxu0  ;;  %v6322_v41 = vcombine.low %v9302_v9, %v9282_v55  ;;  %v4879_v18 = vor.u32 %v4878_v25, %v4875_v58  ;;  %v2043_v36 = vadd.f32 %v2042_v49, %v10228_v46  ;;  %v2064_v13 = vadd.f32 %v6736_v26, %v10229_v35  ;;  %v10232_v58 = vld [vmem:[#allocation7_spill] sm:$0xff]  ;;  %v10233_v49 = vld [vmem:[#allocation8_spill] sm:$0xff] }
 0x1ae   : > { %v6737_v14 = vpop.f32.mrf.mxu1  ;;  %v10230_v38 = vcombine.low %v9115_v20, %v9119_v60  ;;  %v9354_v15 = vsel %vm7792_vm15, %v5414_v17, %v5415_v45  ;;  %v4889_v47 = vor.u32 %v4888_v27, %v9310_v1  ;;  %v2056_v44 = vadd.f32 %v2055_v11, %v10231_v39  ;;  %v10235_v60 = vld [vmem:[#allocation16_spill] sm:$0xff]  ;;  %v5275_v35 = vld [vmem:[#allocation2 + $0xb4] sm:$0xe] }
 0x1af   : > { %v9320_v6 = vpop.f32.mrf.mxu0  ;;  %v2067_v25 = vadd.f32 %v6737_v14, %v10232_v58  ;;  %v10234_v20 = vcombine.low %v9169_v31, %v9127_v61  ;;  %v4892_v11 = vshll.u32 %v9304_v48, 16  ;;  %v5419_v14 = vrot.slane %v9340_v53, 5  ;;  %v10237_v58 = vld [vmem:[#allocation32_spill] sm:$0xff] }
 0x1b0   : > { %v2058_v23 = vpop.f32.mrf.mxu1  ;;  %6981 = vmatmul.mubr.msk.bf16.gmra.mxu0 %vm1660_vm6, %v10230_v38  ;;  %v4897_v45 = vshrl.u32 %v9342_v33, 16  ;;  %v9378_v61 = vadd.f32 %v9156_v56, %v2040_v2  ;;  %v9381_v31 = vadd.f32 %v9178_v4, %v2051_v43  ;;  %v4890_v48 = vrot.slane %v4889_v47, 4 }
 0x1b1   : > { %v9346_v51 = vpop.f32.mrf.mxu0  ;;  %v2059_v57 = vadd.f32 %v2058_v23, %v10233_v49  ;;  %6984 = vmatprep.mubr.msk.bf16.mxu0 %vm1660_vm6, %v10234_v20  ;;  %v9375_v23 = vadd.f32 %v9132_v63, %v2048_v37  ;;  %v9387_v38 = vadd.f32 %v9187_v30, %v2043_v36  ;;  %v9392_v37 = vld [vmem:[#allocation2 + $0xbc] sm:$0x1]  ;;  %v4900_v56 = vshll.u32 %v9342_v33, 16  ;;  %v10239_v49 = vld [vmem:[#allocation31_spill] sm:$0xff]  ;;  %v10240_v20 = vld [vmem:[#allocation21_spill] sm:$0xff] }
 0x1b2   : > { %v6740_v26 = vpop.f32.mrf.mxu1  ;;  %v9396_v4 = vadd.f32 %v9230_v5, %v2056_v44  ;;  %v9413_v5 = vcombine.low %v4861_v52, %v4871_v34  ;;  %v4894_v47 = vrot.slane %v4892_v11, 5  ;;  %v10236_v44 = vld [vmem:[#allocation33_spill] sm:$0xff] }
 0x1b3   : > { %6943 = vmatmul.mubr.msk.bf16.gmra.mxu1 %vm1660_vm6, %v9072_v59  ;;  %v2080_v17 = vadd.f32 %v6740_v26, %v10235_v60  ;;  %v9369_v27 = vpop.f32.mrf.mxu0  ;;  %v4880_v59 = vrot.slane %v4879_v18, 4  ;;  %v9390_v18 = vadd.f32 %v9199_v42, %v2064_v13  ;;  %v9402_v2 = vadd.f32 %v9258_v8, %v2059_v57  ;;  %v9426_v52 = vld [vmem:[#allocation2 + $0xc4] sm:$0xf]  ;;  %v4578_v34 = vld [vmem:[#allocation2 + $0xc0] sm:$0xf] }
 0x1b4   : > { %6946 = vmatprep.mubr.msk.bf16.mxu1 %vm1660_vm6, %v9111_v32  ;;  %v2071_v7 = vpop.f32.mrf.mxu1  ;;  %v5421_v42 = vrot.slane %v5419_v14, 4  ;;  %v6307_v8 = vrot.slane %v5275_v35, 9  ;;  %v4895_v57 = vsel %vm7208_vm5, %v4890_v48, %v4894_v47  ;;  %v9442_v26 = vrot.slane %v4897_v45, 4 }
 0x1b5   : > { %v2072_v32 = vadd.f32 %v2071_v7, %v8984_v0  ;;  %v9384_v46 = vpop.f32.mrf.mxu0  ;;  %v9399_v0 = vadd.f32 %v9243_v21, %v2067_v25  ;;  %v9408_v36 = vadd.f32 %v9261_v50, %v2080_v17  ;;  %v6323_v21 = vcombine.low %v9332_v54, %v9354_v15  ;;  %v10241_v17 = vld [vmem:[#allocation34_spill] sm:$0xff] }
 0x1b6   : > { %v6741_v63 = vpop.f32.mrf.mxu1  ;;  %v10238_v25 = vcombine.low %v10236_v44, %v10237_v58  ;;  %v5422_v50 = vrot.slane %v9392_v37, 5  ;;  %v9454_v29 = vrot.slane %v4900_v56, 5  ;;  %v5426_v45 = vrot.slane %v9426_v52, 5  ;;  %v5276_v56 = vld [vmem:[#allocation2 + $0xc0] sm:$0xe]  ;;  %v10243_v44 = vld [vmem:[#allocation24_spill] sm:$0xff] }
 0x1b7   : > { %v2083_v30 = vadd.f32 %v6741_v63, %v9020_v62  ;;  %v9405_v43 = vpop.f32.mrf.mxu0  ;;  %v9411_v13 = vadd.f32 %v9286_v28, %v2072_v32  ;;  %v4906_v28 = vshll.u32 %v9340_v53, 16  ;;  %v4921_v7 = vshrl.u32 %v4578_v34, 16  ;;  %v10242_v32 = vld [vmem:[#allocation23_spill] sm:$0xff] }
 0x1b8   : > { %v2074_v33 = vpop.f32.mrf.mxu1  ;;  %6985 = vmatmul.mubr.msk.bf16.gmra.mxu0 %vm1660_vm6, %v10238_v25  ;;  %v9452_v16 = vsel %vm7792_vm15, %v5421_v42, %v5422_v50  ;;  %v4916_v50 = vshll.u32 %v9392_v37, 16 }
 0x1b9   : > { %v2075_v39 = vadd.f32 %v2074_v33, %v9048_v3  ;;  %v9418_v62 = vpop.f32.mrf.mxu0  ;;  %v9429_v54 = vadd.f32 %v9306_v10, %v2083_v30  ;;  %6988 = vmatprep.mubr.msk.bf16.mxu0 %vm1660_vm6, %v6321_v12  ;;  %v4885_v3 = vsel %vm7208_vm5, %v4880_v59, %v9310_v1  ;;  %v4910_v10 = vshrl.u32 %v9340_v53, 16 }
 0x1ba   : > { %v6744_v15 = vpop.f32.mrf.mxu1  ;;  %v9461_v53 = vsel %vm7792_vm15, %v6307_v8, %v5419_v14  ;;  %v4924_v59 = vshll.u32 %v4578_v34, 16  ;;  %v9467_v63 = vcombine.low %v4885_v3, %v4895_v57  ;;  %v4930_v30 = vshll.u32 %v9426_v52, 16  ;;  %v9479_v8 = vld [vmem:[#allocation2 + $0xc8] sm:$0x1]  ;;  %v4581_v34 = vld [vmem:[#allocation2 + $0xcc] sm:$0xf] }
 0x1bb   : > { %6947 = vmatmul.mubr.msk.bf16.gmra.mxu1 %vm1660_vm6, %v10239_v49  ;;  %v2096_v60 = vadd.f32 %v6744_v15, %v10240_v20  ;;  %v9448_v11 = vpop.f32.mrf.mxu0  ;;  %v9457_v1 = vadd.f32 %v9320_v6, %v2075_v39  ;;  %v9475_v33 = vrot.slane %v4906_v28, 5  ;;  %v9477_v47 = vrot.slane %v4910_v10, 4  ;;  %v4582_v20 = vld [vmem:[#allocation2 + $0xd0] sm:$0xf] }
 0x1bc   : > { %6950 = vmatprep.mubr.msk.bf16.mxu1 %vm1660_vm6, %v10241_v17  ;;  %v2087_v12 = vpop.f32.mrf.mxu1  ;;  %v4934_v39 = vshrl.u32 %v9426_v52, 16  ;;  %v6308_v49 = vrot.slane %v5276_v56, 9  ;;  %v5428_v3 = vrot.slane %v5426_v45, 4  ;;  %v4923_v57 = vrot.slane %v4921_v7, 4  ;;  %v10244_v52 = vld [vmem:[#allocation26_spill] sm:$0xff] }
 0x1bd   : > { %v2088_v48 = vadd.f32 %v2087_v12, %v10242_v32  ;;  %v9465_v35 = vpop.f32.mrf.mxu0  ;;  %v9471_v6 = vadd.f32 %v9346_v51, %v2096_v60  ;;  %v4903_v51 = vor.u32 %v9454_v29, %v9442_v26  ;;  %v4926_v10 = vrot.slane %v4924_v59, 5  ;;  %v5277_v59 = vld [vmem:[#allocation2 + $0xcc] sm:$0xe]  ;;  %v10245_v32 = vld [vmem:[#allocation11_spill] sm:$0xff] }
 0x1be   : > { %v6745_v42 = vpop.f32.mrf.mxu1  ;;  %v5429_v37 = vrot.slane %v9479_v8, 5  ;;  %v9499_v26 = vrot.slane %v4930_v30, 5  ;;  %v4936_v7 = vrot.slane %v4934_v39, 4  ;;  %v5433_v55 = vrot.slane %v4582_v20, 5 }
 0x1bf   : > { %v2099_v58 = vadd.f32 %v6745_v42, %v10243_v44  ;;  %v9483_v25 = vpop.f32.mrf.mxu0  ;;  %v9489_v15 = vadd.f32 %v9369_v27, %v2088_v48  ;;  %v9501_v27 = vld [vmem:[#allocation2 + $0xd4] sm:$0x1]  ;;  %v4945_v9 = vshrl.u32 %v4581_v34, 16  ;;  %v4958_v30 = vshrl.u32 %v4582_v20, 16 }
 0x1c0   : > { %v2090_v28 = vpop.f32.mrf.mxu1  ;;  %6989 = vmatmul.mubr.msk.bf16.gmra.mxu0 %vm1660_vm6, %v6322_v41  ;;  %v4948_v41 = vshll.u32 %v4581_v34, 16  ;;  %v5427_v39 = vsel %vm7792_vm15, %v6308_v49, %v5426_v45  ;;  %v5430_v44 = vsel %vm7792_vm15, %v5428_v3, %v5429_v37  ;;  %v10247_v34 = vld [vmem:[#allocation4_spill] sm:$0xff]  ;;  %v10249_v45 = vld [vmem:[#allocation14_spill] sm:$0xff] }
 0x1c1   : > { %v2091_v60 = vadd.f32 %v2090_v28, %v10244_v52  ;;  %v9492_v17 = vpop.f32.mrf.mxu0  ;;  %v9504_v29 = vadd.f32 %v9384_v46, %v2099_v58  ;;  %6992 = vmatprep.mubr.msk.bf16.mxu0 %vm1660_vm6, %v6323_v21  ;;  %v4954_v46 = vshll.u32 %v4582_v20, 16  ;;  %v4913_v21 = vor.u32 %v9477_v47, %v9475_v33 }
 0x1c2   : > { %v6748_v12 = vpop.f32.mrf.mxu1  ;;  %v4927_v58 = vor.u32 %v4926_v10, %v4923_v57  ;;  %v6309_v52 = vrot.slane %v5277_v59, 9  ;;  %v5436_v20 = vrot.slane %v9501_v27, 5  ;;  %v5435_v47 = vrot.slane %v5433_v55, 4 }
 0x1c3   : > { %6951 = vmatmul.mubr.msk.bf16.gmra.mxu1 %vm1660_vm6, %v9312_v40  ;;  %v2112_v48 = vadd.f32 %v6748_v12, %v10245_v32  ;;  %v9512_v56 = vpop.f32.mrf.mxu0  ;;  %v9515_v42 = vadd.f32 %v9405_v43, %v2091_v60  ;;  %v4937_v12 = vor.u32 %v4936_v7, %v9499_v26  ;;  %v4947_v32 = vrot.slane %v4945_v9, 4 }
 0x1c4   : > { %6954 = vmatprep.mubr.msk.bf16.mxu1 %vm1660_vm6, %v9316_v19  ;;  %v2103_v40 = vpop.f32.mrf.mxu1  ;;  %v4950_v14 = vrot.slane %v4948_v41, 5  ;;  %v9530_v3 = vrot.slane %v4954_v46, 5  ;;  %v4960_v57 = vrot.slane %v4958_v30, 4  ;;  %v4904_v59 = vrot.slane %v4903_v51, 4 }
 0x1c5   : > { %10246 = vst [vmem:[#allocation10_spill] sm:$0xff] %v9515_v42  ;;  %v2104_v19 = vadd.f32 %v2103_v40, %v10247_v34  ;;  %v6787_v28 = vpop.f32.mrf.mxu0  ;;  %v9526_v43 = vadd.f32 %v9418_v62, %v2112_v48  ;;  %v4918_v40 = vrot.slane %v4916_v50, 5  ;;  %v6325_v62 = vcombine.low %v5427_v39, %v5430_v44  ;;  %v10250_v34 = vld [vmem:[#allocation5_spill] sm:$0xff] }
 0x1c6   : > { %v6749_v60 = vpop.f32.mrf.mxu1  ;;  %v4940_v48 = vshll.u32 %v9479_v8, 16  ;;  %v10251_v9 = vcombine.low %v9461_v53, %v9452_v16  ;;  %v4914_v41 = vrot.slane %v4913_v21, 4  ;;  %v4928_v46 = vrot.slane %v4927_v58, 4  ;;  %v10252_v50 = vld [vmem:[#allocation13_spill] sm:$0xff] }
 0x1c7   : > { %10248 = vst [vmem:[#allocation12_spill] sm:$0xff] %v9526_v43  ;;  %v2115_v49 = vadd.f32 %v6749_v60, %v10249_v45  ;;  %v2547_v42 = vpop.f32.mrf.mxu0  ;;  %v9533_v10 = vadd.f32 %v9448_v11, %v2104_v19  ;;  %v4938_v8 = vrot.slane %v4937_v12, 4  ;;  %v5434_v51 = vsel %vm7792_vm15, %v6309_v52, %v5433_v55  ;;  %v10253_v19 = vld [vmem:[#allocation9_spill] sm:$0xff] }
 0x1c8   : > { %v2106_v37 = vpop.f32.mrf.mxu1  ;;  %6993 = vmatmul.mubr.msk.bf16.gmra.mxu0 %vm1660_vm6, %v10251_v9  ;;  %v5437_v16 = vsel %vm7792_vm15, %v5435_v47, %v5436_v20  ;;  %v4964_v53 = vshll.u32 %v9501_v27, 16  ;;  %v4951_v39 = vor.u32 %v4950_v14, %v4947_v32  ;;  %v4909_v24 = vsel %vm7208_vm5, %v4904_v59, %v9475_v33  ;;  %v10254_v47 = vld [vmem:[#allocation17_spill] sm:$0xff]  ;;  %v10256_v9 = vld [vmem:[#allocation19_spill] sm:$0xff] }
 0x1c9   : > { %v2107_v7 = vadd.f32 %v2106_v37, %v10250_v34  ;;  %v6790_v43 = vpop.f32.mrf.mxu0  ;;  %v9542_v30 = vadd.f32 %v9465_v35, %v2115_v49  ;;  %6996 = vmatprep.mubr.msk.bf16.mxu0 %vm1660_vm6, %v6325_v62  ;;  %v4942_v55 = vrot.slane %v4940_v48, 5  ;;  %v4919_v52 = vsel %vm7208_vm5, %v4914_v41, %v4918_v40  ;;  %v10255_v40 = vld [vmem:[#allocation18_spill] sm:$0xff] }
 0x1ca   : > { %v6752_v11 = vpop.f32.mrf.mxu1  ;;  %v4966_v33 = vrot.slane %v4964_v53, 5  ;;  %v4952_v49 = vrot.slane %v4951_v39, 4 }
 0x1cb   : > { %6955 = vmatmul.mubr.msk.bf16.gmra.mxu1 %vm1660_vm6, %v9413_v5  ;;  %v2128_v21 = vadd.f32 %v6752_v11, %v10252_v50  ;;  %v2560_v35 = vpop.f32.mrf.mxu0  ;;  %v4961_v5 = vor.u32 %v4960_v57, %v9530_v3  ;;  %v9557_v44 = vadd.f32 %v9483_v25, %v2107_v7  ;;  %v4933_v25 = vsel %vm7208_vm5, %v4928_v46, %v9499_v26 }
 0x1cc   : > { %6958 = vmatprep.mubr.msk.bf16.mxu1 %vm1660_vm6, %v9467_v63  ;;  %v2119_v58 = vpop.f32.mrf.mxu1  ;;  %v6326_v63 = vcombine.low %v5434_v51, %v5437_v16  ;;  %v4943_v12 = vsel %vm7208_vm5, %v4938_v8, %v4942_v55 }
 0x1cd   : > { %v2120_v27 = vadd.f32 %v2119_v58, %v10253_v19  ;;  %v6791_v20 = vpop.f32.mrf.mxu0  ;;  %v9566_v14 = vadd.f32 %v9492_v17, %v2128_v21  ;;  %v4962_v57 = vrot.slane %v4961_v5, 4  ;;  %v6275_v17 = vcombine.low %v4909_v24, %v4919_v52  ;;  %v10258_v5 = vld [vmem:[#allocation22_spill] sm:$0xff]  ;;  %v10259_v19 = vld [vmem:[#allocation25_spill] sm:$0xff] }
 0x1ce   : > { %v6753_v60 = vpop.f32.mrf.mxu1  ;;  %v6276_v48 = vcombine.low %v4933_v25, %v4943_v12 }
 0x1cf   : > { %v2131_v32 = vadd.f32 %v6753_v60, %v10254_v47  ;;  %v2563_v45 = vpop.f32.mrf.mxu0  ;;  %v9575_v37 = vadd.f32 %v9512_v56, %v2120_v27  ;;  %v4957_v56 = vsel %vm7208_vm5, %v4952_v49, %v9530_v3  ;;  %v4967_v46 = vsel %vm7208_vm5, %v4962_v57, %v4966_v33  ;;  %v10261_v33 = vld [vmem:[#allocation28_spill] sm:$0xff]  ;;  %v10262_v57 = vld [vmem:[#allocation29_spill] sm:$0xff] }
 0x1d0   : > { %v2122_v59 = vpop.f32.mrf.mxu1  ;;  %6997 = vmatmul.mubr.msk.bf16.gmra.mxu0 %vm1660_vm6, %v6326_v63  ;;  %v6277_v39 = vcombine.low %v4957_v56, %v4967_v46  ;;  %v10260_v63 = vld [vmem:[#allocation27_spill] sm:$0xff] }
 0x1d1   : > { %v2123_v62 = vadd.f32 %v2122_v59, %v10255_v40  ;;  %v6794_v34 = vpop.f32.mrf.mxu0  ;;  %v9579_v26 = vadd.f32 %v6787_v28, %v2131_v32  ;;  %v10257_v28 = vld [vmem:[#allocation20_spill] sm:$0xff] }
 0x1d2   : > { %v6756_v7 = vpop.f32.mrf.mxu1 }
 0x1d3   : > { %6959 = vmatmul.mubr.msk.bf16.gmra.mxu1 %vm1660_vm6, %v6275_v17  ;;  %v2144_v41 = vadd.f32 %v6756_v7, %v10256_v9  ;;  %v2576_v11 = vpop.f32.mrf.mxu0  ;;  %v9589_v8 = vadd.f32 %v2547_v42, %v2123_v62  ;;  %v10263_v62 = vld [vmem:[#allocation30_spill] sm:$0xff] }
 0x1d4   : > { %6962 = vmatprep.mubr.msk.bf16.mxu1 %vm1660_vm6, %v6276_v48  ;;  %v2135_v51 = vpop.f32.mrf.mxu1 }
 0x1d5   : > { %v2136_v16 = vadd.f32 %v2135_v51, %v10257_v28  ;;  %v6795_v53 = vpop.f32.mrf.mxu0  ;;  %v9592_v50 = vadd.f32 %v6790_v43, %v2144_v41 }
 0x1d6   : > { %v6757_v21 = vpop.f32.mrf.mxu1 }
 0x1d7   : > { %v2147_v58 = vadd.f32 %v6757_v21, %v10258_v5  ;;  %v2579_v24 = vpop.f32.mrf.mxu0  ;;  %v9595_v55 = vadd.f32 %v2560_v35, %v2136_v16 }
 0x1d8   : > { %v2138_v3 = vpop.f32.mrf.mxu1 }
 0x1d9   : > { %v2139_v22 = vadd.f32 %v2138_v3, %v10259_v19  ;;  %v6834_v27 = vpop.f32.mrf.mxu0  ;;  %v9598_v52 = vadd.f32 %v6791_v20, %v2147_v58 }
 0x1db   : > { %v6760_v42 = vpop.f32.mrf.mxu1  ;;  %6963 = vmatmul.mubr.msk.bf16.gmra.mxu1 %vm1660_vm6, %v6277_v39  ;;  %v3548_v43 = vpop.f32.mrf.mxu0  ;;  %v9602_v25 = vadd.f32 %v2563_v45, %v2139_v22 }
 0x1dc   : > { %v2160_v60 = vadd.f32 %v6760_v42, %v10260_v63 }
 0x1dd   : > { %v2151_v12 = vpop.f32.mrf.mxu1  ;;  %v6835_v32 = vpop.f32.mrf.mxu0 }
 0x1de   : > { %v2152_v47 = vadd.f32 %v2151_v12, %v10261_v33  ;;  %v9605_v35 = vadd.f32 %v6794_v34, %v2160_v60 }
 0x1df   : > { %v6761_v49 = vpop.f32.mrf.mxu1  ;;  %v3551_v17 = vpop.f32.mrf.mxu0 }
 0x1e0   : > { %v2163_v59 = vadd.f32 %v6761_v49, %v10262_v57  ;;  %v9608_v20 = vadd.f32 %v2576_v11, %v2152_v47 }
 0x1e1   : > { %v2154_v40 = vpop.f32.mrf.mxu1  ;;  %v6838_v7 = vpop.f32.mrf.mxu0 }
 0x1e2   : > { %v2155_v48 = vadd.f32 %v2154_v40, %v10263_v62  ;;  %v9611_v9 = vadd.f32 %v6795_v53, %v2163_v59 }
 0x1e3   : > { %v6800_v45 = vpop.f32.mrf.mxu1  ;;  %v3564_v56 = vpop.f32.mrf.mxu0 }
 0x1e4   : > { %v2951_v41 = vadd.f32 %v6800_v45, %v9375_v23  ;;  %v9614_v46 = vadd.f32 %v2579_v24, %v2155_v48 }
 0x1e5   : > { %v2822_v34 = vpop.f32.mrf.mxu1  ;;  %v6839_v28 = vpop.f32.mrf.mxu0 }
 0x1e6   : > { %v2949_v51 = vadd.f32 %v2822_v34, %v9378_v61  ;;  %v9617_v16 = vadd.f32 %v6834_v27, %v2951_v41 }
 0x1e7   : > { %v6801_v11 = vpop.f32.mrf.mxu1  ;;  %v3567_v39 = vpop.f32.mrf.mxu0 }
 0x1e8   : > { %v2952_v21 = vadd.f32 %v6801_v11, %v9381_v31  ;;  %v9620_v5 = vadd.f32 %v3548_v43, %v2949_v51 }
 0x1e9   : > { %v2825_v53 = vpop.f32.mrf.mxu1  ;;  %v6842_v3 = vpop.f32.mrf.mxu0 }
 0x1ea   : > { %v2950_v58 = vadd.f32 %v2825_v53, %v9387_v38  ;;  %v9623_v23 = vadd.f32 %v6835_v32, %v2952_v21 }
 0x1eb   : > { %v6804_v24 = vpop.f32.mrf.mxu1  ;;  %v3580_v22 = vpop.f32.mrf.mxu0 }
 0x1ec   : > { %v2955_v19 = vadd.f32 %v6804_v24, %v9390_v18  ;;  %v9626_v61 = vadd.f32 %v3551_v17, %v2950_v58 }
 0x1ed   : > { %v2838_v27 = vpop.f32.mrf.mxu1  ;;  %v6843_v63 = vpop.f32.mrf.mxu0 }
 0x1ee   : > { %v2953_v42 = vadd.f32 %v2838_v27, %v9396_v4  ;;  %v9629_v31 = vadd.f32 %v6838_v7, %v2955_v19 }
 0x1ef   : > { %v6805_v60 = vpop.f32.mrf.mxu1  ;;  %v3583_v12 = vpop.f32.mrf.mxu0 }
 0x1f0   : > { %v2956_v43 = vadd.f32 %v6805_v60, %v9399_v0  ;;  %v9632_v38 = vadd.f32 %v3564_v56, %v2953_v42  ;;  %v10265_v60 = vld [vmem:[#allocation12_spill] sm:$0xff] }
 0x1f1   : > { %v2841_v33 = vpop.f32.mrf.mxu1  ;;  %v6846_v32 = vpop.f32.mrf.mxu0 }
 0x1f2   : > { %v2954_v47 = vadd.f32 %v2841_v33, %v9402_v2  ;;  %v9635_v18 = vadd.f32 %v6839_v28, %v2956_v43 }
 0x1f3   : > { %v6808_v49 = vpop.f32.mrf.mxu1  ;;  %v3596_v59 = vpop.f32.mrf.mxu0 }
 0x1f4   : > { %v2959_v57 = vadd.f32 %v6808_v49, %v9408_v36  ;;  %v9638_v4 = vadd.f32 %v3567_v39, %v2954_v47 }
 0x1f5   : > { %v2854_v17 = vpop.f32.mrf.mxu1  ;;  %v6847_v62 = vpop.f32.mrf.mxu0 }
 0x1f6   : > { %v2957_v40 = vadd.f32 %v2854_v17, %v9411_v13  ;;  %v9641_v0 = vadd.f32 %v6842_v3, %v2959_v57 }
 0x1f7   : > { %v6809_v48 = vpop.f32.mrf.mxu1  ;;  %v3599_v45 = vpop.f32.mrf.mxu0 }
 0x1f8   : > { %v2960_v7 = vadd.f32 %v6809_v48, %v9429_v54  ;;  %v9644_v2 = vadd.f32 %v3580_v22, %v2957_v40  ;;  %v10264_v22 = vld [vmem:[#allocation10_spill] sm:$0xff] }
 0x1f9   : > { %v2857_v41 = vpop.f32.mrf.mxu1  ;;  %v6850_v34 = vpop.f32.mrf.mxu0 }
 0x1fa   : > { %v2958_v56 = vadd.f32 %v2857_v41, %v9457_v1  ;;  %v9647_v36 = vadd.f32 %v6843_v63, %v2960_v7 }
 0x1fb   : > { %v6812_v51 = vpop.f32.mrf.mxu1  ;;  %v3612_v11 = vpop.f32.mrf.mxu0 }
 0x1fc   : > { %v2963_v28 = vadd.f32 %v6812_v51, %v9471_v6  ;;  %v9650_v13 = vadd.f32 %v3583_v12, %v2958_v56 }
 0x1fd   : > { %v2870_v21 = vpop.f32.mrf.mxu1  ;;  %v6851_v53 = vpop.f32.mrf.mxu0 }
 0x1fe   : > { %v2961_v39 = vadd.f32 %v2870_v21, %v9489_v15  ;;  %v9653_v54 = vadd.f32 %v6846_v32, %v2963_v28 }
 0x1ff   : > { %v6813_v58 = vpop.f32.mrf.mxu1  ;;  %v3615_v24 = vpop.f32.mrf.mxu0 }
 0x200   : > { %v2964_v3 = vadd.f32 %v6813_v58, %v9504_v29  ;;  %v9656_v1 = vadd.f32 %v3596_v59, %v2961_v39 }
 0x201   : > { %v2873_v19 = vpop.f32.mrf.mxu1  ;;  %v6854_v42 = vpop.f32.mrf.mxu0 }
 0x202   : > { %v2962_v27 = vadd.f32 %v2873_v19, %v10264_v22  ;;  %v9659_v6 = vadd.f32 %v6847_v62, %v2964_v3 }
 0x203   : > { %v6816_v63 = vpop.f32.mrf.mxu1  ;;  %v3628_v12 = vpop.f32.mrf.mxu0 }
 0x204   : > { %v2967_v43 = vadd.f32 %v6816_v63, %v10265_v60  ;;  %v9662_v15 = vadd.f32 %v3599_v45, %v2962_v27 }
 0x205   : > { %v2886_v33 = vpop.f32.mrf.mxu1  ;;  %v6855_v32 = vpop.f32.mrf.mxu0 }
 0x206   : > { %v2965_v47 = vadd.f32 %v2886_v33, %v9533_v10  ;;  %v9665_v29 = vadd.f32 %v6850_v34, %v2967_v43 }
 0x207   : > { %v6817_v49 = vpop.f32.mrf.mxu1  ;;  %v3631_v59 = vpop.f32.mrf.mxu0 }
 0x208   : > { %v2968_v57 = vadd.f32 %v6817_v49, %v9542_v30  ;;  %v9668_v17 = vadd.f32 %v3612_v11, %v2965_v47 }
 0x209   : > { %v2889_v40 = vpop.f32.mrf.mxu1  ;;  %v6858_v48 = vpop.f32.mrf.mxu0 }
 0x20a   : > { %v2966_v62 = vadd.f32 %v2889_v40, %v9557_v44  ;;  %v9671_v7 = vadd.f32 %v6851_v53, %v2968_v57 }
 0x20b   : > { %v6820_v45 = vpop.f32.mrf.mxu1  ;;  %v3644_v56 = vpop.f32.mrf.mxu0 }
 0x20c   : > { %10266 = vst [vmem:[#allocation15_spill] sm:$0xff] %v9671_v7  ;;  %v2971_v41 = vadd.f32 %v6820_v45, %v9566_v14  ;;  %v9674_v10 = vadd.f32 %v3615_v24, %v2966_v62 }
 0x20d   : > { %v2902_v34 = vpop.f32.mrf.mxu1  ;;  %v6859_v28 = vpop.f32.mrf.mxu0 }
 0x20e   : > { %10267 = vst [vmem:[#allocation6_spill] sm:$0xff] %v9674_v10  ;;  %v2969_v51 = vadd.f32 %v2902_v34, %v9575_v37  ;;  %v9677_v30 = vadd.f32 %v6854_v42, %v2971_v41 }
 0x20f   : > { %v6821_v11 = vpop.f32.mrf.mxu1  ;;  %v3647_v39 = vpop.f32.mrf.mxu0 }
 0x210   : > { %10268 = vst [vmem:[#allocation7_spill] sm:$0xff] %v9677_v30  ;;  %v2972_v21 = vadd.f32 %v6821_v11, %v9579_v26  ;;  %v9680_v44 = vadd.f32 %v3628_v12, %v2969_v51 }
 0x211   : > { %v2905_v53 = vpop.f32.mrf.mxu1  ;;  %v6862_v3 = vpop.f32.mrf.mxu0 }
 0x212   : > { %10269 = vst [vmem:[#allocation8_spill] sm:$0xff] %v9680_v44  ;;  %v2970_v58 = vadd.f32 %v2905_v53, %v9589_v8  ;;  %v9683_v14 = vadd.f32 %v6855_v32, %v2972_v21 }
 0x213   : > { %v6824_v24 = vpop.f32.mrf.mxu1  ;;  %v3660_v22 = vpop.f32.mrf.mxu0 }
 0x214   : > { %10270 = vst [vmem:[#allocation16_spill] sm:$0xff] %v9683_v14  ;;  %v2975_v19 = vadd.f32 %v6824_v24, %v9592_v50  ;;  %v9686_v37 = vadd.f32 %v3631_v59, %v2970_v58 }
 0x215   : > { %v2918_v27 = vpop.f32.mrf.mxu1  ;;  %v6863_v63 = vpop.f32.mrf.mxu0 }
 0x216   : > { %10271 = vst [vmem:[#allocation33_spill] sm:$0xff] %v9686_v37  ;;  %v2973_v42 = vadd.f32 %v2918_v27, %v9595_v55  ;;  %v9689_v26 = vadd.f32 %v6858_v48, %v2975_v19 }
 0x217   : > { %v6825_v60 = vpop.f32.mrf.mxu1  ;;  %v3663_v12 = vpop.f32.mrf.mxu0 }
 0x218   : > { %10272 = vst [vmem:[#allocation32_spill] sm:$0xff] %v9689_v26  ;;  %v2976_v43 = vadd.f32 %v6825_v60, %v9598_v52  ;;  %v9692_v8 = vadd.f32 %v3644_v56, %v2973_v42 }
 0x219   : > { %v2921_v33 = vpop.f32.mrf.mxu1  ;;  %v9695_v32 = vpop.f32.mrf.mxu0 }
 0x21a   : > { %10273 = vst [vmem:[#allocation31_spill] sm:$0xff] %v9692_v8  ;;  %v2974_v47 = vadd.f32 %v2921_v33, %v9602_v25  ;;  %v9697_v50 = vadd.f32 %v6859_v28, %v2976_v43 }
 0x21b   : > { %v6828_v49 = vpop.f32.mrf.mxu1  ;;  %v9700_v55 = vpop.f32.mrf.mxu0 }
 0x21c   : > { %10274 = vst [vmem:[#allocation21_spill] sm:$0xff] %v9697_v50  ;;  %v2979_v57 = vadd.f32 %v6828_v49, %v9605_v35  ;;  %v9702_v59 = vadd.f32 %v3647_v39, %v2974_v47 }
 0x21d   : > { %v2934_v40 = vpop.f32.mrf.mxu1  ;;  %v9705_v62 = vpop.f32.mrf.mxu0 }
 0x21e   : > { %10275 = vst [vmem:[#allocation34_spill] sm:$0xff] %v9702_v59  ;;  %v2977_v52 = vadd.f32 %v2934_v40, %v9608_v20  ;;  %v9707_v48 = vadd.f32 %v6862_v3, %v2979_v57 }
 0x21f   : > { %v6829_v45 = vpop.f32.mrf.mxu1  ;;  %v9710_v41 = vpop.f32.mrf.mxu0 }
 0x220   : > { %10276 = vst [vmem:[#allocation23_spill] sm:$0xff] %v9707_v48  ;;  %v2980_v25 = vadd.f32 %v6829_v45, %v9611_v9  ;;  %v9712_v56 = vadd.f32 %v3660_v22, %v2977_v52 }
 0x221   : > { %v2937_v34 = vpop.f32.mrf.mxu1  ;;  %v9715_v51 = vpop.f32.mrf.mxu0 }
 0x222   : > { %10277 = vst [vmem:[#allocation24_spill] sm:$0xff] %v9712_v56  ;;  %v2978_v35 = vadd.f32 %v2937_v34, %v9614_v46  ;;  %v9717_v28 = vadd.f32 %v6863_v63, %v2980_v25 }
 0x223   : > { %v6868_v11 = vpop.f32.mrf.mxu1  ;;  %v9719_v20 = vpop.f32.mrf.mxu0 }
 0x224   : > { %10278 = vst [vmem:[#allocation26_spill] sm:$0xff] %v9717_v28  ;;  %v9721_v21 = vadd.f32 %v3663_v12, %v2978_v35 }
 0x225   : > { %v4018_v39 = vpop.f32.mrf.mxu1  ;;  %v9723_v53 = vpop.f32.mrf.mxu0 }
 0x226   : > { %10279 = vst [vmem:[#allocation11_spill] sm:$0xff] %v9721_v21 }
 0x227   : > { %v6869_v9 = vpop.f32.mrf.mxu1  ;;  %v9725_v58 = vpop.f32.mrf.mxu0 }
 0x229   : > { %v9727_v3 = vpop.f32.mrf.mxu1  ;;  %v9729_v24 = vpop.f32.mrf.mxu0 }
 0x22b   : > { %v9731_v46 = vpop.f32.mrf.mxu1  ;;  %v9733_v19 = vpop.f32.mrf.mxu0 }
 0x22d   : > { %v9735_v22 = vpop.f32.mrf.mxu1  ;;  %v9737_v27 = vpop.f32.mrf.mxu0 }
 0x22f   : > { %v9739_v42 = vpop.f32.mrf.mxu1  ;;  %v9741_v63 = vpop.f32.mrf.mxu0 }
 0x231   : > { %v9743_v60 = vpop.f32.mrf.mxu1  ;;  %v9745_v43 = vpop.f32.mrf.mxu0 }
 0x233   : > { %v9747_v12 = vpop.f32.mrf.mxu1  ;;  %v9749_v33 = vpop.f32.mrf.mxu0 }
 0x235   : > { %v9751_v47 = vpop.f32.mrf.mxu1  ;;  %v9753_v49 = vpop.f32.mrf.mxu0 }
 0x236   : > { %10280 = vst [vmem:[#allocation4_spill] sm:$0xff] %v9753_v49 }
 0x237   : > { %v9755_v57 = vpop.f32.mrf.mxu1  ;;  %v9757_v40 = vpop.f32.mrf.mxu0 }
 0x238   : > { %10281 = vst [vmem:[#allocation14_spill] sm:$0xff] %v9757_v40 }
 0x239   : > { %v9759_v52 = vpop.f32.mrf.mxu1  ;;  %v9761_v45 = vpop.f32.mrf.mxu0 }
 0x23a   : > { %10282 = vst [vmem:[#allocation5_spill] sm:$0xff] %v9761_v45 }
 0x23b   : > { %v9763_v25 = vpop.f32.mrf.mxu1  ;;  %v9765_v34 = vpop.f32.mrf.mxu0 }
 0x23c   : > { %10283 = vst [vmem:[#allocation13_spill] sm:$0xff] %v9765_v34 }
 0x23d   : > { %v9767_v35 = vpop.f32.mrf.mxu1  ;;  %v9769_v21 = vpop.f32.mrf.mxu0 }
 0x23e   : > { %10284 = vst [vmem:[#allocation9_spill] sm:$0xff] %v9769_v21 }
 0x23f   : > { %v9771_v28 = vpop.f32.mrf.mxu1  ;;  %v9773_v56 = vpop.f32.mrf.mxu0 }
 0x240   : > { %10285 = vst [vmem:[#allocation17_spill] sm:$0xff] %v9773_v56 }
 0x241   : > { %v9775_v48 = vpop.f32.mrf.mxu1  ;;  %v9777_v59 = vpop.f32.mrf.mxu0 }
 0x242   : > { %10286 = vst [vmem:[#allocation18_spill] sm:$0xff] %v9777_v59 }
 0x243   : > { %v9779_v50 = vpop.f32.mrf.mxu1  ;;  %v9781_v8 = vpop.f32.mrf.mxu0 }
 0x244   : > { %10287 = vst [vmem:[#allocation19_spill] sm:$0xff] %v9781_v8 }
 0x245   : > { %v9783_v26 = vpop.f32.mrf.mxu1  ;;  %v9785_v37 = vpop.f32.mrf.mxu0 }
 0x246   : > { %10288 = vst [vmem:[#allocation20_spill] sm:$0xff] %v9785_v37 }
 0x247   : > { %v9787_v14 = vpop.f32.mrf.mxu1  ;;  %v9789_v44 = vpop.f32.mrf.mxu0 }
 0x248   : > { %10289 = vst [vmem:[#allocation22_spill] sm:$0xff] %v9787_v14  ;;  %10290 = vst [vmem:[#allocation25_spill] sm:$0xff] %v9789_v44 }
 0x249   : > { %v9791_v21 = vpop.f32.mrf.mxu1  ;;  %v9793_v30 = vpop.f32.mrf.mxu0 }
 0x24a   : > { %10291 = vst [vmem:[#allocation27_spill] sm:$0xff] %v9791_v21  ;;  %10292 = vst [vmem:[#allocation28_spill] sm:$0xff] %v9793_v30 }
 0x24b   : > { %v9795_v56 = vpop.f32.mrf.mxu1  ;;  %v9797_v10 = vpop.f32.mrf.mxu0 }
 0x24c   : > { %10293 = vst [vmem:[#allocation29_spill] sm:$0xff] %v9795_v56  ;;  %10294 = vst [vmem:[#allocation30_spill] sm:$0xff] %v9797_v10 }
 0x24d   : > { %v9799_v59 = vpop.f32.mrf.mxu1  ;;  %v9801_v34 = vpop.f32.mrf.mxu0 }
 0x24e   : > { %10295 = vst [vmem:[#allocation10_spill] sm:$0xff] %v9799_v59  ;;  %10296 = vst [vmem:[#allocation12_spill] sm:$0xff] %v9801_v34 }
 0x24f   : > { %v9803_v8 = vpop.f32.mrf.mxu1  ;;  %v9805_v45 = vpop.f32.mrf.mxu0 }
 0x250   : > { %10297 = vst [vmem:[#allocation35_spill] sm:$0xff] %v9803_v8  ;;  %10298 = vst [vmem:[#allocation36_spill] sm:$0xff] %v9805_v45 }
 0x251   : > { %v9807_v37 = vpop.f32.mrf.mxu1  ;;  %v9809_v14 = vpop.f32.mrf.mxu0 }
 0x252   : > { %10299 = vst [vmem:[#allocation37_spill] sm:$0xff] %v9807_v37  ;;  %10300 = vst [vmem:[#allocation38_spill] sm:$0xff] %v9809_v14  ;;  %v4147_v14 = vadd.f32 %v6868_v11, %v9617_v16 }
 0x253   : > { %v9811_v44 = vpop.f32.mrf.mxu1  ;;  %v9813_v21 = vpop.f32.mrf.mxu0 }
 0x254   : > { %10301 = vst [vmem:[#allocation39_spill] sm:$0xff] %v9811_v44  ;;  %10302 = vst [vmem:[#allocation40_spill] sm:$0xff] %v9813_v21 }
 0x255   : > { %v9815_v30 = vpop.f32.mrf.mxu1  ;;  %v9817_v56 = vpop.f32.mrf.mxu0 }
 0x256   : > { %10303 = vst [vmem:[#allocation41_spill] sm:$0xff] %v9815_v30  ;;  %10304 = vst [vmem:[#allocation42_spill] sm:$0xff] %v9817_v56  ;;  %v4145_v30 = vadd.f32 %v4018_v39, %v9620_v5  ;;  %v9843_v5 = vld [vmem:[%s10079_s5] ss:$0 sm:$0xff] }
 0x257   : > { %v9819_v10 = vpop.f32.mrf.mxu1  ;;  %v9821_v59 = vpop.f32.mrf.mxu0 }
 0x258   : > { %10305 = vst [vmem:[#allocation43_spill] sm:$0xff] %v9819_v10  ;;  %10306 = vst [vmem:[#allocation44_spill] sm:$0xff] %v9821_v59  ;;  %v4148_v59 = vadd.f32 %v6869_v9, %v9623_v23  ;;  %v4504_v16 = vadd.f32 %v9700_v55, %v4145_v30  ;;  %v9853_v30 = vld [vmem:[%s10080_s6] ss:$0 sm:$0xff] }
 0x259   : > { %v9823_v34 = vpop.f32.mrf.mxu1  ;;  %v6970_v8 = vpop.f32.mrf.mxu0 }
 0x25a   : > { %10307 = vst [vmem:[#allocation45_spill] sm:$0xff] %v9823_v34  ;;  %v4506_v34 = vadd.f32 %v9695_v32, %v4147_v14  ;;  %v4507_v23 = vadd.f32 %v9705_v62, %v4148_v59  ;;  %v4151_v32 = vadd.f32 %v9731_v46, %v9629_v31  ;;  %v4152_v31 = vadd.f32 %v9739_v42, %v9635_v18 }
 0x25b   : > { %v9825_v45 = vpop.f32.mrf.mxu1  ;;  %v5573_v37 = vpop.f32.mrf.mxu0 }
 0x25c   : > { %10308 = vst [vmem:[#allocation46_spill] sm:$0xff] %v9825_v45  ;;  %v4146_v45 = vadd.f32 %v9727_v3, %v9626_v61  ;;  %v4149_v61 = vadd.f32 %v9735_v22, %v9632_v38  ;;  %v4510_v18 = vadd.f32 %v9715_v51, %v4151_v32 }
 0x25d   : > { %v9827_v7 = vpop.f32.mrf.mxu1  ;;  %v6971_v44 = vpop.f32.mrf.mxu0 }
 0x25e   : > { %10309 = vst [vmem:[#allocation47_spill] sm:$0xff] %v9827_v7  ;;  %v4505_v59 = vadd.f32 %v9710_v41, %v4146_v45 }
 0x25f   : > { %v9830_v21 = vpop.f32.mrf.mxu1  ;;  %v5576_v56 = vpop.f32.mrf.mxu0 }
 0x260   : > { %10310 = vst [vmem:[#allocation48_spill] sm:$0xff] %v9830_v21 }
 0x261   : > { %v9833_v40 = vpop.f32.mrf.mxu1  ;;  %v6974_v10 = vpop.f32.mrf.mxu0 }
 0x262   : > { %10311 = vst [vmem:[#allocation49_spill] sm:$0xff] %v9833_v40 }
 0x263   : > { %v6936_v49 = vpop.f32.mrf.mxu1  ;;  %v5589_v11 = vpop.f32.mrf.mxu0 }
 0x264   : > { %v5232_v7 = vadd.f32 %v6936_v49, %v4506_v34 }
 0x265   : > { %v5103_v39 = vpop.f32.mrf.mxu1  ;;  %v6975_v14 = vpop.f32.mrf.mxu0 }
 0x266   : > { %v5702_v40 = vadd.f32 %v6970_v8, %v5232_v7  ;;  %v5230_v21 = vadd.f32 %v5103_v39, %v4504_v16  ;;  %v4155_v39 = vadd.f32 %v9747_v12, %v9641_v0 }
 0x267   : > { %v6937_v55 = vpop.f32.mrf.mxu1  ;;  %v5592_v62 = vpop.f32.mrf.mxu0 }
 0x268   : > { %v5741_v9 = vmul.f32 %v9843_v5, %v5702_v40  ;;  %v5700_v7 = vadd.f32 %v5573_v37, %v5230_v21  ;;  %v5233_v8 = vadd.f32 %v6937_v55, %v4507_v23  ;;  %v4150_v37 = vadd.f32 %v9743_v60, %v9638_v4 }
 0x269   : > { %v5106_v3 = vpop.f32.mrf.mxu1  ;;  %v6978_v34 = vpop.f32.mrf.mxu0  ;;  %v4508_v21 = vadd.f32 %v9719_v20, %v4149_v61  ;;  %v4511_v4 = vadd.f32 %v9723_v53, %v4152_v31  ;;  %v4153_v31 = vadd.f32 %v9751_v47, %v9644_v2 }
 0x26a   : > { %v5780_v46 = vadd.f32 %v9853_v30, %v5741_v9  ;;  %v5739_v38 = vmul.f32 %v9843_v5, %v5700_v7  ;;  %v5703_v22 = vadd.f32 %v6971_v44, %v5233_v8  ;;  %v5231_v49 = vadd.f32 %v5106_v3, %v4505_v59 }
 0x26b   : > { %v6940_v41 = vpop.f32.mrf.mxu1  ;;  %v5605_v16 = vpop.f32.mrf.mxu0  ;;  %v4509_v7 = vadd.f32 %v9725_v58, %v4150_v37  ;;  %v4156_v3 = vadd.f32 %v9755_v57, %v9647_v36  ;;  %v4514_v58 = vadd.f32 %v9729_v24, %v4155_v39 }
 0x26c   : > { %v5812_v42 = vmax.f32 %v5780_v46, 0.0  ;;  %v5778_v44 = vadd.f32 %v9853_v30, %v5739_v38  ;;  %v5742_v40 = vmul.f32 %v9843_v5, %v5703_v22  ;;  %v5701_v45 = vadd.f32 %v5576_v56, %v5231_v49 }
 0x26d   : > { %v5236_v23 = vadd.f32 %v6940_v41, %v4510_v18  ;;  %v5119_v55 = vpop.f32.mrf.mxu1  ;;  %v6979_v61 = vpop.f32.mrf.mxu0  ;;  %v4154_v18 = vadd.f32 %v9759_v52, %v9650_v13  ;;  %v4512_v13 = vadd.f32 %v9733_v19, %v4153_v31 }
 0x26e   : > { %5845 = vst.msk [vmem:[%s9866_s23 + $0x10] sm:$0xff] %vm5842_vm0, %v5812_v42  ;;  %v5810_v51 = vmax.f32 %v5778_v44, 0.0  ;;  %v5781_v20 = vadd.f32 %v9853_v30, %v5742_v40  ;;  %v5740_v60 = vmul.f32 %v9843_v5, %v5701_v45  ;;  %v5234_v32 = vadd.f32 %v5119_v55, %v4508_v21 }
 0x26f   : > { %v5706_v9 = vadd.f32 %v6974_v10, %v5236_v23  ;;  %v6941_v56 = vpop.f32.mrf.mxu1  ;;  %v5608_v59 = vpop.f32.mrf.mxu0  ;;  %v4515_v44 = vadd.f32 %v9737_v27, %v4156_v3  ;;  %v4157_v55 = vadd.f32 %v9767_v35, %v9656_v1  ;;  %v4513_v19 = vadd.f32 %v9741_v63, %v4154_v18 }
 0x270   : > { %5843 = vst.msk [vmem:[%s9866_s23] sm:$0xff] %vm5842_vm0, %v5810_v51  ;;  %v5813_v0 = vmax.f32 %v5781_v20, 0.0  ;;  %v5779_v12 = vadd.f32 %v9853_v30, %v5740_v60  ;;  %v5704_v53 = vadd.f32 %v5589_v11, %v5234_v32  ;;  %v5237_v8 = vadd.f32 %v6941_v56, %v4511_v4 }
 0x271   : > { %v5745_v10 = vmul.f32 %v9843_v5, %v5706_v9  ;;  %v5122_v46 = vpop.f32.mrf.mxu1  ;;  %v6982_v37 = vpop.f32.mrf.mxu0 }
 0x272   : > { %5846 = vst.msk [vmem:[%s9866_s23 + $0x18] sm:$0xff] %vm5842_vm0, %v5813_v0  ;;  %v5811_v38 = vmax.f32 %v5779_v12, 0.0  ;;  %v5743_v22 = vmul.f32 %v9843_v5, %v5704_v53  ;;  %v5707_v11 = vadd.f32 %v6975_v14, %v5237_v8  ;;  %v5235_v49 = vadd.f32 %v5122_v46, %v4509_v7 }
 0x273   : > { %v5784_v2 = vadd.f32 %v9853_v30, %v5745_v10  ;;  %v6944_v47 = vpop.f32.mrf.mxu1  ;;  %v5621_v21 = vpop.f32.mrf.mxu0  ;;  %v4159_v14 = vadd.f32 %v9763_v25, %v9653_v54  ;;  %v4160_v0 = vadd.f32 %v9771_v28, %v9659_v6  ;;  %v4158_v12 = vadd.f32 %v9775_v48, %v9662_v15 }
 0x274   : > { %5844 = vst.msk [vmem:[%s9866_s23 + $0x8] sm:$0xff] %vm5842_vm0, %v5811_v38  ;;  %v5782_v36 = vadd.f32 %v9853_v30, %v5743_v22  ;;  %v5746_v24 = vmul.f32 %v9843_v5, %v5707_v11  ;;  %v5705_v57 = vadd.f32 %v5592_v62, %v5235_v49  ;;  %v5240_v41 = vadd.f32 %v6944_v47, %v4514_v58  ;;  %v10312_v11 = vld [vmem:[#allocation4_spill] sm:$0xff]  ;;  %v10313_v49 = vld [vmem:[#allocation14_spill] sm:$0xff] }
 0x275   : > { %v5816_v42 = vmax.f32 %v5784_v2, 0.0  ;;  %v5135_v52 = vpop.f32.mrf.mxu1  ;;  %v6983_v62 = vpop.f32.mrf.mxu0  ;;  %v4518_v1 = vadd.f32 %v9745_v43, %v4159_v14  ;;  %v4516_v43 = vadd.f32 %v9749_v33, %v4157_v55  ;;  %v4163_v46 = vadd.f32 %v9779_v50, %v9665_v29  ;;  %v10317_v55 = vld [vmem:[#allocation13_spill] sm:$0xff] }
 0x276   : > { %v5814_v40 = vmax.f32 %v5782_v36, 0.0  ;;  %v5785_v45 = vadd.f32 %v9853_v30, %v5746_v24  ;;  %v5744_v39 = vmul.f32 %v9843_v5, %v5705_v57  ;;  %v5710_v23 = vadd.f32 %v6978_v34, %v5240_v41  ;;  %v10314_v57 = vld [vmem:[#allocation15_spill] sm:$0xff]  ;;  %v10315_v41 = vld [vmem:[#allocation22_spill] sm:$0xff] }
 0x277   : > { %5849 = vst.msk [vmem:[%s9866_s23 + $0x30] sm:$0xff] %vm5842_vm0, %v5816_v42  ;;  %v5238_v54 = vadd.f32 %v5135_v52, %v4512_v13  ;;  %v6945_v25 = vpop.f32.mrf.mxu1  ;;  %v5624_v34 = vpop.f32.mrf.mxu0  ;;  %v4519_v29 = vadd.f32 %v10312_v11, %v4160_v0  ;;  %v4517_v18 = vadd.f32 %v10313_v49, %v4158_v12  ;;  %v4164_v14 = vadd.f32 %v10315_v41, %v10314_v57  ;;  %v10316_v42 = vld [vmem:[#allocation5_spill] sm:$0xff]  ;;  %v10328_v49 = vld [vmem:[#allocation18_spill] sm:$0xff] }
 0x278   : > { %5847 = vst.msk [vmem:[%s9866_s23 + $0x20] sm:$0xff] %vm5842_vm0, %v5814_v40  ;;  %v5817_v27 = vmax.f32 %v5785_v45, 0.0  ;;  %v5783_v4 = vadd.f32 %v9853_v30, %v5744_v39  ;;  %v5749_v51 = vmul.f32 %v9843_v5, %v5710_v23  ;;  %v5241_v20 = vadd.f32 %v6945_v25, %v4515_v44  ;;  %v10327_v11 = vld [vmem:[#allocation17_spill] sm:$0xff] }
 0x279   : > { %v5708_v60 = vadd.f32 %v5605_v16, %v5238_v54  ;;  %v5138_v32 = vpop.f32.mrf.mxu1  ;;  %v6986_v7 = vpop.f32.mrf.mxu0  ;;  %v4522_v13 = vadd.f32 %v10316_v42, %v4163_v46  ;;  %v10329_v57 = vld [vmem:[#allocation33_spill] sm:$0xff]  ;;  %v10331_v42 = vld [vmem:[#allocation19_spill] sm:$0xff] }
 0x27a   : > { %5850 = vst.msk [vmem:[%s9866_s23 + $0x38] sm:$0xff] %vm5842_vm0, %v5817_v27  ;;  %v5815_v35 = vmax.f32 %v5783_v4, 0.0  ;;  %v5788_v9 = vadd.f32 %v9853_v30, %v5749_v51  ;;  %v5711_v63 = vadd.f32 %v6979_v61, %v5241_v20  ;;  %v5239_v56 = vadd.f32 %v5138_v32, %v4513_v19  ;;  %v10318_v20 = vld [vmem:[#allocation6_spill] sm:$0xff]  ;;  %v10330_v41 = vld [vmem:[#allocation37_spill] sm:$0xff] }
 0x27b   : > { %v5747_v16 = vmul.f32 %v9843_v5, %v5708_v60  ;;  %v6948_v53 = vpop.f32.mrf.mxu1  ;;  %v5637_v10 = vpop.f32.mrf.mxu0  ;;  %v10319_v60 = vld [vmem:[#allocation27_spill] sm:$0xff] }
 0x27c   : > { %5848 = vst.msk [vmem:[%s9866_s23 + $0x28] sm:$0xff] %vm5842_vm0, %v5815_v35  ;;  %v5820_v8 = vmax.f32 %v5788_v9, 0.0  ;;  %v5750_v31 = vmul.f32 %v9843_v5, %v5711_v63  ;;  %v5709_v61 = vadd.f32 %v5608_v59, %v5239_v56  ;;  %v5244_v3 = vadd.f32 %v6948_v53, %v4518_v1  ;;  %v10320_v1 = vld [vmem:[#allocation7_spill] sm:$0xff]  ;;  %v10321_v35 = vld [vmem:[#allocation29_spill] sm:$0xff] }
 0x27d   : > { %v5786_v6 = vadd.f32 %v9853_v30, %v5747_v16  ;;  %v5151_v28 = vpop.f32.mrf.mxu1  ;;  %v6987_v38 = vpop.f32.mrf.mxu0  ;;  %v4161_v59 = vadd.f32 %v9783_v26, %v9668_v17  ;;  %v4162_v32 = vadd.f32 %v10319_v60, %v10318_v20  ;;  %v4167_v9 = vadd.f32 %v10321_v35, %v10320_v1  ;;  %v10322_v56 = vld [vmem:[#allocation9_spill] sm:$0xff]  ;;  %v10333_v20 = vld [vmem:[#allocation32_spill] sm:$0xff]  ;;  %v10334_v60 = vld [vmem:[#allocation39_spill] sm:$0xff] }
 0x27e   : > { %5853 = vst.msk [vmem:[%s9866_s23 + $0x50] sm:$0xff] %vm5842_vm0, %v5820_v8  ;;  %v5789_v15 = vadd.f32 %v9853_v30, %v5750_v31  ;;  %v5748_v48 = vmul.f32 %v9843_v5, %v5709_v61  ;;  %v5714_v33 = vadd.f32 %v6982_v37, %v5244_v3  ;;  %v5242_v58 = vadd.f32 %v5151_v28, %v4516_v43  ;;  %v10323_v8 = vld [vmem:[#allocation8_spill] sm:$0xff]  ;;  %v10324_v31 = vld [vmem:[#allocation10_spill] sm:$0xff]  ;;  %v10335_v1 = vld [vmem:[#allocation31_spill] sm:$0xff] }
 0x27f   : > { %v5818_v22 = vmax.f32 %v5786_v6, 0.0  ;;  %v6949_v50 = vpop.f32.mrf.mxu1  ;;  %v5640_v37 = vpop.f32.mrf.mxu0  ;;  %v4520_v54 = vadd.f32 %v10317_v55, %v4161_v59  ;;  %v4523_v0 = vadd.f32 %v10322_v56, %v4164_v14  ;;  %v4165_v61 = vadd.f32 %v10324_v31, %v10323_v8  ;;  %v10332_v55 = vld [vmem:[#allocation20_spill] sm:$0xff]  ;;  %v10336_v35 = vld [vmem:[#allocation41_spill] sm:$0xff]  ;;  %v10339_v8 = vld [vmem:[#allocation43_spill] sm:$0xff] }
 0x280   : > { %v5821_v2 = vmax.f32 %v5789_v15, 0.0  ;;  %v5787_v47 = vadd.f32 %v9853_v30, %v5748_v48  ;;  %v5753_v36 = vmul.f32 %v9843_v5, %v5714_v33  ;;  %v5712_v24 = vadd.f32 %v5621_v21, %v5242_v58  ;;  %v10325_v58 = vld [vmem:[#allocation16_spill] sm:$0xff] }
 0x281   : > { %5851 = vst.msk [vmem:[%s9866_s23 + $0x40] sm:$0xff] %vm5842_vm0, %v5818_v22  ;;  %v5245_v17 = vadd.f32 %v6949_v50, %v4519_v29  ;;  %v5154_v26 = vpop.f32.mrf.mxu1  ;;  %v6990_v21 = vpop.f32.mrf.mxu0  ;;  %v4521_v29 = vadd.f32 %v10327_v11, %v4162_v32  ;;  %v4166_v14 = vadd.f32 %v10330_v41, %v10329_v57  ;;  %v4171_v32 = vadd.f32 %v10334_v60, %v10333_v20  ;;  %v10350_v60 = vld [vmem:[#allocation26_spill] sm:$0xff] }
 0x282   : > { %5854 = vst.msk [vmem:[%s9866_s23 + $0x58] sm:$0xff] %vm5842_vm0, %v5821_v2  ;;  %v5819_v52 = vmax.f32 %v5787_v47, 0.0  ;;  %v5792_v44 = vadd.f32 %v9853_v30, %v5753_v36  ;;  %v5751_v40 = vmul.f32 %v9843_v5, %v5712_v24  ;;  %v5243_v45 = vadd.f32 %v5154_v26, %v4517_v18 }
 0x283   : > { %v5715_v39 = vadd.f32 %v6983_v62, %v5245_v17  ;;  %v6952_v23 = vpop.f32.mrf.mxu1  ;;  %v5653_v51 = vpop.f32.mrf.mxu0  ;;  %v4526_v18 = vadd.f32 %v10328_v49, %v4167_v9  ;;  %v4169_v9 = vadd.f32 %v10336_v35, %v10335_v1 }
 0x284   : > { %5852 = vst.msk [vmem:[%s9866_s23 + $0x48] sm:$0xff] %vm5842_vm0, %v5819_v52  ;;  %v5824_v25 = vmax.f32 %v5792_v44, 0.0  ;;  %v5790_v19 = vadd.f32 %v9853_v30, %v5751_v40  ;;  %v5713_v27 = vadd.f32 %v5624_v34, %v5243_v45  ;;  %v5248_v4 = vadd.f32 %v6952_v23, %v4522_v13 }
 0x285   : > { %v5754_v62 = vmul.f32 %v9843_v5, %v5715_v39  ;;  %v5167_v63 = vpop.f32.mrf.mxu1  ;;  %v6991_v43 = vpop.f32.mrf.mxu0  ;;  %v4524_v13 = vadd.f32 %v10331_v42, %v4165_v61 }
 0x286   : > { %5857 = vst.msk [vmem:[%s9866_s23 + $0x70] sm:$0xff] %vm5842_vm0, %v5824_v25  ;;  %v5822_v12 = vmax.f32 %v5790_v19, 0.0  ;;  %v5752_v16 = vmul.f32 %v9843_v5, %v5713_v27  ;;  %v5718_v34 = vadd.f32 %v6986_v7, %v5248_v4  ;;  %v5246_v53 = vadd.f32 %v5167_v63, %v4520_v54  ;;  %v10326_v7 = vld [vmem:[#allocation35_spill] sm:$0xff]  ;;  %v10337_v63 = vld [vmem:[#allocation25_spill] sm:$0xff] }
 0x287   : > { %v5793_v3 = vadd.f32 %v9853_v30, %v5754_v62  ;;  %v6953_v46 = vpop.f32.mrf.mxu1  ;;  %v5656_v33 = vpop.f32.mrf.mxu0  ;;  %v4168_v59 = vadd.f32 %v10326_v7, %v10325_v58  ;;  %v4525_v56 = vadd.f32 %v10337_v63, %v4166_v14  ;;  %v10341_v58 = vld [vmem:[#allocation45_spill] sm:$0xff] }
 0x288   : > { %5855 = vst.msk [vmem:[%s9866_s23 + $0x60] sm:$0xff] %vm5842_vm0, %v5822_v12  ;;  %v5791_v6 = vadd.f32 %v9853_v30, %v5752_v16  ;;  %v5757_v28 = vmul.f32 %v9843_v5, %v5718_v34  ;;  %v5716_v15 = vadd.f32 %v5637_v10, %v5246_v53  ;;  %v5249_v48 = vadd.f32 %v6953_v46, %v4523_v0  ;;  %v10338_v53 = vld [vmem:[#allocation21_spill] sm:$0xff] }
 0x289   : > { %v5825_v22 = vmax.f32 %v5793_v3, 0.0  ;;  %v5170_v50 = vpop.f32.mrf.mxu1  ;;  %v6994_v10 = vpop.f32.mrf.mxu0  ;;  %v4527_v54 = vadd.f32 %v10332_v55, %v4168_v59  ;;  %v4172_v31 = vadd.f32 %v10339_v8, %v10338_v53  ;;  %v10342_v59 = vld [vmem:[#allocation28_spill] sm:$0xff] }
 0x28a   : > { %v5823_v2 = vmax.f32 %v5791_v6, 0.0  ;;  %v5796_v47 = vadd.f32 %v9853_v30, %v5757_v28  ;;  %v5755_v36 = vmul.f32 %v9843_v5, %v5716_v15  ;;  %v5719_v24 = vadd.f32 %v6987_v38, %v5249_v48  ;;  %v10340_v48 = vld [vmem:[#allocation34_spill] sm:$0xff] }
 0x28b   : > { %5858 = vst.msk [vmem:[%s9866_s23 + $0x78] sm:$0xff] %vm5842_vm0, %v5825_v22  ;;  %v5247_v17 = vadd.f32 %v5170_v50, %v4521_v29  ;;  %v6956_v26 = vpop.f32.mrf.mxu1  ;;  %v5669_v38 = vpop.f32.mrf.mxu0  ;;  %v4530_v22 = vadd.f32 %v10342_v59, %v4171_v32  ;;  %v10343_v29 = vld [vmem:[#allocation30_spill] sm:$0xff]  ;;  %v10351_v32 = vld [vmem:[#allocation48_spill] sm:$0xff] }
 0x28c   : > { %5856 = vst.msk [vmem:[%s9866_s23 + $0x68] sm:$0xff] %vm5842_vm0, %v5823_v2  ;;  %v5828_v52 = vmax.f32 %v5796_v47, 0.0  ;;  %v5794_v44 = vadd.f32 %v9853_v30, %v5755_v36  ;;  %v5758_v40 = vmul.f32 %v9843_v5, %v5719_v24  ;;  %v5252_v45 = vadd.f32 %v6956_v26, %v4526_v18  ;;  %v10345_v24 = vld [vmem:[#allocation46_spill] sm:$0xff] }
 0x28d   : > { %v5717_v39 = vadd.f32 %v5640_v37, %v5247_v17  ;;  %v5183_v23 = vpop.f32.mrf.mxu1  ;;  %v6995_v0 = vpop.f32.mrf.mxu0  ;;  %v4528_v50 = vadd.f32 %v10343_v29, %v4169_v9  ;;  %v10346_v17 = vld [vmem:[#allocation12_spill] sm:$0xff]  ;;  %v4176_v1 = vadd.f32 %v10351_v32, %v10350_v60  ;;  %v10352_v9 = vld [vmem:[#allocation38_spill] sm:$0xff] }
 0x28e   : > { %5861 = vst.msk [vmem:[%s9866_s23 + $0x90] sm:$0xff] %vm5842_vm0, %v5828_v52  ;;  %v5826_v25 = vmax.f32 %v5794_v44, 0.0  ;;  %v5797_v19 = vadd.f32 %v9853_v30, %v5758_v40  ;;  %v5722_v27 = vadd.f32 %v6990_v21, %v5252_v45  ;;  %v5250_v4 = vadd.f32 %v5183_v23, %v4524_v13  ;;  %v10347_v45 = vld [vmem:[#allocation36_spill] sm:$0xff] }
 0x28f   : > { %v5756_v62 = vmul.f32 %v9843_v5, %v5717_v39  ;;  %v6957_v37 = vpop.f32.mrf.mxu1  ;;  %v5672_v49 = vpop.f32.mrf.mxu0  ;;  %v4531_v26 = vadd.f32 %v10346_v17, %v4172_v31 }
 0x290   : > { %5859 = vst.msk [vmem:[%s9866_s23 + $0x80] sm:$0xff] %vm5842_vm0, %v5826_v25  ;;  %v5829_v12 = vmax.f32 %v5797_v19, 0.0  ;;  %v5761_v16 = vmul.f32 %v9843_v5, %v5722_v27  ;;  %v5720_v21 = vadd.f32 %v5653_v51, %v5250_v4  ;;  %v5253_v34 = vadd.f32 %v6957_v37, %v4527_v54  ;;  %v10348_v27 = vld [vmem:[#allocation24_spill] sm:$0xff]  ;;  %v10349_v4 = vld [vmem:[#allocation47_spill] sm:$0xff] }
 0x291   : > { %v5795_v61 = vadd.f32 %v9853_v30, %v5756_v62  ;;  %v5186_v3 = vpop.f32.mrf.mxu1  ;;  %v4170_v51 = vadd.f32 %v10341_v58, %v10340_v48  ;;  %v6998_v23 = vpop.f32.mrf.mxu0  ;;  %v4173_v20 = vadd.f32 %v10349_v4, %v10348_v27  ;;  %v10356_v48 = vld [vmem:[#allocation42_spill] sm:$0xff] }
 0x292   : > { %5862 = vst.msk [vmem:[%s9866_s23 + $0x98] sm:$0xff] %vm5842_vm0, %v5829_v12  ;;  %v5800_v46 = vadd.f32 %v9853_v30, %v5761_v16  ;;  %v5759_v6 = vmul.f32 %v9843_v5, %v5720_v21  ;;  %v5723_v28 = vadd.f32 %v6991_v43, %v5253_v34  ;;  %v5251_v15 = vadd.f32 %v5186_v3, %v4525_v56  ;;  %v10344_v43 = vld [vmem:[#allocation23_spill] sm:$0xff]  ;;  %v10354_v16 = vld [vmem:[#allocation49_spill] sm:$0xff] }
 0x293   : > { %v5827_v7 = vmax.f32 %v5795_v61, 0.0  ;;  %v6960_v11 = vpop.f32.mrf.mxu1  ;;  %v4175_v57 = vadd.f32 %v10345_v24, %v10344_v43  ;;  %v4529_v39 = vadd.f32 %v10347_v45, %v4170_v51  ;;  %v10353_v12 = vld [vmem:[#allocation11_spill] sm:$0xff]  ;;  %v5685_v8 = vpop.f32.mrf.mxu0  ;;  %v4535_v58 = vadd.f32 %v10356_v48, %v4176_v1 }
 0x294   : > { %v5832_v18 = vmax.f32 %v5800_v46, 0.0  ;;  %v5798_v2 = vadd.f32 %v9853_v30, %v5759_v6  ;;  %v5762_v47 = vmul.f32 %v9843_v5, %v5723_v28  ;;  %v5721_v36 = vadd.f32 %v5656_v33, %v5251_v15 }
 0x295   : > { %5860 = vst.msk [vmem:[%s9866_s23 + $0x88] sm:$0xff] %vm5842_vm0, %v5827_v7  ;;  %v5256_v41 = vadd.f32 %v6960_v11, %v4530_v22  ;;  %v5199_v14 = vpop.f32.mrf.mxu1  ;;  %v4534_v62 = vadd.f32 %v10352_v9, %v4175_v57  ;;  %v4174_v21 = vadd.f32 %v10354_v16, %v10353_v12  ;;  %v6999_v29 = vpop.f32.mrf.mxu0 }
 0x296   : > { %5865 = vst.msk [vmem:[%s9866_s23 + $0xb0] sm:$0xff] %vm5842_vm0, %v5832_v18  ;;  %v5830_v42 = vmax.f32 %v5798_v2, 0.0  ;;  %v5801_v13 = vadd.f32 %v9853_v30, %v5762_v47  ;;  %v5760_v52 = vmul.f32 %v9843_v5, %v5721_v36  ;;  %v5254_v44 = vadd.f32 %v5199_v14, %v4528_v50 }
 0x297   : > { %v5726_v40 = vadd.f32 %v6994_v10, %v5256_v41  ;;  %v6961_v33 = vpop.f32.mrf.mxu1 }
 0x298   : > { %5863 = vst.msk [vmem:[%s9866_s23 + $0xa0] sm:$0xff] %vm5842_vm0, %v5830_v42  ;;  %v5833_v55 = vmax.f32 %v5801_v13, 0.0  ;;  %v5799_v54 = vadd.f32 %v9853_v30, %v5760_v52  ;;  %v5724_v25 = vadd.f32 %v5669_v38, %v5254_v44  ;;  %v5257_v19 = vadd.f32 %v6961_v33, %v4531_v26  ;;  %v5688_v13 = vpop.f32.mrf.mxu0 }
 0x299   : > { %v5765_v10 = vmul.f32 %v9843_v5, %v5726_v40  ;;  %v5202_v35 = vpop.f32.mrf.mxu1 }
 0x29a   : > { %5866 = vst.msk [vmem:[%s9866_s23 + $0xb8] sm:$0xff] %vm5842_vm0, %v5833_v55  ;;  %v5831_v37 = vmax.f32 %v5799_v54, 0.0  ;;  %v5763_v63 = vmul.f32 %v9843_v5, %v5724_v25  ;;  %v5727_v56 = vadd.f32 %v6995_v0, %v5257_v19  ;;  %v5255_v38 = vadd.f32 %v5202_v35, %v4529_v39  ;;  %v10355_v0 = vld [vmem:[#allocation40_spill] sm:$0xff] }
 0x29b   : > { %v5804_v34 = vadd.f32 %v9853_v30, %v5765_v10  ;;  %v6964_v53 = vpop.f32.mrf.mxu1  ;;  %v4532_v28 = vadd.f32 %v10355_v0, %v4173_v20 }
 0x29c   : > { %5864 = vst.msk [vmem:[%s9866_s23 + $0xa8] sm:$0xff] %vm5842_vm0, %v5831_v37  ;;  %v5802_v31 = vadd.f32 %v9853_v30, %v5763_v63  ;;  %v5766_v61 = vmul.f32 %v9843_v5, %v5727_v56  ;;  %v5725_v3 = vadd.f32 %v5672_v49, %v5255_v38  ;;  %v5260_v46 = vadd.f32 %v6964_v53, %v4534_v62  ;;  %v10357_v49 = vld [vmem:[#allocation44_spill] sm:$0xff] }
 0x29d   : > { %v5836_v6 = vmax.f32 %v5804_v34, 0.0  ;;  %v5215_v15 = vpop.f32.mrf.mxu1  ;;  %v4533_v18 = vadd.f32 %v10357_v49, %v4174_v21 }
 0x29e   : > { %v5834_v51 = vmax.f32 %v5802_v31, 0.0  ;;  %v5805_v7 = vadd.f32 %v9853_v30, %v5766_v61  ;;  %v5764_v59 = vmul.f32 %v9843_v5, %v5725_v3  ;;  %v5730_v22 = vadd.f32 %v6998_v23, %v5260_v46 }
 0x29f   : > { %5869 = vst.msk [vmem:[%s9866_s23 + $0xd0] sm:$0xff] %vm5842_vm0, %v5836_v6  ;;  %v5258_v11 = vadd.f32 %v5215_v15, %v4532_v28  ;;  %v6965_v50 = vpop.f32.mrf.mxu1 }
 0x2a0   : > { %5867 = vst.msk [vmem:[%s9866_s23 + $0xc0] sm:$0xff] %vm5842_vm0, %v5834_v51  ;;  %v5837_v2 = vmax.f32 %v5805_v7, 0.0  ;;  %v5803_v47 = vadd.f32 %v9853_v30, %v5764_v59  ;;  %v5769_v36 = vmul.f32 %v9843_v5, %v5730_v22  ;;  %v5261_v43 = vadd.f32 %v6965_v50, %v4535_v58 }
 0x2a1   : > { %v5728_v24 = vadd.f32 %v5685_v8, %v5258_v11  ;;  %v5218_v57 = vpop.f32.mrf.mxu1 }
 0x2a2   : > { %5870 = vst.msk [vmem:[%s9866_s23 + $0xd8] sm:$0xff] %vm5842_vm0, %v5837_v2  ;;  %v5835_v41 = vmax.f32 %v5803_v47, 0.0  ;;  %v5808_v14 = vadd.f32 %v9853_v30, %v5769_v36  ;;  %v5731_v17 = vadd.f32 %v6999_v29, %v5261_v43  ;;  %v5259_v26 = vadd.f32 %v5218_v57, %v4533_v18 }
 0x2a3   : > { %v5767_v42 = vmul.f32 %v9843_v5, %v5728_v24 }
 0x2a4   : > { %5868 = vst.msk [vmem:[%s9866_s23 + $0xc8] sm:$0xff] %vm5842_vm0, %v5835_v41  ;;  %v5840_v52 = vmax.f32 %v5808_v14, 0.0  ;;  %v5770_v44 = vmul.f32 %v9843_v5, %v5731_v17  ;;  %v5729_v40 = vadd.f32 %v5688_v13, %v5259_v26 }
 0x2a5   : > { %v5806_v33 = vadd.f32 %v9853_v30, %v5767_v42 }
 0x2a6   : > { %5873 = vst.msk [vmem:[%s9866_s23 + $0xf0] sm:$0xff] %vm5842_vm0, %v5840_v52  ;;  %v5809_v45 = vadd.f32 %v9853_v30, %v5770_v44  ;;  %v5768_v39 = vmul.f32 %v9843_v5, %v5729_v40 }
 0x2a7   : > { %v5838_v23 = vmax.f32 %v5806_v33, 0.0 }
 0x2a8   : > { %v5841_v55 = vmax.f32 %v5809_v45, 0.0  ;;  %v5807_v54 = vadd.f32 %v9853_v30, %v5768_v39 }
 0x2a9   : > { %5871 = vst.msk [vmem:[%s9866_s23 + $0xe0] sm:$0xff] %vm5842_vm0, %v5838_v23 }
 0x2aa   : > { %5874 = vst.msk [vmem:[%s9866_s23 + $0xf8] sm:$0xff] %vm5842_vm0, %v5841_v55  ;;  %v5839_v25 = vmax.f32 %v5807_v54, 0.0 }
 0x2ac   : > { %5872 = vst.msk [vmem:[%s9866_s23 + $0xe8] sm:$0xff] %vm5842_vm0, %v5839_v25 }
 0x2ad PF: > { %s19_s26 = sadd.s32 1, %s7084_s26  }
 0x2ae   : > { %p16_p4 = scmp.ge.s32.totalorder %s19_s26, 4  }
 0x2b0   :  { %18 = sbr.rel (!%p16_p4) target bundleno = 3 (0x3), region = 94 }

</bundles_post_ra>
